<compile_context>
chip_gen: v6e
topology: v6e:2x2x1
jax: 0.10.0
libtpu: 0.0.40
codegen_flags: <defaults>
</compile_context>

<pallas_src>
import jax
import jax.numpy as jnp
from jax import lax
from jax.experimental import pallas as pl
from jax.experimental.pallas import tpu as pltpu

_ONE_HOT_CHUNK = 1024          # vocab chunk size for the one-hot MXU gather
_MiB = 1024 * 1024


# --------------------------------------------------------------------------
# Fast path: tables resident in VMEM, gather via chunked one-hot MXU matmul.
# --------------------------------------------------------------------------
def _onehot_gather_f32(tab_ref, ids_col):
    """Gather rows `ids_col[:, 0]` from a VMEM-resident table as f32.

    ids_col: (tile_b, 1) int32.  Returns (tile_b, D) float32.
    Gather-as-matmul: one_hot(ids, vocab_chunk) @ table_chunk, accumulated
    over vocab chunks so the one-hot intermediate stays bounded.
    """
    vocab, d = tab_ref.shape
    tile_b = ids_col.shape[0]
    acc = jnp.zeros((tile_b, d), jnp.float32)
    for c0 in range(0, vocab, _ONE_HOT_CHUNK):
        c = min(_ONE_HOT_CHUNK, vocab - c0)
        iota = c0 + lax.broadcasted_iota(jnp.int32, (tile_b, c), 1)
        onehot = (ids_col == iota).astype(tab_ref.dtype)
        acc = acc + jnp.dot(onehot, tab_ref[c0:c0 + c, :],
                            preferred_element_type=jnp.float32)
    return acc


def _puremf_vmem_kernel(u_idx_ref, i_idx_ref, u_tab_ref, i_tab_ref, o_ref):
    # u_idx_ref / i_idx_ref : (tile_b, 1) int32 index blocks (VMEM)
    # u_tab_ref / i_tab_ref : full embedding tables, VMEM resident
    # o_ref                 : (1, tile_b) f32 lane-dense output block
    u_ids = u_idx_ref[...]                       # (tile_b, 1) i32
    i_ids = i_idx_ref[...]
    ue = _onehot_gather_f32(u_tab_ref, u_ids)    # (tile_b, D) f32
    ie = _onehot_gather_f32(i_tab_ref, i_ids)
    scores = jnp.sum(ue * ie, axis=1)            # (tile_b,)
    o_ref[...] = jax.nn.sigmoid(scores)[None, :]


# --------------------------------------------------------------------------
# Fallback: HBM tables, double-buffered row-gather DMAs.
# --------------------------------------------------------------------------
def _puremf_hbm_kernel(u_idx_ref, i_idx_ref, u_tab_ref, i_tab_ref, o_ref,
                       u_buf, i_buf, sems):
    # u_idx_ref / i_idx_ref : (b_pad,) int32 in SMEM (scalar prefetch)
    # u_tab_ref / i_tab_ref : full embedding tables, left in HBM (pl.ANY)
    # o_ref                 : (1, tile_b) f32 output block
    # u_buf / i_buf         : (2, tile_b, D) double-buffered gather scratch
    # sems                  : (2, 2) DMA semaphores: [table][slot]
    t = pl.program_id(0)
    num_tiles = pl.num_programs(0)
    tile_b = u_buf.shape[1]
    slot = t & 1

    def issue(tile_idx, slot_idx):
        base = tile_idx * tile_b

        # Unrolled x8 so SMEM index loads co-issue with DMA-descriptor pushes.
        def body8(r8, carry):
            for j in range(8):
                r = r8 * 8 + j
                u_row = u_idx_ref[base + r]
                i_row = i_idx_ref[base + r]
                pltpu.make_async_copy(u_tab_ref.at[pl.ds(u_row, 1), :],
                                      u_buf.at[slot_idx, pl.ds(r, 1), :],
                                      sems.at[0, slot_idx]).start()
                pltpu.make_async_copy(i_tab_ref.at[pl.ds(i_row, 1), :],
                                      i_buf.at[slot_idx, pl.ds(r, 1), :],
                                      sems.at[1, slot_idx]).start()
            return carry

        lax.fori_loop(0, tile_b // 8, body8, 0)

    # Prime the pipeline: tile 0's gathers are issued only on the first step.
    @pl.when(t == 0)
    def _():
        issue(0, 0)

    # ONE byte-count wait per table per slot.  The dummy descriptor is sized
    # from the scratch slot itself (src = dst = buf[slot]), whose byte size is
    # exactly the sum of the tile_b row copies issued into that slot.
    pltpu.make_async_copy(u_buf.at[slot], u_buf.at[slot], sems.at[0, slot]).wait()
    pltpu.make_async_copy(i_buf.at[slot], i_buf.at[slot], sems.at[1, slot]).wait()

    # Prefetch tile t+1's rows into the other slot; overlaps with the compute
    # below (and with the pipelined output writeback).
    @pl.when(t + 1 < num_tiles)
    def _():
        issue(t + 1, 1 - slot)

    # Padded tail rows gather row 0 on purpose: every slot then receives a full
    # buffer's worth of bytes, so the single wait above stays exact.
    ue = u_buf[slot].astype(jnp.float32)
    ie = i_buf[slot].astype(jnp.float32)
    scores = jnp.sum(ue * ie, axis=1)
    o_ref[...] = jax.nn.sigmoid(scores)[None, :]


# --------------------------------------------------------------------------
# Wrapper
# --------------------------------------------------------------------------
def puremf_forward(users, items, user_emb, item_emb, *, tile_b=512,
                   force_hbm_gather=False,
                   fast_path_vmem_budget=24 * _MiB):
    """PureMF.forward: sigmoid(sum(user_emb[users] * item_emb[items], axis=1))."""
    assert tile_b % 128 == 0, "tile_b must be a multiple of 128 (lane-dense out)"
    B = users.shape[0]
    n_users, D = user_emb.shape
    n_items, D_i = item_emb.shape
    assert D_i == D, "item/user embedding dims must match for the dot product"

    num_tiles = pl.cdiv(B, tile_b)
    b_pad = num_tiles * tile_b

    # Pad indices with 0 (always a valid row); padded scores are discarded.
    u_idx = jnp.zeros((b_pad,), jnp.int32).at[:B].set(users.astype(jnp.int32))
    i_idx = jnp.zeros((b_pad,), jnp.int32).at[:B].set(items.astype(jnp.int32))

    itemsize = jnp.dtype(user_emb.dtype).itemsize
    table_bytes = (n_users + n_items) * D * itemsize
    chunk = min(_ONE_HOT_CHUNK, max(n_users, n_items))
    # Tables (double-buffered input blocks) + live one-hot chunks + gathered
    # f32 rows + small idx/out blocks.  Conservative for v7x (64 MiB physical,
    # 32 MiB default-scoped, duplicated per TensorCore under "parallel").
    fast_need = (2 * table_bytes
                 + 2 * tile_b * chunk * 4
                 + 4 * tile_b * D * 4
                 + 8 * tile_b * 4)
    n_chunks = pl.cdiv(n_users, _ONE_HOT_CHUNK) + pl.cdiv(n_items, _ONE_HOT_CHUNK)
    use_fast = (not force_hbm_gather
                and fast_need <= fast_path_vmem_budget
                and n_chunks <= 64)
    # TODO(synk): a dynamic-gather (jnp.take) table-resident path would extend
    # fast-path coverage to large-but-VMEM-fitting vocabularies.

    if use_fast:
        vmem_limit = int(min(48 * _MiB, max(32 * _MiB, 2 * fast_need)))
        out = pl.pallas_call(
            _puremf_vmem_kernel,
            out_shape=jax.ShapeDtypeStruct((1, b_pad), jnp.float32),
            grid_spec=pltpu.PrefetchScalarGridSpec(
                num_scalar_prefetch=0,
                grid=(num_tiles,),
                in_specs=[
                    pl.BlockSpec((tile_b, 1), lambda t: (t, 0)),      # user idx
                    pl.BlockSpec((tile_b, 1), lambda t: (t, 0)),      # item idx
                    pl.BlockSpec((n_users, D), lambda t: (0, 0)),     # user table
                    pl.BlockSpec((n_items, D), lambda t: (0, 0)),     # item table
                ],
                out_specs=pl.BlockSpec((1, tile_b), lambda t: (0, t)),
            ),
            compiler_params=pltpu.CompilerParams(
                dimension_semantics=("parallel",),     # independent tiles
                vmem_limit_bytes=vmem_limit),
        )(u_idx.reshape(b_pad, 1), i_idx.reshape(b_pad, 1), user_emb, item_emb)
    else:
        scratch_bytes = 2 * 2 * tile_b * D * itemsize
        vmem_limit = int(min(48 * _MiB, max(32 * _MiB, 4 * scratch_bytes)))
        out = pl.pallas_call(
            _puremf_hbm_kernel,
            out_shape=jax.ShapeDtypeStruct((1, b_pad), jnp.float32),
            grid_spec=pltpu.PrefetchScalarGridSpec(
                num_scalar_prefetch=2,          # user idx, item idx -> SMEM
                grid=(num_tiles,),
                in_specs=[
                    pl.BlockSpec(memory_space=pl.ANY),   # user table (HBM)
                    pl.BlockSpec(memory_space=pl.ANY),   # item table (HBM)
                ],
                out_specs=pl.BlockSpec((1, tile_b), lambda t, u, i: (0, t)),
                scratch_shapes=[
                    pltpu.VMEM((2, tile_b, D), user_emb.dtype),
                    pltpu.VMEM((2, tile_b, D), item_emb.dtype),
                    pltpu.SemaphoreType.DMA((2, 2)),
                ],
            ),
            compiler_params=pltpu.CompilerParams(
                # Double-buffer state carries across grid steps -> in-order.
                dimension_semantics=("arbitrary",),
                vmem_limit_bytes=vmem_limit),
        )(u_idx, i_idx, user_emb, item_emb)

    return out[0, :B]


if __name__ == "__main__":
    key = jax.random.PRNGKey(0)
    k_u, k_i, k_uw, k_iw, k_u2, k_i2 = jax.random.split(key, 6)

    num_users = 64
    num_items = 96
    latent_dim = 32     # D

    # Normal(0, 1) init, matching "N(0,1) initialization for PureMF".
    user_emb = jax.random.normal(k_uw, (num_users, latent_dim), dtype=jnp.float32)
    item_emb = jax.random.normal(k_iw, (num_items, latent_dim), dtype=jnp.float32)

    def reference(u, i):
        return jax.nn.sigmoid(jnp.sum(user_emb[u] * item_emb[i], axis=1))

    # 1) Fast (table-resident) path, single tile.
    batch = 8
    users = jax.random.randint(k_u, (batch,), 0, num_users, dtype=jnp.int32)
    items = jax.random.randint(k_i, (batch,), 0, num_items, dtype=jnp.int32)
    out = jax.block_until_ready(puremf_forward(users, items, user_emb, item_emb))
    assert out.shape == (batch,)
    assert jnp.allclose(out, reference(users, items), atol=1e-5, rtol=1e-5), out

    # 2) Fast path, multiple tiles + padded tail.
    batch2 = 300
    users2 = jax.random.randint(k_u2, (batch2,), 0, num_users, dtype=jnp.int32)
    items2 = jax.random.randint(k_i2, (batch2,), 0, num_items, dtype=jnp.int32)
    out2 = jax.block_until_ready(
        puremf_forward(users2, items2, user_emb, item_emb, tile_b=128))
    assert out2.shape == (batch2,)
    assert jnp.allclose(out2, reference(users2, items2), atol=1e-5, rtol=1e-5), out2

    # 3) HBM-gather fallback (forced), multiple tiles: exercises double
    #    buffering, the single byte-count wait, and the padded tail.
    out3 = jax.block_until_ready(
        puremf_forward(users2, items2, user_emb, item_emb, tile_b=128,
                       force_hbm_gather=True))
    assert out3.shape == (batch2,)
    assert jnp.allclose(out3, reference(users2, items2), atol=1e-5, rtol=1e-5), out3

    # 4) HBM-gather fallback, single tile (no-prefetch guard path).
    out4 = jax.block_until_ready(
        puremf_forward(users, items, user_emb, item_emb, force_hbm_gather=True))
    assert out4.shape == (batch,)
    assert jnp.allclose(out4, reference(users, items), atol=1e-5, rtol=1e-5), out4

    print("KERNEL_OK")
</pallas_src>

<mosaic_0001>
module attributes {stable_mosaic.version = 11 : i64} {
  func.func @_puremf_vmem_kernel(%arg0: i32, %arg1: memref<512x1xi32, #tpu.memory_space<vmem>>, %arg2: memref<512x1xi32, #tpu.memory_space<vmem>>, %arg3: memref<64x32xf32, #tpu.memory_space<vmem>>, %arg4: memref<96x32xf32, #tpu.memory_space<vmem>>, %arg5: memref<1x512xf32, #tpu.memory_space<vmem>>) attributes {dimension_semantics = [#tpu.dimension_semantics<parallel>], iteration_bounds = array<i64: 1>, scalar_prefetch = 0 : i64, scratch_operands = 0 : i64, tpu.core_type = #tpu.core_type<tc>, window_params = [{transform_indices = @transform_0, window_bounds = array<i64: 512, 1>}, {transform_indices = @transform_1, window_bounds = array<i64: 512, 1>}, {pipeline_mode = #tpu.pipeline_mode<synchronous>, transform_indices = @transform_2, window_bounds = array<i64: 64, 32>}, {pipeline_mode = #tpu.pipeline_mode<synchronous>, transform_indices = @transform_3, window_bounds = array<i64: 96, 32>}, {transform_indices = @transform_4, window_bounds = array<i64: 1, 512>}]} {
    %c0 = arith.constant 0 : index
    %c0_0 = arith.constant 0 : index
    %0 = vector.load %arg1[%c0, %c0_0] : memref<512x1xi32, #tpu.memory_space<vmem>>, vector<512x1xi32>
    %c0_1 = arith.constant 0 : index
    %c0_2 = arith.constant 0 : index
    %1 = vector.load %arg2[%c0_1, %c0_2] : memref<512x1xi32, #tpu.memory_space<vmem>>, vector<512x1xi32>
    %cst = arith.constant 0.000000e+00 : f32
    %2 = vector.broadcast %cst : f32 to vector<512x32xf32>
    %3 = tpu.iota {dimensions = array<i32: 1>} : vector<512x64xi32>
    %c0_i32 = arith.constant 0 : i32
    %4 = vector.broadcast %c0_i32 : i32 to vector<512x64xi32>
    %5 = arith.addi %4, %3 : vector<512x64xi32>
    %6 = vector.broadcast %0 : vector<512x1xi32> to vector<512x64xi32>
    %7 = arith.cmpi eq, %6, %5 : vector<512x64xi32>
    %8 = arith.extui %7 : vector<512x64xi1> to vector<512x64xi32>
    %9 = arith.sitofp %8 : vector<512x64xi32> to vector<512x64xf32>
    %c0_3 = arith.constant 0 : index
    %c0_4 = arith.constant 0 : index
    %10 = vector.load %arg3[%c0_3, %c0_4] : memref<64x32xf32, #tpu.memory_space<vmem>>, vector<64x32xf32>
    %cst_5 = arith.constant dense<0.000000e+00> : vector<512x32xf32>
    %11 = tpu.matmul %9, %10, %cst_5 {dimension_numbers = #tpu.dot_dimension_numbers<[1], [0], [0], [1], [0, 0, 1, 1], [], []>} : vector<512x64xf32>, vector<64x32xf32>, vector<512x32xf32> -> vector<512x32xf32>
    %12 = arith.addf %2, %11 : vector<512x32xf32>
    %cst_6 = arith.constant 0.000000e+00 : f32
    %13 = vector.broadcast %cst_6 : f32 to vector<512x32xf32>
    %14 = tpu.iota {dimensions = array<i32: 1>} : vector<512x96xi32>
    %c0_i32_7 = arith.constant 0 : i32
    %15 = vector.broadcast %c0_i32_7 : i32 to vector<512x96xi32>
    %16 = arith.addi %15, %14 : vector<512x96xi32>
    %17 = vector.broadcast %1 : vector<512x1xi32> to vector<512x96xi32>
    %18 = arith.cmpi eq, %17, %16 : vector<512x96xi32>
    %19 = arith.extui %18 : vector<512x96xi1> to vector<512x96xi32>
    %20 = arith.sitofp %19 : vector<512x96xi32> to vector<512x96xf32>
    %c0_8 = arith.constant 0 : index
    %c0_9 = arith.constant 0 : index
    %21 = vector.load %arg4[%c0_8, %c0_9] : memref<96x32xf32, #tpu.memory_space<vmem>>, vector<96x32xf32>
    %cst_10 = arith.constant dense<0.000000e+00> : vector<512x32xf32>
    %22 = tpu.matmul %20, %21, %cst_10 {dimension_numbers = #tpu.dot_dimension_numbers<[1], [0], [0], [1], [0, 0, 1, 1], [], []>} : vector<512x96xf32>, vector<96x32xf32>, vector<512x32xf32> -> vector<512x32xf32>
    %23 = arith.addf %13, %22 : vector<512x32xf32>
    %24 = arith.mulf %12, %23 : vector<512x32xf32>
    %cst_11 = arith.constant dense<0.000000e+00> : vector<512xf32>
    %25 = vector.multi_reduction <add>, %24, %cst_11 [1] : vector<512x32xf32> to vector<512xf32>
    %26 = arith.negf %25 : vector<512xf32>
    %27 = math.exp %26 : vector<512xf32>
    %cst_12 = arith.constant 1.000000e+00 : f32
    %28 = vector.broadcast %cst_12 : f32 to vector<512xf32>
    %29 = arith.addf %28, %27 : vector<512xf32>
    %30 = arith.divf %28, %29 : vector<512xf32>
    %31 = vector.shape_cast %30 : vector<512xf32> to vector<1x512xf32>
    %c0_13 = arith.constant 0 : index
    %c0_14 = arith.constant 0 : index
    %32 = vector.load %arg5[%c0_13, %c0_14] : memref<1x512xf32, #tpu.memory_space<vmem>>, vector<1x512xf32>
    tpu.vector_store %arg5[%c0_13, %c0_14], %31 {strides = array<i32>} : memref<1x512xf32, #tpu.memory_space<vmem>>, vector<1x512xf32>,
    return
  }
  func.func @transform_0(%arg0: i32) -> (i32, i32) {
    %c0_i32 = arith.constant 0 : i32
    %c0_i32_0 = arith.constant 0 : i32
    return %arg0, %c0_i32 : i32, i32
  }
  func.func @transform_1(%arg0: i32) -> (i32, i32) {
    %c0_i32 = arith.constant 0 : i32
    %c0_i32_0 = arith.constant 0 : i32
    return %arg0, %c0_i32 : i32, i32
  }
  func.func @transform_2(%arg0: i32) -> (i32, i32) {
    %c0_i32 = arith.constant 0 : i32
    %c0_i32_0 = arith.constant 0 : i32
    %c0_i32_1 = arith.constant 0 : i32
    return %c0_i32, %c0_i32_0 : i32, i32
  }
  func.func @transform_3(%arg0: i32) -> (i32, i32) {
    %c0_i32 = arith.constant 0 : i32
    %c0_i32_0 = arith.constant 0 : i32
    %c0_i32_1 = arith.constant 0 : i32
    return %c0_i32, %c0_i32_0 : i32, i32
  }
  func.func @transform_4(%arg0: i32) -> (i32, i32) {
    %c0_i32 = arith.constant 0 : i32
    %c0_i32_0 = arith.constant 0 : i32
    return %c0_i32, %arg0 : i32, i32
  }
}

</mosaic_0001>

<bundles_post_ra>
// kernel: tpu_custom_call.1
= control target key start
LH: loop header
LB: loop body
LE: loop exit
PB: predicated region body
PF: predicated region fallthrough
CT: control target
= control target key end

     0   :  { %v9571_v2 = vmov 0   ;;  %s12568_s0 = inlined_call_operand.vmem [shape: s32[512,1], index: 0, kind: input, shape index: {}]   ;;  %s12569_s1 = inlined_call_operand.vmem [shape: s32[512,1], index: 1, kind: input, shape index: {}]   ;;  %s12570_s2 = inlined_call_operand.vmem [shape: f32[64,32], index: 2, kind: input, shape index: {}]   ;;  %s12571_s3 = inlined_call_operand.vmem [shape: f32[96,32], index: 3, kind: input, shape index: {}]   ;;  %s12572_s4 = inlined_call_operand.hbm [shape: f32[1,512], index: 4, kind: output, shape index: {}]  }
   0x1   :  { %v20_v0 = vld [vmem:[%s12568_s0 + $0x10] sm:$0xff]  ;;  %v18_v1 = vld [vmem:[%s12568_s0] sm:$0xff]  ;;  %9292 = vset.pattern.permute.xlu1 %v9571_v2  ;;  %9291 = vset.pattern.permute.xlu0 %v9571_v2  ;;  %v21_v3 = vld [vmem:[%s12568_s0 + $0x18] sm:$0xff] }
   0x2   :  { %155 = vperm.xlu1 %9292, %v20_v0   ;;  %149 = vperm.xlu0 %9291, %v18_v1   ;;  %v19_v4 = vld [vmem:[%s12568_s0 + $0x8] sm:$0xff]  ;;  %v22_v6 = vld [vmem:[%s12568_s0 + $0x20] sm:$0xff]  ;;  %v25_v7 = vld [vmem:[%s12568_s0 + $0x38] sm:$0xff] }
   0x3   :  { %v23_v5 = vld [vmem:[%s12568_s0 + $0x28] sm:$0xff]  ;;  %v24_v8 = vld [vmem:[%s12568_s0 + $0x30] sm:$0xff]  ;;  %v26_v10 = vld [vmem:[%s12568_s0 + $0x40] sm:$0xff] }
   0x4   :  { %v27_v9 = vld [vmem:[%s12568_s0 + $0x48] sm:$0xff]  ;;  %v29_v11 = vld [vmem:[%s12568_s0 + $0x58] sm:$0xff]  ;;  %v28_v12 = vld [vmem:[%s12568_s0 + $0x50] sm:$0xff] }
   0x5   :  { %v539_v13 = vld [vmem:[%s12570_s2 + $0x38] sm:$0xff]  ;;  %v538_v14 = vld [vmem:[%s12570_s2 + $0x30] sm:$0xff]  ;;  %v537_v15 = vld [vmem:[%s12570_s2 + $0x28] sm:$0xff] }
   0x6   :  { %158 = vperm.xlu1 %9292, %v21_v3   ;;  %152 = vperm.xlu0 %9291, %v19_v4   ;;  %v31_v16 = vld [vmem:[%s12568_s0 + $0x68] sm:$0xff]  ;;  %v30_v17 = vld [vmem:[%s12568_s0 + $0x60] sm:$0xff]  ;;  %v33_v19 = vld [vmem:[%s12568_s0 + $0x78] sm:$0xff] }
   0x7   :  { %9031 = vmatprep.subr.mxu0 %v539_v13  ;;  %v536_v18 = vld [vmem:[%s12570_s2 + $0x20] sm:$0xff]  ;;  %v32_v20 = vld [vmem:[%s12568_s0 + $0x70] sm:$0xff]  ;;  %v535_v21 = vld [vmem:[%s12570_s2 + $0x18] sm:$0xff] }
   0x8   :  { %9032 = vmatpush3.msra.mxu0 %v539_v13 }
   0x9   :  { %9033 = vmatprep.subr.mxu0 %v538_v14 }
   0xa   :  { %164 = vperm.xlu1 %9292, %v23_v5   ;;  %161 = vperm.xlu0 %9291, %v22_v6  }
   0xb   :  { %9034 = vmatpush3.msra.mxu0 %v538_v14 }
   0xc   :  { %9035 = vmatprep.subr.mxu0 %v537_v15 }
   0xd   :  { %9036 = vmatpush3.msra.mxu0 %v537_v15 }
   0xe   :  { %170 = vperm.xlu1 %9292, %v25_v7   ;;  %167 = vperm.xlu0 %9291, %v24_v8  }
   0xf   :  { %9037 = vmatprep.subr.mxu0 %v536_v18 }
  0x12   :  { %176 = vperm.xlu1 %9292, %v27_v9   ;;  %173 = vperm.xlu0 %9291, %v26_v10  }
  0x16   :  { %182 = vperm.xlu1 %9292, %v29_v11   ;;  %179 = vperm.xlu0 %9291, %v28_v12  }
  0x1a   :  { %188 = vperm.xlu1 %9292, %v31_v16   ;;  %185 = vperm.xlu0 %9291, %v30_v17  }
  0x1b   :  { %9 = vsyncpa [#allocation3], 0  ;;  %9038 = vmatpush3.msra.mxu0 %v536_v18  ;;  %v534_v22 = vld [vmem:[%s12570_s2 + $0x10] sm:$0xff]  ;;  %v35_v23 = vld [vmem:[%s12568_s0 + $0x88] sm:$0xff]  ;;  %v12573_v10 = vlaneseq  ;;  %vm540_vm0 = vcmask 523264  }
  0x1c   :  { %v34_v24 = vld [vmem:[%s12568_s0 + $0x80] sm:$0xff]  ;;  %9039 = vmatprep.subr.mxu0 %v535_v21  ;;  %v533_v25 = vld [vmem:[%s12570_s2 + $0x8] sm:$0xff]  ;;  %v37_v26 = vld [vmem:[%s12568_s0 + $0x98] sm:$0xff] }
  0x1d   :  { %9040 = vmatpush3.msra.mxu0 %v535_v21  ;;  %v36_v27 = vld [vmem:[%s12568_s0 + $0x90] sm:$0xff]  ;;  %v532_v28 = vld [vmem:[%s12570_s2] sm:$0xff]  ;;  %v39_v29 = vld [vmem:[%s12568_s0 + $0xa8] sm:$0xff]  ;;  %v9858_v15 = vand.u32 127, %v12573_v10 }
  0x1e   :  { %194 = vperm.xlu1 %9292, %v33_v19   ;;  %191 = vperm.xlu0 %9291, %v32_v20   ;;  %v38_v30 = vld [vmem:[%s12568_s0 + $0xa0] sm:$0xff]  ;;  %v41_v31 = vld [vmem:[%s12568_s0 + $0xb8] sm:$0xff]  ;;  %v40_v32 = vld [vmem:[%s12568_s0 + $0xb0] sm:$0xff] }
  0x1f   :  { %9041 = vmatprep.subr.mxu0 %v534_v22  ;;  %v43_v33 = vld [vmem:[%s12568_s0 + $0xc8] sm:$0xff]  ;;  %v42_v34 = vld [vmem:[%s12568_s0 + $0xc0] sm:$0xff]  ;;  %v45_v35 = vld [vmem:[%s12568_s0 + $0xd8] sm:$0xff] }
  0x20   :  { %9042 = vmatpush3.msra.mxu0 %v534_v22  ;;  %v44_v36 = vld [vmem:[%s12568_s0 + $0xd0] sm:$0xff]  ;;  %v47_v37 = vld [vmem:[%s12568_s0 + $0xe8] sm:$0xff]  ;;  %v46_v38 = vld [vmem:[%s12568_s0 + $0xe0] sm:$0xff]  ;;  %v9572_v22 = vmov 0.0  }
  0x21   :  { %9043 = vmatprep.subr.mxu0 %v533_v25  ;;  %v49_v39 = vld [vmem:[%s12568_s0 + $0xf8] sm:$0xff]  ;;  %v48_v40 = vld [vmem:[%s12568_s0 + $0xf0] sm:$0xff]  ;;  %v51_v41 = vld [vmem:[%s12568_s0 + $0x108] sm:$0xff] }
  0x22   :  { %200 = vperm.xlu1 %9292, %v35_v23   ;;  %197 = vperm.xlu0 %9291, %v34_v24   ;;  %v50_v42 = vld [vmem:[%s12568_s0 + $0x100] sm:$0xff]  ;;  %v53_v43 = vld [vmem:[%s12568_s0 + $0x118] sm:$0xff]  ;;  %v52_v44 = vld [vmem:[%s12568_s0 + $0x110] sm:$0xff] }
  0x23   :  { %9044 = vmatpush3.msra.mxu0 %v533_v25  ;;  %v55_v45 = vld [vmem:[%s12568_s0 + $0x128] sm:$0xff]  ;;  %v54_v46 = vld [vmem:[%s12568_s0 + $0x120] sm:$0xff]  ;;  %v57_v47 = vld [vmem:[%s12568_s0 + $0x138] sm:$0xff] }
  0x24   :  { %9045 = vmatprep.subr.mxu0 %v532_v28  ;;  %v56_v48 = vld [vmem:[%s12568_s0 + $0x130] sm:$0xff]  ;;  %v59_v49 = vld [vmem:[%s12568_s0 + $0x148] sm:$0xff]  ;;  %v58_v50 = vld [vmem:[%s12568_s0 + $0x140] sm:$0xff] }
  0x25   :  { %9046 = vmatpush3.msra.mxu0 %v532_v28  ;;  %v61_v51 = vld [vmem:[%s12568_s0 + $0x158] sm:$0xff]  ;;  %v60_v52 = vld [vmem:[%s12568_s0 + $0x150] sm:$0xff]  ;;  %v63_v53 = vld [vmem:[%s12568_s0 + $0x168] sm:$0xff] }
  0x26   :  { %206 = vperm.xlu1 %9292, %v37_v26   ;;  %203 = vperm.xlu0 %9291, %v36_v27   ;;  %v62_v54 = vld [vmem:[%s12568_s0 + $0x160] sm:$0xff]  ;;  %v65_v55 = vld [vmem:[%s12568_s0 + $0x178] sm:$0xff]  ;;  %v64_v56 = vld [vmem:[%s12568_s0 + $0x170] sm:$0xff] }
  0x27   :  { %v67_v57 = vld [vmem:[%s12568_s0 + $0x188] sm:$0xff]  ;;  %v66_v58 = vld [vmem:[%s12568_s0 + $0x180] sm:$0xff]  ;;  %v69_v59 = vld [vmem:[%s12568_s0 + $0x198] sm:$0xff] }
  0x28   :  { %v68_v60 = vld [vmem:[%s12568_s0 + $0x190] sm:$0xff]  ;;  %v71_v61 = vld [vmem:[%s12568_s0 + $0x1a8] sm:$0xff]  ;;  %v70_v62 = vld [vmem:[%s12568_s0 + $0x1a0] sm:$0xff] }
  0x29   :  { %v73_v63 = vld [vmem:[%s12568_s0 + $0x1b8] sm:$0xff]  ;;  %v72_v0 = vld [vmem:[%s12568_s0 + $0x1b0] sm:$0xff]  ;;  %v75_v3 = vld [vmem:[%s12568_s0 + $0x1c8] sm:$0xff] }
  0x2a   :  { %212 = vperm.xlu1 %9292, %v39_v29   ;;  %209 = vperm.xlu0 %9291, %v38_v30   ;;  %v9795_v1 = vld [vmem:[%s12571_s3 + $0x58] sm:$0xff]  ;;  %v9803_v2 = vld [vmem:[%s12571_s3 + $0x50] sm:$0xff]  ;;  %v74_v4 = vld [vmem:[%s12568_s0 + $0x1c0] sm:$0xff] }
  0x2b   :  { %9143 = vmatprep.subr.mxu0 %v9795_v1  ;;  %9263 = vmatprep.subr.mxu1 %v9795_v1  ;;  %v9815_v5 = vld [vmem:[%s12571_s3 + $0x48] sm:$0xff]  ;;  %v9822_v6 = vld [vmem:[%s12571_s3 + $0x40] sm:$0xff]  ;;  %v77_v7 = vld [vmem:[%s12568_s0 + $0x1d8] sm:$0xff] }
  0x2c   :  { %9275 = vmatpush3.msra.mxu1 %v9795_v1  ;;  %v76_v8 = vld [vmem:[%s12568_s0 + $0x1d0] sm:$0xff]  ;;  %v9835_v9 = vld [vmem:[%s12571_s3 + $0x38] sm:$0xff]  ;;  %v79_v12 = vld [vmem:[%s12568_s0 + $0x1e8] sm:$0xff] }
  0x2d   :  { %9264 = vmatprep.subr.mxu1 %v9803_v2  ;;  %v9841_v11 = vld [vmem:[%s12571_s3 + $0x30] sm:$0xff]  ;;  %v78_v13 = vld [vmem:[%s12568_s0 + $0x1e0] sm:$0xff]  ;;  %v9855_v14 = vld [vmem:[%s12571_s3 + $0x28] sm:$0xff] }
  0x2e   :  { %218 = vperm.xlu1 %9292, %v41_v31   ;;  %215 = vperm.xlu0 %9291, %v40_v32   ;;  %v81_v16 = vld [vmem:[%s12568_s0 + $0x1f8] sm:$0xff]  ;;  %v80_v17 = vld [vmem:[%s12568_s0 + $0x1f0] sm:$0xff]  ;;  %v9871_v18 = vld [vmem:[%s12571_s3 + $0x20] sm:$0xff] }
  0x2f   :  { %9276 = vmatpush3.msra.mxu1 %v9803_v2  ;;  %v9878_v21 = vld [vmem:[%s12571_s3 + $0x18] sm:$0xff]  ;;  %v83_v24 = vld [vmem:[%s12569_s1 + $0x8] sm:$0xff]  ;;  %v82_v25 = vld [vmem:[%s12569_s1] sm:$0xff] }
  0x30   :  { %9265 = vmatprep.subr.mxu1 %v9815_v5  ;;  %v9895_v28 = vld [vmem:[%s12571_s3 + $0x10] sm:$0xff]  ;;  %v85_v30 = vld [vmem:[%s12569_s1 + $0x18] sm:$0xff] }
  0x31   :  { %9277 = vmatpush3.msra.mxu1 %v9815_v5  ;;  %v84_v31 = vld [vmem:[%s12569_s1 + $0x10] sm:$0xff] }
  0x32   :  { %224 = vperm.xlu1 %9292, %v43_v33   ;;  %221 = vperm.xlu0 %9291, %v42_v34  }
  0x33   :  { %9266 = vmatprep.subr.mxu1 %v9822_v6 }
  0x34   :  { %9278 = vmatpush3.msra.mxu1 %v9822_v6 }
  0x35   :  { %9267 = vmatprep.subr.mxu1 %v9835_v9 }
  0x36   :  { %230 = vperm.xlu1 %9292, %v45_v35   ;;  %227 = vperm.xlu0 %9291, %v44_v36   ;;  %v9915_v35 = vld [vmem:[%s12571_s3 + $0x8] sm:$0xff] }
  0x37   :  { %9279 = vmatpush3.msra.mxu1 %v9835_v9 }
  0x38   :  { %9268 = vmatprep.subr.mxu1 %v9841_v11 }
  0x39   :  { %9280 = vmatpush3.msra.mxu1 %v9841_v11 }
  0x3a   :  { %236 = vperm.xlu1 %9292, %v47_v37   ;;  %233 = vperm.xlu0 %9291, %v46_v38   ;;  %v87_v38 = vld [vmem:[%s12569_s1 + $0x28] sm:$0xff] }
  0x3b   :  { %9269 = vmatprep.subr.mxu1 %v9855_v14 }
  0x3c   :  { %9281 = vmatpush3.msra.mxu1 %v9855_v14 }
  0x3d   :  { %9270 = vmatprep.subr.mxu1 %v9871_v18 }
  0x3e   :  { %242 = vperm.xlu1 %9292, %v49_v39   ;;  %239 = vperm.xlu0 %9291, %v48_v40   ;;  %v86_v39 = vld [vmem:[%s12569_s1 + $0x20] sm:$0xff] }
  0x3f   :  { %9282 = vmatpush3.msra.mxu1 %v9871_v18 }
  0x40   :  { %9271 = vmatprep.subr.mxu1 %v9878_v21 }
  0x41   :  { %9283 = vmatpush3.msra.mxu1 %v9878_v21 }
  0x42   :  { %248 = vperm.xlu1 %9292, %v51_v41   ;;  %245 = vperm.xlu0 %9291, %v50_v42   ;;  %v9936_v42 = vld [vmem:[%s12571_s3] sm:$0xff] }
  0x43   :  { %9272 = vmatprep.subr.mxu1 %v9895_v28 }
  0x44   :  { %9284 = vmatpush3.msra.mxu1 %v9895_v28 }
  0x45   :  { %9273 = vmatprep.subr.mxu1 %v9915_v35 }
  0x46   :  { %254 = vperm.xlu1 %9292, %v53_v43   ;;  %251 = vperm.xlu0 %9291, %v52_v44  }
  0x47   :  { %9285 = vmatpush3.msra.mxu1 %v9915_v35 }
  0x48   :  { %9274 = vmatprep.subr.mxu1 %v9936_v42 }
  0x49   :  { %9286 = vmatpush3.msra.mxu1 %v9936_v42 }
  0x4a   :  { %260 = vperm.xlu1 %9292, %v55_v45   ;;  %257 = vperm.xlu0 %9291, %v54_v46   ;;  %v89_v45 = vld [vmem:[%s12569_s1 + $0x38] sm:$0xff]  ;;  %v88_v46 = vld [vmem:[%s12569_s1 + $0x30] sm:$0xff] }
  0x4e   :  { %266 = vperm.xlu1 %9292, %v57_v47   ;;  %263 = vperm.xlu0 %9291, %v56_v48  }
  0x52   :  { %272 = vperm.xlu1 %9292, %v59_v49   ;;  %269 = vperm.xlu0 %9291, %v58_v50  }
  0x56   :  { %278 = vperm.xlu1 %9292, %v61_v51   ;;  %275 = vperm.xlu0 %9291, %v60_v52   ;;  %v91_v51 = vld [vmem:[%s12569_s1 + $0x48] sm:$0xff]  ;;  %v90_v52 = vld [vmem:[%s12569_s1 + $0x40] sm:$0xff] }
  0x5a   :  { %284 = vperm.xlu1 %9292, %v63_v53   ;;  %281 = vperm.xlu0 %9291, %v62_v54  }
  0x5e   :  { %290 = vperm.xlu1 %9292, %v65_v55   ;;  %287 = vperm.xlu0 %9291, %v64_v56  }
  0x62   :  { %296 = vperm.xlu1 %9292, %v67_v57   ;;  %293 = vperm.xlu0 %9291, %v66_v58   ;;  %v93_v57 = vld [vmem:[%s12569_s1 + $0x58] sm:$0xff]  ;;  %v92_v58 = vld [vmem:[%s12569_s1 + $0x50] sm:$0xff] }
  0x66   :  { %302 = vperm.xlu1 %9292, %v69_v59   ;;  %299 = vperm.xlu0 %9291, %v68_v60  }
  0x6a   :  { %308 = vperm.xlu1 %9292, %v71_v61   ;;  %305 = vperm.xlu0 %9291, %v70_v62  }
  0x6e   :  { %314 = vperm.xlu1 %9292, %v73_v63   ;;  %311 = vperm.xlu0 %9291, %v72_v0   ;;  %v95_v63 = vld [vmem:[%s12569_s1 + $0x68] sm:$0xff]  ;;  %v94_v0 = vld [vmem:[%s12569_s1 + $0x60] sm:$0xff] }
  0x72   :  { %320 = vperm.xlu1 %9292, %v75_v3   ;;  %317 = vperm.xlu0 %9291, %v74_v4  }
  0x76   :  { %326 = vperm.xlu1 %9292, %v77_v7   ;;  %323 = vperm.xlu0 %9291, %v76_v8  }
  0x7a   :  { %332 = vperm.xlu1 %9292, %v79_v12   ;;  %329 = vperm.xlu0 %9291, %v78_v13   ;;  %v99_v12 = vld [vmem:[%s12569_s1 + $0x88] sm:$0xff]  ;;  %v98_v13 = vld [vmem:[%s12569_s1 + $0x80] sm:$0xff] }
  0x7d   :  { %v156_v19 = vpop.permute.xlu1 %155  ;;  %v150_v20 = vpop.permute.xlu0 %149 }
  0x7e   :  { %338 = vperm.xlu1 %9292, %v81_v16   ;;  %335 = vperm.xlu0 %9291, %v80_v17   ;;  %vm340_vm1 = vcmp.eq.s32.totalorder %v150_v20, %v9858_v15  ;;  %vm342_vm2 = vcmp.eq.s32.totalorder %v156_v19, %v9858_v15  ;;  %v101_v20 = vld [vmem:[%s12569_s1 + $0x98] sm:$0xff] }
  0x7f   :  { %v8563_v23 = vsel %vm340_vm1, 1.0, %v9572_v22  ;;  %v8565_v32 = vsel %vm342_vm2, 1.0, %v9572_v22 }
  0x80   :  { %9047 = vmatprep.mubr.msk.f32.mxu0 %vm540_vm0, %v8563_v23  ;;  %v100_v23 = vld [vmem:[%s12569_s1 + $0x90] sm:$0xff] }
  0x81   :  { %v159_v26 = vpop.permute.xlu1 %158  ;;  %v153_v27 = vpop.permute.xlu0 %152 }
  0x82   :  { %vm341_vm3 = vcmp.eq.s32.totalorder %v153_v27, %v9858_v15  ;;  %1122 = vperm.xlu1 %9292, %v83_v24   ;;  %1119 = vperm.xlu0 %9291, %v82_v25   ;;  %vm343_vm4 = vcmp.eq.s32.totalorder %v159_v26, %v9858_v15  ;;  %v103_v27 = vld [vmem:[%s12569_s1 + $0xa8] sm:$0xff] }
  0x83   :  { %v8564_v29 = vsel %vm341_vm3, 1.0, %v9572_v22  ;;  %v8566_v36 = vsel %vm343_vm4, 1.0, %v9572_v22 }
  0x84   :  { %9048 = vmatmul.mubr.msk.f32.vlgmr.msra.gmra.mxu0 %vm540_vm0, %v8564_v29  ;;  %v102_v29 = vld [vmem:[%s12569_s1 + $0xa0] sm:$0xff] }
  0x85   :  { %v165_v33 = vpop.permute.xlu1 %164  ;;  %9050 = vmatprep.mubr.msk.f32.mxu0 %vm540_vm0, %v8565_v32  ;;  %v162_v34 = vpop.permute.xlu0 %161  ;;  %9144 = vmatpush3.msra.mxu0 %v9795_v1 }
  0x86   :  { %vm344_vm5 = vcmp.eq.s32.totalorder %v162_v34, %v9858_v15  ;;  %1128 = vperm.xlu1 %9292, %v85_v30   ;;  %1125 = vperm.xlu0 %9291, %v84_v31   ;;  %vm345_vm6 = vcmp.eq.s32.totalorder %v165_v33, %v9858_v15  ;;  %v105_v33 = vld [vmem:[%s12569_s1 + $0xb8] sm:$0xff]  ;;  %v104_v34 = vld [vmem:[%s12569_s1 + $0xb0] sm:$0xff] }
  0x87   :  { %v8567_v37 = vsel %vm344_vm5, 1.0, %v9572_v22  ;;  %9145 = vmatprep.subr.mxu0 %v9803_v2  ;;  %v8568_v43 = vsel %vm345_vm6, 1.0, %v9572_v22 }
  0x88   :  { %9051 = vmatmul.mubr.msk.f32.gmra.mxu0 %vm540_vm0, %v8566_v36 }
  0x89   :  { %v171_v40 = vpop.permute.xlu1 %170  ;;  %9053 = vmatprep.mubr.msk.f32.mxu0 %vm540_vm0, %v8567_v37  ;;  %v168_v41 = vpop.permute.xlu0 %167  ;;  %9146 = vmatpush3.msra.mxu0 %v9803_v2 }
  0x8a   :  { %vm346_vm7 = vcmp.eq.s32.totalorder %v168_v41, %v9858_v15  ;;  %1134 = vperm.xlu1 %9292, %v87_v38   ;;  %1131 = vperm.xlu0 %9291, %v86_v39   ;;  %vm347_vm8 = vcmp.eq.s32.totalorder %v171_v40, %v9858_v15  ;;  %v107_v39 = vld [vmem:[%s12569_s1 + $0xc8] sm:$0xff]  ;;  %v106_v40 = vld [vmem:[%s12569_s1 + $0xc0] sm:$0xff] }
  0x8b   :  { %v8569_v44 = vsel %vm346_vm7, 1.0, %v9572_v22  ;;  %9147 = vmatprep.subr.mxu0 %v9815_v5  ;;  %v8570_v49 = vsel %vm347_vm8, 1.0, %v9572_v22 }
  0x8c   :  { %9054 = vmatmul.mubr.msk.f32.gmra.mxu0 %vm540_vm0, %v8568_v43 }
  0x8d   :  { %v177_v47 = vpop.permute.xlu1 %176  ;;  %9056 = vmatprep.mubr.msk.f32.mxu0 %vm540_vm0, %v8569_v44  ;;  %v174_v48 = vpop.permute.xlu0 %173  ;;  %9148 = vmatpush3.msra.mxu0 %v9815_v5  ;;  %v97_v5 = vld [vmem:[%s12569_s1 + $0x78] sm:$0xff] }
  0x8e   :  { %vm348_vm9 = vcmp.eq.s32.totalorder %v174_v48, %v9858_v15  ;;  %1140 = vperm.xlu1 %9292, %v89_v45   ;;  %1137 = vperm.xlu0 %9291, %v88_v46   ;;  %vm349_vm10 = vcmp.eq.s32.totalorder %v177_v47, %v9858_v15  ;;  %v109_v45 = vld [vmem:[%s12569_s1 + $0xd8] sm:$0xff]  ;;  %v108_v46 = vld [vmem:[%s12569_s1 + $0xd0] sm:$0xff] }
  0x8f   :  { %v8571_v50 = vsel %vm348_vm9, 1.0, %v9572_v22  ;;  %9149 = vmatprep.subr.mxu0 %v9822_v6  ;;  %v8572_v55 = vsel %vm349_vm10, 1.0, %v9572_v22 }
  0x90   :  { %9057 = vmatmul.mubr.msk.f32.gmra.mxu0 %vm540_vm0, %v8570_v49 }
  0x91   :  { %v183_v53 = vpop.permute.xlu1 %182  ;;  %9059 = vmatprep.mubr.msk.f32.mxu0 %vm540_vm0, %v8571_v50  ;;  %v180_v54 = vpop.permute.xlu0 %179  ;;  %9150 = vmatpush3.msra.mxu0 %v9822_v6  ;;  %v96_v6 = vld [vmem:[%s12569_s1 + $0x70] sm:$0xff]  ;;  %v111_v50 = vld [vmem:[%s12569_s1 + $0xe8] sm:$0xff] }
  0x92   :  { %vm350_vm11 = vcmp.eq.s32.totalorder %v180_v54, %v9858_v15  ;;  %1146 = vperm.xlu1 %9292, %v91_v51   ;;  %1143 = vperm.xlu0 %9291, %v90_v52   ;;  %vm351_vm12 = vcmp.eq.s32.totalorder %v183_v53, %v9858_v15  ;;  %v110_v51 = vld [vmem:[%s12569_s1 + $0xe0] sm:$0xff] }
  0x93   :  { %v8573_v56 = vsel %vm350_vm11, 1.0, %v9572_v22  ;;  %9151 = vmatprep.subr.mxu0 %v9835_v9  ;;  %v8574_v61 = vsel %vm351_vm12, 1.0, %v9572_v22 }
  0x94   :  { %9060 = vmatmul.mubr.msk.f32.gmra.mxu0 %vm540_vm0, %v8572_v55 }
  0x95   :  { %v189_v59 = vpop.permute.xlu1 %188  ;;  %9062 = vmatprep.mubr.msk.f32.mxu0 %vm540_vm0, %v8573_v56  ;;  %v186_v60 = vpop.permute.xlu0 %185  ;;  %9152 = vmatpush3.msra.mxu0 %v9835_v9  ;;  %v113_v56 = vld [vmem:[%s12569_s1 + $0xf8] sm:$0xff] }
  0x96   :  { %vm352_vm13 = vcmp.eq.s32.totalorder %v186_v60, %v9858_v15  ;;  %1152 = vperm.xlu1 %9292, %v93_v57   ;;  %1149 = vperm.xlu0 %9291, %v92_v58   ;;  %vm353_vm14 = vcmp.eq.s32.totalorder %v189_v59, %v9858_v15  ;;  %v112_v57 = vld [vmem:[%s12569_s1 + $0xf0] sm:$0xff] }
  0x97   :  { %v8575_v62 = vsel %vm352_vm13, 1.0, %v9572_v22  ;;  %9153 = vmatprep.subr.mxu0 %v9841_v11  ;;  %v8576_v3 = vsel %vm353_vm14, 1.0, %v9572_v22 }
  0x98   :  { %9063 = vmatmul.mubr.msk.f32.gmra.mxu0 %vm540_vm0, %v8574_v61 }
  0x99   :  { %v195_v1 = vpop.permute.xlu1 %194  ;;  %9065 = vmatprep.mubr.msk.f32.mxu0 %vm540_vm0, %v8575_v62  ;;  %v192_v2 = vpop.permute.xlu0 %191  ;;  %9154 = vmatpush3.msra.mxu0 %v9841_v11  ;;  %v115_v62 = vld [vmem:[%s12569_s1 + $0x108] sm:$0xff] }
  0x9a   :  { %vm354_vm15 = vcmp.eq.s32.totalorder %v192_v2, %v9858_v15  ;;  %1158 = vperm.xlu1 %9292, %v95_v63   ;;  %1155 = vperm.xlu0 %9291, %v94_v0   ;;  %vm355_vm1 = vcmp.eq.s32.totalorder %v195_v1, %v9858_v15  ;;  %v114_v63 = vld [vmem:[%s12569_s1 + $0x100] sm:$0xff] }
  0x9b   :  { %v8577_v4 = vsel %vm354_vm15, 1.0, %v9572_v22  ;;  %9155 = vmatprep.subr.mxu0 %v9855_v14  ;;  %v8578_v9 = vsel %vm355_vm1, 1.0, %v9572_v22 }
  0x9c   :  { %9066 = vmatmul.mubr.msk.f32.gmra.mxu0 %vm540_vm0, %v8576_v3 }
  0x9d   :  { %v201_v7 = vpop.permute.xlu1 %200  ;;  %9068 = vmatprep.mubr.msk.f32.mxu0 %vm540_vm0, %v8577_v4  ;;  %v198_v8 = vpop.permute.xlu0 %197  ;;  %9156 = vmatpush3.msra.mxu0 %v9855_v14  ;;  %v117_v4 = vld [vmem:[%s12569_s1 + $0x118] sm:$0xff] }
  0x9e   :  { %vm356_vm2 = vcmp.eq.s32.totalorder %v198_v8, %v9858_v15  ;;  %1164 = vperm.xlu1 %9292, %v97_v5   ;;  %1161 = vperm.xlu0 %9291, %v96_v6   ;;  %vm357_vm3 = vcmp.eq.s32.totalorder %v201_v7, %v9858_v15  ;;  %v116_v5 = vld [vmem:[%s12569_s1 + $0x110] sm:$0xff] }
  0x9f   :  { %v8579_v11 = vsel %vm356_vm2, 1.0, %v9572_v22  ;;  %9157 = vmatprep.subr.mxu0 %v9871_v18  ;;  %v8580_v17 = vsel %vm357_vm3, 1.0, %v9572_v22 }
  0xa0   :  { %9069 = vmatmul.mubr.msk.f32.gmra.mxu0 %vm540_vm0, %v8578_v9 }
  0xa1   :  { %v207_v14 = vpop.permute.xlu1 %206  ;;  %9071 = vmatprep.mubr.msk.f32.mxu0 %vm540_vm0, %v8579_v11  ;;  %v204_v16 = vpop.permute.xlu0 %203  ;;  %9158 = vmatpush3.msra.mxu0 %v9871_v18  ;;  %v119_v11 = vld [vmem:[%s12569_s1 + $0x128] sm:$0xff] }
  0xa2   :  { %vm358_vm4 = vcmp.eq.s32.totalorder %v204_v16, %v9858_v15  ;;  %1170 = vperm.xlu1 %9292, %v99_v12   ;;  %1167 = vperm.xlu0 %9291, %v98_v13   ;;  %vm359_vm5 = vcmp.eq.s32.totalorder %v207_v14, %v9858_v15  ;;  %v118_v12 = vld [vmem:[%s12569_s1 + $0x120] sm:$0xff] }
  0xa3   :  { %v8581_v19 = vsel %vm358_vm4, 1.0, %v9572_v22  ;;  %9159 = vmatprep.subr.mxu0 %v9878_v21  ;;  %v8582_v25 = vsel %vm359_vm5, 1.0, %v9572_v22 }
  0xa4   :  { %9072 = vmatmul.mubr.msk.f32.gmra.mxu0 %vm540_vm0, %v8580_v17 }
  0xa5   :  { %v213_v18 = vpop.permute.xlu1 %212  ;;  %9074 = vmatprep.mubr.msk.f32.mxu0 %vm540_vm0, %v8581_v19  ;;  %v210_v24 = vpop.permute.xlu0 %209  ;;  %9160 = vmatpush3.msra.mxu0 %v9878_v21  ;;  %v121_v19 = vld [vmem:[%s12569_s1 + $0x138] sm:$0xff] }
  0xa6   :  { %vm360_vm6 = vcmp.eq.s32.totalorder %v210_v24, %v9858_v15  ;;  %1176 = vperm.xlu1 %9292, %v101_v20   ;;  %1173 = vperm.xlu0 %9291, %v100_v23   ;;  %vm361_vm7 = vcmp.eq.s32.totalorder %v213_v18, %v9858_v15  ;;  %v120_v20 = vld [vmem:[%s12569_s1 + $0x130] sm:$0xff] }
  0xa7   :  { %v8583_v26 = vsel %vm360_vm6, 1.0, %v9572_v22  ;;  %9161 = vmatprep.subr.mxu0 %v9895_v28  ;;  %v8584_v31 = vsel %vm361_vm7, 1.0, %v9572_v22 }
  0xa8   :  { %9075 = vmatmul.mubr.msk.f32.gmra.mxu0 %vm540_vm0, %v8582_v25 }
  0xa9   :  { %v219_v21 = vpop.permute.xlu1 %218  ;;  %9077 = vmatprep.mubr.msk.f32.mxu0 %vm540_vm0, %v8583_v26  ;;  %v216_v30 = vpop.permute.xlu0 %215  ;;  %9162 = vmatpush3.msra.mxu0 %v9895_v28  ;;  %v123_v26 = vld [vmem:[%s12569_s1 + $0x148] sm:$0xff] }
  0xaa   :  { %vm362_vm8 = vcmp.eq.s32.totalorder %v216_v30, %v9858_v15  ;;  %1182 = vperm.xlu1 %9292, %v103_v27   ;;  %1179 = vperm.xlu0 %9291, %v102_v29   ;;  %vm363_vm9 = vcmp.eq.s32.totalorder %v219_v21, %v9858_v15  ;;  %v122_v27 = vld [vmem:[%s12569_s1 + $0x140] sm:$0xff] }
  0xab   :  { %v8585_v32 = vsel %vm362_vm8, 1.0, %v9572_v22  ;;  %9163 = vmatprep.subr.mxu0 %v9915_v35  ;;  %v8586_v37 = vsel %vm363_vm9, 1.0, %v9572_v22 }
  0xac   :  { %9078 = vmatmul.mubr.msk.f32.gmra.mxu0 %vm540_vm0, %v8584_v31 }
  0xad   :  { %v225_v28 = vpop.permute.xlu1 %224  ;;  %9080 = vmatprep.mubr.msk.f32.mxu0 %vm540_vm0, %v8585_v32  ;;  %v222_v36 = vpop.permute.xlu0 %221  ;;  %9164 = vmatpush3.msra.mxu0 %v9915_v35  ;;  %v125_v32 = vld [vmem:[%s12569_s1 + $0x158] sm:$0xff] }
  0xae   :  { %vm364_vm10 = vcmp.eq.s32.totalorder %v222_v36, %v9858_v15  ;;  %1188 = vperm.xlu1 %9292, %v105_v33   ;;  %1185 = vperm.xlu0 %9291, %v104_v34   ;;  %vm365_vm11 = vcmp.eq.s32.totalorder %v225_v28, %v9858_v15  ;;  %v124_v33 = vld [vmem:[%s12569_s1 + $0x150] sm:$0xff] }
  0xaf   :  { %v8587_v38 = vsel %vm364_vm10, 1.0, %v9572_v22  ;;  %9165 = vmatprep.subr.mxu0 %v9936_v42  ;;  %v8588_v43 = vsel %vm365_vm11, 1.0, %v9572_v22 }
  0xb0   :  { %9081 = vmatmul.mubr.msk.f32.gmra.mxu0 %vm540_vm0, %v8586_v37 }
  0xb1   :  { %v231_v35 = vpop.permute.xlu1 %230  ;;  %9083 = vmatprep.mubr.msk.f32.mxu0 %vm540_vm0, %v8587_v38  ;;  %v228_v41 = vpop.permute.xlu0 %227  ;;  %9166 = vmatpush3.msra.mxu0 %v9936_v42  ;;  %v127_v38 = vld [vmem:[%s12569_s1 + $0x168] sm:$0xff] }
  0xb2   :  { %vm366_vm12 = vcmp.eq.s32.totalorder %v228_v41, %v9858_v15  ;;  %1194 = vperm.xlu1 %9292, %v107_v39   ;;  %1191 = vperm.xlu0 %9291, %v106_v40   ;;  %vm367_vm13 = vcmp.eq.s32.totalorder %v231_v35, %v9858_v15  ;;  %v126_v39 = vld [vmem:[%s12569_s1 + $0x160] sm:$0xff] }
  0xb3   :  { %v8589_v44 = vsel %vm366_vm12, 1.0, %v9572_v22  ;;  %v8590_v48 = vsel %vm367_vm13, 1.0, %v9572_v22 }
  0xb4   :  { %9084 = vmatmul.mubr.msk.f32.gmra.mxu0 %vm540_vm0, %v8588_v43 }
  0xb5   :  { %v237_v42 = vpop.permute.xlu1 %236  ;;  %9086 = vmatprep.mubr.msk.f32.mxu0 %vm540_vm0, %v8589_v44  ;;  %v234_v47 = vpop.permute.xlu0 %233  ;;  %v129_v44 = vld [vmem:[%s12569_s1 + $0x178] sm:$0xff] }
  0xb6   :  { %vm368_vm14 = vcmp.eq.s32.totalorder %v234_v47, %v9858_v15  ;;  %1200 = vperm.xlu1 %9292, %v109_v45   ;;  %1197 = vperm.xlu0 %9291, %v108_v46   ;;  %vm369_vm15 = vcmp.eq.s32.totalorder %v237_v42, %v9858_v15  ;;  %v128_v45 = vld [vmem:[%s12569_s1 + $0x170] sm:$0xff] }
  0xb7   :  { %v8591_v49 = vsel %vm368_vm14, 1.0, %v9572_v22  ;;  %v8592_v54 = vsel %vm369_vm15, 1.0, %v9572_v22 }
  0xb8   :  { %9087 = vmatmul.mubr.msk.f32.gmra.mxu0 %vm540_vm0, %v8590_v48 }
  0xb9   :  { %v243_v52 = vpop.permute.xlu1 %242  ;;  %9089 = vmatprep.mubr.msk.f32.mxu0 %vm540_vm0, %v8591_v49  ;;  %v240_v53 = vpop.permute.xlu0 %239  ;;  %v131_v49 = vld [vmem:[%s12569_s1 + $0x188] sm:$0xff] }
  0xba   :  { %vm370_vm1 = vcmp.eq.s32.totalorder %v240_v53, %v9858_v15  ;;  %1206 = vperm.xlu1 %9292, %v111_v50   ;;  %1203 = vperm.xlu0 %9291, %v110_v51   ;;  %vm371_vm2 = vcmp.eq.s32.totalorder %v243_v52, %v9858_v15  ;;  %v130_v50 = vld [vmem:[%s12569_s1 + $0x180] sm:$0xff] }
  0xbb   :  { %v8593_v55 = vsel %vm370_vm1, 1.0, %v9572_v22  ;;  %v8594_v60 = vsel %vm371_vm2, 1.0, %v9572_v22 }
  0xbc   :  { %9090 = vmatmul.mubr.msk.f32.gmra.mxu0 %vm540_vm0, %v8592_v54 }
  0xbd   :  { %v249_v58 = vpop.permute.xlu1 %248  ;;  %9092 = vmatprep.mubr.msk.f32.mxu0 %vm540_vm0, %v8593_v55  ;;  %v246_v59 = vpop.permute.xlu0 %245  ;;  %v133_v55 = vld [vmem:[%s12569_s1 + $0x198] sm:$0xff] }
  0xbe   :  { %vm372_vm3 = vcmp.eq.s32.totalorder %v246_v59, %v9858_v15  ;;  %1212 = vperm.xlu1 %9292, %v113_v56   ;;  %1209 = vperm.xlu0 %9291, %v112_v57   ;;  %vm373_vm4 = vcmp.eq.s32.totalorder %v249_v58, %v9858_v15  ;;  %v132_v56 = vld [vmem:[%s12569_s1 + $0x190] sm:$0xff] }
  0xbf   :  { %v8595_v61 = vsel %vm372_vm3, 1.0, %v9572_v22  ;;  %v8596_v2 = vsel %vm373_vm4, 1.0, %v9572_v22 }
  0xc0   :  { %9093 = vmatmul.mubr.msk.f32.gmra.mxu0 %vm540_vm0, %v8594_v60 }
  0xc1   :  { %v255_v0 = vpop.permute.xlu1 %254  ;;  %9095 = vmatprep.mubr.msk.f32.mxu0 %vm540_vm0, %v8595_v61  ;;  %v252_v1 = vpop.permute.xlu0 %251  ;;  %v135_v61 = vld [vmem:[%s12569_s1 + $0x1a8] sm:$0xff] }
  0xc2   :  { %vm374_vm5 = vcmp.eq.s32.totalorder %v252_v1, %v9858_v15  ;;  %1218 = vperm.xlu1 %9292, %v115_v62   ;;  %1215 = vperm.xlu0 %9291, %v114_v63   ;;  %vm375_vm6 = vcmp.eq.s32.totalorder %v255_v0, %v9858_v15  ;;  %v134_v62 = vld [vmem:[%s12569_s1 + $0x1a0] sm:$0xff] }
  0xc3   :  { %v8597_v3 = vsel %vm374_vm5, 1.0, %v9572_v22  ;;  %v8598_v8 = vsel %vm375_vm6, 1.0, %v9572_v22 }
  0xc4   :  { %9096 = vmatmul.mubr.msk.f32.gmra.mxu0 %vm540_vm0, %v8596_v2 }
  0xc5   :  { %v261_v6 = vpop.permute.xlu1 %260  ;;  %9098 = vmatprep.mubr.msk.f32.mxu0 %vm540_vm0, %v8597_v3  ;;  %v258_v7 = vpop.permute.xlu0 %257  ;;  %v137_v3 = vld [vmem:[%s12569_s1 + $0x1b8] sm:$0xff] }
  0xc6   :  { %vm376_vm7 = vcmp.eq.s32.totalorder %v258_v7, %v9858_v15  ;;  %1224 = vperm.xlu1 %9292, %v117_v4   ;;  %1221 = vperm.xlu0 %9291, %v116_v5   ;;  %vm377_vm8 = vcmp.eq.s32.totalorder %v261_v6, %v9858_v15  ;;  %v136_v4 = vld [vmem:[%s12569_s1 + $0x1b0] sm:$0xff] }
  0xc7   :  { %v8599_v9 = vsel %vm376_vm7, 1.0, %v9572_v22  ;;  %v8600_v16 = vsel %vm377_vm8, 1.0, %v9572_v22 }
  0xc8   :  { %9099 = vmatmul.mubr.msk.f32.gmra.mxu0 %vm540_vm0, %v8598_v8 }
  0xc9   :  { %v267_v13 = vpop.permute.xlu1 %266  ;;  %9101 = vmatprep.mubr.msk.f32.mxu0 %vm540_vm0, %v8599_v9  ;;  %v264_v14 = vpop.permute.xlu0 %263  ;;  %v139_v9 = vld [vmem:[%s12569_s1 + $0x1c8] sm:$0xff] }
  0xca   :  { %vm378_vm9 = vcmp.eq.s32.totalorder %v264_v14, %v9858_v15  ;;  %1230 = vperm.xlu1 %9292, %v119_v11   ;;  %1227 = vperm.xlu0 %9291, %v118_v12   ;;  %vm379_vm10 = vcmp.eq.s32.totalorder %v267_v13, %v9858_v15  ;;  %v138_v11 = vld [vmem:[%s12569_s1 + $0x1c0] sm:$0xff] }
  0xcb   :  { %v8601_v17 = vsel %vm378_vm9, 1.0, %v9572_v22  ;;  %v8602_v24 = vsel %vm379_vm10, 1.0, %v9572_v22 }
  0xcc   :  { %9102 = vmatmul.mubr.msk.f32.gmra.mxu0 %vm540_vm0, %v8600_v16 }
  0xcd   :  { %v273_v23 = vpop.permute.xlu1 %272  ;;  %9104 = vmatprep.mubr.msk.f32.mxu0 %vm540_vm0, %v8601_v17  ;;  %v270_v18 = vpop.permute.xlu0 %269  ;;  %v141_v17 = vld [vmem:[%s12569_s1 + $0x1d8] sm:$0xff] }
  0xce   :  { %vm380_vm11 = vcmp.eq.s32.totalorder %v270_v18, %v9858_v15  ;;  %1236 = vperm.xlu1 %9292, %v121_v19   ;;  %1233 = vperm.xlu0 %9291, %v120_v20   ;;  %vm381_vm12 = vcmp.eq.s32.totalorder %v273_v23, %v9858_v15  ;;  %v140_v19 = vld [vmem:[%s12569_s1 + $0x1d0] sm:$0xff] }
  0xcf   :  { %v8603_v25 = vsel %vm380_vm11, 1.0, %v9572_v22  ;;  %v8604_v30 = vsel %vm381_vm12, 1.0, %v9572_v22 }
  0xd0   :  { %9105 = vmatmul.mubr.msk.f32.gmra.mxu0 %vm540_vm0, %v8602_v24 }
  0xd1   :  { %v279_v29 = vpop.permute.xlu1 %278  ;;  %9107 = vmatprep.mubr.msk.f32.mxu0 %vm540_vm0, %v8603_v25  ;;  %v276_v21 = vpop.permute.xlu0 %275  ;;  %v143_v25 = vld [vmem:[%s12569_s1 + $0x1e8] sm:$0xff] }
  0xd2   :  { %vm382_vm13 = vcmp.eq.s32.totalorder %v276_v21, %v9858_v15  ;;  %1242 = vperm.xlu1 %9292, %v123_v26   ;;  %1239 = vperm.xlu0 %9291, %v122_v27   ;;  %vm383_vm14 = vcmp.eq.s32.totalorder %v279_v29, %v9858_v15  ;;  %v142_v26 = vld [vmem:[%s12569_s1 + $0x1e0] sm:$0xff] }
  0xd3   :  { %v8605_v31 = vsel %vm382_vm13, 1.0, %v9572_v22  ;;  %v8606_v36 = vsel %vm383_vm14, 1.0, %v9572_v22 }
  0xd4   :  { %9108 = vmatmul.mubr.msk.f32.gmra.mxu0 %vm540_vm0, %v8604_v30 }
  0xd5   :  { %v285_v34 = vpop.permute.xlu1 %284  ;;  %9110 = vmatprep.mubr.msk.f32.mxu0 %vm540_vm0, %v8605_v31  ;;  %v282_v28 = vpop.permute.xlu0 %281  ;;  %v145_v31 = vld [vmem:[%s12569_s1 + $0x1f8] sm:$0xff] }
  0xd6   :  { %vm384_vm15 = vcmp.eq.s32.totalorder %v282_v28, %v9858_v15  ;;  %1248 = vperm.xlu1 %9292, %v125_v32   ;;  %1245 = vperm.xlu0 %9291, %v124_v33   ;;  %vm385_vm1 = vcmp.eq.s32.totalorder %v285_v34, %v9858_v15  ;;  %v144_v32 = vld [vmem:[%s12569_s1 + $0x1f0] sm:$0xff]  ;;  %s9574_s1 = smov [#allocation2]  }
  0xd7   :  { %v8607_v37 = vsel %vm384_vm15, 1.0, %v9572_v22  ;;  %v8608_v41 = vsel %vm385_vm1, 1.0, %v9572_v22  ;;  %s8555_s7 = sshll.u32 %s9574_s1, 4  ;;  %s8556_s7 = int_to_ptr.vmem [resolvable:$true] %s8555_s7 }
  0xd8   :  { %9111 = vmatmul.mubr.msk.f32.gmra.mxu0 %vm540_vm0, %v8606_v36  ;;  %s9549_s8 = scalar_lea.vmem %s8556_s7, 64  ;;  %p9554_p1 = scmp.lt.s32.totalorder %s8556_s7, %s8556_s7 }
  0xd9   :  { %v291_v40 = vpop.permute.xlu1 %290  ;;  %9113 = vmatprep.mubr.msk.f32.mxu0 %vm540_vm0, %v8607_v37  ;;  %v288_v35 = vpop.permute.xlu0 %287  ;;  %p9550_p0 = scmp.ne.s32.totalorder %s8556_s7, %s9549_s8  ;;  %p9555_p2 = scmp.lt.s32.totalorder %s9549_s8, %s9549_s8 }
  0xda   :  { %vm386_vm2 = vcmp.eq.s32.totalorder %v288_v35, %v9858_v15  ;;  %1254 = vperm.xlu1 %9292, %v127_v38   ;;  %1251 = vperm.xlu0 %9291, %v126_v39   ;;  %vm387_vm3 = vcmp.eq.s32.totalorder %v291_v40, %v9858_v15 }
  0xdb   :  { %v8609_v43 = vsel %vm386_vm2, 1.0, %v9572_v22  ;;  %v8610_v47 = vsel %vm387_vm3, 1.0, %v9572_v22  ;;  %p9556_p3 = por %p9555_p2, %p9554_p1 }
  0xdc   :  { %9114 = vmatmul.mubr.msk.f32.gmra.mxu0 %vm540_vm0, %v8608_v41 }
  0xdd   :  { %v297_v46 = vpop.permute.xlu1 %296  ;;  %9116 = vmatprep.mubr.msk.f32.mxu0 %vm540_vm0, %v8609_v43  ;;  %v294_v42 = vpop.permute.xlu0 %293  ;;  %p9557_p4 = pnand %p9556_p3, %p9550_p0 }
  0xde   :  { %vm388_vm4 = vcmp.eq.s32.totalorder %v294_v42, %v9858_v15  ;;  %1260 = vperm.xlu1 %9292, %v129_v44   ;;  %1257 = vperm.xlu0 %9291, %v128_v45   ;;  %vm389_vm5 = vcmp.eq.s32.totalorder %v297_v46, %v9858_v15 }
  0xdf   :  { %v8611_v48 = vsel %vm388_vm4, 1.0, %v9572_v22  ;;  %v8612_v53 = vsel %vm389_vm5, 1.0, %v9572_v22 }
  0xe0   :  { %9117 = vmatmul.mubr.msk.f32.gmra.mxu0 %vm540_vm0, %v8610_v47 }
  0xe1   :  { %v303_v51 = vpop.permute.xlu1 %302  ;;  %9119 = vmatprep.mubr.msk.f32.mxu0 %vm540_vm0, %v8611_v48  ;;  %v300_v52 = vpop.permute.xlu0 %299 }
  0xe2   :  { %vm390_vm6 = vcmp.eq.s32.totalorder %v300_v52, %v9858_v15  ;;  %1266 = vperm.xlu1 %9292, %v131_v49   ;;  %1263 = vperm.xlu0 %9291, %v130_v50   ;;  %vm391_vm7 = vcmp.eq.s32.totalorder %v303_v51, %v9858_v15 }
  0xe3   :  { %v8613_v54 = vsel %vm390_vm6, 1.0, %v9572_v22  ;;  %v8614_v59 = vsel %vm391_vm7, 1.0, %v9572_v22  ;;  %vm1514_vm6 = vcmask 785408  }
  0xe4   :  { %9120 = vmatmul.mubr.msk.f32.gmra.mxu0 %vm540_vm0, %v8612_v53 }
  0xe5   :  { %v309_v57 = vpop.permute.xlu1 %308  ;;  %9122 = vmatprep.mubr.msk.f32.mxu0 %vm540_vm0, %v8613_v54  ;;  %v306_v58 = vpop.permute.xlu0 %305 }
  0xe6   :  { %vm392_vm8 = vcmp.eq.s32.totalorder %v306_v58, %v9858_v15  ;;  %1272 = vperm.xlu1 %9292, %v133_v55   ;;  %1269 = vperm.xlu0 %9291, %v132_v56   ;;  %vm393_vm9 = vcmp.eq.s32.totalorder %v309_v57, %v9858_v15 }
  0xe7   :  { %v8615_v60 = vsel %vm392_vm8, 1.0, %v9572_v22  ;;  %v8616_v1 = vsel %vm393_vm9, 1.0, %v9572_v22 }
  0xe8   :  { %9123 = vmatmul.mubr.msk.f32.gmra.mxu0 %vm540_vm0, %v8614_v59 }
  0xe9   :  { %v315_v63 = vpop.permute.xlu1 %314  ;;  %9125 = vmatprep.mubr.msk.f32.mxu0 %vm540_vm0, %v8615_v60  ;;  %v312_v0 = vpop.permute.xlu0 %311 }
  0xea   :  { %vm394_vm10 = vcmp.eq.s32.totalorder %v312_v0, %v9858_v15  ;;  %1278 = vperm.xlu1 %9292, %v135_v61   ;;  %1275 = vperm.xlu0 %9291, %v134_v62   ;;  %vm395_vm11 = vcmp.eq.s32.totalorder %v315_v63, %v9858_v15 }
  0xeb   :  { %v8617_v2 = vsel %vm394_vm10, 1.0, %v9572_v22  ;;  %v8618_v7 = vsel %vm395_vm11, 1.0, %v9572_v22 }
  0xec   :  { %9126 = vmatmul.mubr.msk.f32.gmra.mxu0 %vm540_vm0, %v8616_v1 }
  0xed   :  { %v321_v5 = vpop.permute.xlu1 %320  ;;  %9128 = vmatprep.mubr.msk.f32.mxu0 %vm540_vm0, %v8617_v2  ;;  %v318_v6 = vpop.permute.xlu0 %317 }
  0xee   :  { %vm396_vm12 = vcmp.eq.s32.totalorder %v318_v6, %v9858_v15  ;;  %1284 = vperm.xlu1 %9292, %v137_v3   ;;  %1281 = vperm.xlu0 %9291, %v136_v4   ;;  %vm397_vm13 = vcmp.eq.s32.totalorder %v321_v5, %v9858_v15 }
  0xef   :  { %v8619_v8 = vsel %vm396_vm12, 1.0, %v9572_v22  ;;  %v8620_v14 = vsel %vm397_vm13, 1.0, %v9572_v22 }
  0xf0   :  { %9129 = vmatmul.mubr.msk.f32.gmra.mxu0 %vm540_vm0, %v8618_v7 }
  0xf1   :  { %v327_v12 = vpop.permute.xlu1 %326  ;;  %9131 = vmatprep.mubr.msk.f32.mxu0 %vm540_vm0, %v8619_v8  ;;  %v324_v13 = vpop.permute.xlu0 %323 }
  0xf2   :  { %vm398_vm14 = vcmp.eq.s32.totalorder %v324_v13, %v9858_v15  ;;  %1290 = vperm.xlu1 %9292, %v139_v9   ;;  %1287 = vperm.xlu0 %9291, %v138_v11   ;;  %vm399_vm15 = vcmp.eq.s32.totalorder %v327_v12, %v9858_v15 }
  0xf3   :  { %v8621_v16 = vsel %vm398_vm14, 1.0, %v9572_v22  ;;  %v8622_v18 = vsel %vm399_vm15, 1.0, %v9572_v22 }
  0xf4   :  { %9132 = vmatmul.mubr.msk.f32.gmra.mxu0 %vm540_vm0, %v8620_v14 }
  0xf5   :  { %v333_v20 = vpop.permute.xlu1 %332  ;;  %9134 = vmatprep.mubr.msk.f32.mxu0 %vm540_vm0, %v8621_v16  ;;  %v330_v23 = vpop.permute.xlu0 %329 }
  0xf6   :  { %vm400_vm1 = vcmp.eq.s32.totalorder %v330_v23, %v9858_v15  ;;  %1296 = vperm.xlu1 %9292, %v141_v17   ;;  %1293 = vperm.xlu0 %9291, %v140_v19   ;;  %vm401_vm2 = vcmp.eq.s32.totalorder %v333_v20, %v9858_v15 }
  0xf7   :  { %v8623_v24 = vsel %vm400_vm1, 1.0, %v9572_v22  ;;  %v8624_v21 = vsel %vm401_vm2, 1.0, %v9572_v22 }
  0xf8   :  { %9135 = vmatmul.mubr.msk.f32.gmra.mxu0 %vm540_vm0, %v8622_v18 }
  0xf9   :  { %v339_v27 = vpop.permute.xlu1 %338  ;;  %9137 = vmatprep.mubr.msk.f32.mxu0 %vm540_vm0, %v8623_v24  ;;  %v336_v29 = vpop.permute.xlu0 %335 }
  0xfa   :  { %vm402_vm3 = vcmp.eq.s32.totalorder %v336_v29, %v9858_v15  ;;  %1302 = vperm.xlu1 %9292, %v143_v25   ;;  %1299 = vperm.xlu0 %9291, %v142_v26   ;;  %vm403_vm4 = vcmp.eq.s32.totalorder %v339_v27, %v9858_v15 }
  0xfb   :  { %v8625_v30 = vsel %vm402_vm3, 1.0, %v9572_v22  ;;  %v8626_v28 = vsel %vm403_vm4, 1.0, %v9572_v22 }
  0xfc   :  { %9138 = vmatmul.mubr.msk.f32.gmra.mxu0 %vm540_vm0, %v8624_v21 }
  0xfd   :  { %v1123_v33 = vpop.permute.xlu1 %1122  ;;  %9140 = vmatprep.mubr.msk.f32.mxu0 %vm540_vm0, %v8625_v30  ;;  %v1120_v34 = vpop.permute.xlu0 %1119 }
  0xfe   :  { %vm1310_vm5 = vcmp.eq.s32.totalorder %v1120_v34, %v9858_v15  ;;  %1308 = vperm.xlu1 %9292, %v145_v31   ;;  %1305 = vperm.xlu0 %9291, %v144_v32   ;;  %vm1311_vm7 = vcmp.eq.s32.totalorder %v1123_v33, %v9858_v15 }
  0xff   :  { %v8691_v36 = vsel %vm1310_vm5, 1.0, %v9572_v22  ;;  %v8692_v39 = vsel %vm1311_vm7, 1.0, %v9572_v22 }
 0x100   :  { %9141 = vmatmul.mubr.msk.f32.gmra.mxu0 %vm540_vm0, %v8626_v28 }
 0x101   :  { %v1129_v37 = vpop.permute.xlu1 %1128  ;;  %9167 = vmatprep.mubr.msk.f32.mxu0 %vm1514_vm6, %v8691_v36  ;;  %v1126_v38 = vpop.permute.xlu0 %1125 }
 0x102   :  { %vm1313_vm8 = vcmp.eq.s32.totalorder %v1129_v37, %v9858_v15  ;;  %vm1312_vm9 = vcmp.eq.s32.totalorder %v1126_v38, %v9858_v15 }
 0x103   :  { %v8694_v40 = vsel %vm1313_vm8, 1.0, %v9572_v22  ;;  %v8693_v35 = vsel %vm1312_vm9, 1.0, %v9572_v22 }
 0x104   :  { %9168 = vmatmul.mubr.msk.f32.vlgmr.msra.gmra.mxu0 %vm1514_vm6, %v8692_v39  ;;  %9170 = vmatprep.mubr.msk.f32.mxu1 %vm1514_vm6, %v8693_v35 }
 0x105   :  { %v1135_v41 = vpop.permute.xlu1 %1134  ;;  %9171 = vmatmul.mubr.msk.f32.vlgmr.msra.gmra.mxu1 %vm1514_vm6, %v8694_v40  ;;  %v1132_v43 = vpop.permute.xlu0 %1131 }
 0x106   :  { %vm1315_vm0 = vcmp.eq.s32.totalorder %v1135_v41, %v9858_v15  ;;  %vm1314_vm10 = vcmp.eq.s32.totalorder %v1132_v43, %v9858_v15 }
 0x107   :  { %v8696_v44 = vsel %vm1315_vm0, 1.0, %v9572_v22  ;;  %v8695_v45 = vsel %vm1314_vm10, 1.0, %v9572_v22 }
 0x108   :  { %9173 = vmatprep.mubr.msk.f32.mxu1 %vm1514_vm6, %v8695_v45 }
 0x109   :  { %v1141_v46 = vpop.permute.xlu1 %1140  ;;  %9174 = vmatmul.mubr.msk.f32.gmra.mxu1 %vm1514_vm6, %v8696_v44  ;;  %v1138_v42 = vpop.permute.xlu0 %1137 }
 0x10a   :  { %vm1317_vm11 = vcmp.eq.s32.totalorder %v1141_v46, %v9858_v15  ;;  %vm1316_vm12 = vcmp.eq.s32.totalorder %v1138_v42, %v9858_v15 }
 0x10b   :  { %v8698_v47 = vsel %vm1317_vm11, 1.0, %v9572_v22  ;;  %v8697_v48 = vsel %vm1316_vm12, 1.0, %v9572_v22 }
 0x10c   :  { %9176 = vmatprep.mubr.msk.f32.mxu1 %vm1514_vm6, %v8697_v48 }
 0x10d   :  { %v1147_v49 = vpop.permute.xlu1 %1146  ;;  %9177 = vmatmul.mubr.msk.f32.gmra.mxu1 %vm1514_vm6, %v8698_v47  ;;  %v1144_v50 = vpop.permute.xlu0 %1143 }
 0x10e   :  { %vm1319_vm13 = vcmp.eq.s32.totalorder %v1147_v49, %v9858_v15  ;;  %vm1318_vm14 = vcmp.eq.s32.totalorder %v1144_v50, %v9858_v15 }
 0x10f   :  { %v8700_v51 = vsel %vm1319_vm13, 1.0, %v9572_v22  ;;  %v8699_v52 = vsel %vm1318_vm14, 1.0, %v9572_v22 }
 0x110   :  { %9179 = vmatprep.mubr.msk.f32.mxu1 %vm1514_vm6, %v8699_v52 }
 0x111   :  { %v1153_v53 = vpop.permute.xlu1 %1152  ;;  %9180 = vmatmul.mubr.msk.f32.gmra.mxu1 %vm1514_vm6, %v8700_v51  ;;  %v1150_v54 = vpop.permute.xlu0 %1149 }
 0x112   :  { %vm1321_vm15 = vcmp.eq.s32.totalorder %v1153_v53, %v9858_v15  ;;  %vm1320_vm1 = vcmp.eq.s32.totalorder %v1150_v54, %v9858_v15 }
 0x113   :  { %v8702_v55 = vsel %vm1321_vm15, 1.0, %v9572_v22  ;;  %v8701_v56 = vsel %vm1320_vm1, 1.0, %v9572_v22 }
 0x114   :  { %9182 = vmatprep.mubr.msk.f32.mxu1 %vm1514_vm6, %v8701_v56 }
 0x115   :  { %v1159_v57 = vpop.permute.xlu1 %1158  ;;  %9183 = vmatmul.mubr.msk.f32.gmra.mxu1 %vm1514_vm6, %v8702_v55  ;;  %v1156_v58 = vpop.permute.xlu0 %1155 }
 0x116   :  { %vm1323_vm2 = vcmp.eq.s32.totalorder %v1159_v57, %v9858_v15  ;;  %vm1322_vm3 = vcmp.eq.s32.totalorder %v1156_v58, %v9858_v15 }
 0x117   :  { %v8704_v59 = vsel %vm1323_vm2, 1.0, %v9572_v22  ;;  %v8703_v60 = vsel %vm1322_vm3, 1.0, %v9572_v22 }
 0x118   :  { %9185 = vmatprep.mubr.msk.f32.mxu1 %vm1514_vm6, %v8703_v60 }
 0x119   :  { %v1165_v61 = vpop.permute.xlu1 %1164  ;;  %9186 = vmatmul.mubr.msk.f32.gmra.mxu1 %vm1514_vm6, %v8704_v59  ;;  %v1162_v62 = vpop.permute.xlu0 %1161 }
 0x11a   :  { %vm1325_vm4 = vcmp.eq.s32.totalorder %v1165_v61, %v9858_v15  ;;  %vm1324_vm5 = vcmp.eq.s32.totalorder %v1162_v62, %v9858_v15 }
 0x11b   :  { %v8706_v63 = vsel %vm1325_vm4, 1.0, %v9572_v22  ;;  %v8705_v0 = vsel %vm1324_vm5, 1.0, %v9572_v22 }
 0x11c   :  { %9188 = vmatprep.mubr.msk.f32.mxu1 %vm1514_vm6, %v8705_v0 }
 0x11d   :  { %v1171_v1 = vpop.permute.xlu1 %1170  ;;  %9189 = vmatmul.mubr.msk.f32.gmra.mxu1 %vm1514_vm6, %v8706_v63  ;;  %v1168_v2 = vpop.permute.xlu0 %1167 }
 0x11e   :  { %vm1327_vm7 = vcmp.eq.s32.totalorder %v1171_v1, %v9858_v15  ;;  %vm1326_vm8 = vcmp.eq.s32.totalorder %v1168_v2, %v9858_v15 }
 0x11f   :  { %v8708_v3 = vsel %vm1327_vm7, 1.0, %v9572_v22  ;;  %v8707_v4 = vsel %vm1326_vm8, 1.0, %v9572_v22 }
 0x120   :  { %9191 = vmatprep.mubr.msk.f32.mxu1 %vm1514_vm6, %v8707_v4 }
 0x121   :  { %v1177_v5 = vpop.permute.xlu1 %1176  ;;  %9192 = vmatmul.mubr.msk.f32.gmra.mxu1 %vm1514_vm6, %v8708_v3  ;;  %v1174_v6 = vpop.permute.xlu0 %1173 }
 0x122   :  { %vm1329_vm9 = vcmp.eq.s32.totalorder %v1177_v5, %v9858_v15  ;;  %vm1328_vm0 = vcmp.eq.s32.totalorder %v1174_v6, %v9858_v15 }
 0x123   :  { %v8710_v7 = vsel %vm1329_vm9, 1.0, %v9572_v22  ;;  %v8709_v8 = vsel %vm1328_vm0, 1.0, %v9572_v22 }
 0x124   :  { %9194 = vmatprep.mubr.msk.f32.mxu1 %vm1514_vm6, %v8709_v8 }
 0x125   :  { %v1183_v9 = vpop.permute.xlu1 %1182  ;;  %9195 = vmatmul.mubr.msk.f32.gmra.mxu1 %vm1514_vm6, %v8710_v7  ;;  %v1180_v11 = vpop.permute.xlu0 %1179 }
 0x126   :  { %vm1331_vm10 = vcmp.eq.s32.totalorder %v1183_v9, %v9858_v15  ;;  %vm1330_vm11 = vcmp.eq.s32.totalorder %v1180_v11, %v9858_v15 }
 0x127   :  { %v8712_v12 = vsel %vm1331_vm10, 1.0, %v9572_v22  ;;  %v8711_v13 = vsel %vm1330_vm11, 1.0, %v9572_v22 }
 0x128   :  { %9197 = vmatprep.mubr.msk.f32.mxu1 %vm1514_vm6, %v8711_v13 }
 0x129   :  { %v1189_v14 = vpop.permute.xlu1 %1188  ;;  %9198 = vmatmul.mubr.msk.f32.gmra.mxu1 %vm1514_vm6, %v8712_v12  ;;  %v1186_v16 = vpop.permute.xlu0 %1185 }
 0x12a   :  { %vm1333_vm12 = vcmp.eq.s32.totalorder %v1189_v14, %v9858_v15  ;;  %vm1332_vm13 = vcmp.eq.s32.totalorder %v1186_v16, %v9858_v15 }
 0x12b   :  { %v8714_v17 = vsel %vm1333_vm12, 1.0, %v9572_v22  ;;  %v8713_v19 = vsel %vm1332_vm13, 1.0, %v9572_v22 }
 0x12c   :  { %9200 = vmatprep.mubr.msk.f32.mxu1 %vm1514_vm6, %v8713_v19 }
 0x12d   :  { %v1195_v20 = vpop.permute.xlu1 %1194  ;;  %9201 = vmatmul.mubr.msk.f32.gmra.mxu1 %vm1514_vm6, %v8714_v17  ;;  %v1192_v23 = vpop.permute.xlu0 %1191 }
 0x12e   :  { %vm1335_vm14 = vcmp.eq.s32.totalorder %v1195_v20, %v9858_v15  ;;  %vm1334_vm15 = vcmp.eq.s32.totalorder %v1192_v23, %v9858_v15 }
 0x12f   :  { %v8716_v18 = vsel %vm1335_vm14, 1.0, %v9572_v22  ;;  %v8715_v24 = vsel %vm1334_vm15, 1.0, %v9572_v22 }
 0x130   :  { %9203 = vmatprep.mubr.msk.f32.mxu1 %vm1514_vm6, %v8715_v24 }
 0x131   :  { %v1201_v25 = vpop.permute.xlu1 %1200  ;;  %9204 = vmatmul.mubr.msk.f32.gmra.mxu1 %vm1514_vm6, %v8716_v18  ;;  %v1198_v26 = vpop.permute.xlu0 %1197 }
 0x132   :  { %vm1337_vm1 = vcmp.eq.s32.totalorder %v1201_v25, %v9858_v15  ;;  %vm1336_vm2 = vcmp.eq.s32.totalorder %v1198_v26, %v9858_v15 }
 0x133   :  { %v8718_v27 = vsel %vm1337_vm1, 1.0, %v9572_v22  ;;  %v8717_v29 = vsel %vm1336_vm2, 1.0, %v9572_v22 }
 0x134   :  { %9206 = vmatprep.mubr.msk.f32.mxu1 %vm1514_vm6, %v8717_v29 }
 0x135   :  { %v1207_v21 = vpop.permute.xlu1 %1206  ;;  %9207 = vmatmul.mubr.msk.f32.gmra.mxu1 %vm1514_vm6, %v8718_v27  ;;  %v1204_v30 = vpop.permute.xlu0 %1203 }
 0x136   :  { %vm1339_vm3 = vcmp.eq.s32.totalorder %v1207_v21, %v9858_v15  ;;  %vm1338_vm4 = vcmp.eq.s32.totalorder %v1204_v30, %v9858_v15 }
 0x137   :  { %v8720_v31 = vsel %vm1339_vm3, 1.0, %v9572_v22  ;;  %v8719_v32 = vsel %vm1338_vm4, 1.0, %v9572_v22 }
 0x138   :  { %9209 = vmatprep.mubr.msk.f32.mxu1 %vm1514_vm6, %v8719_v32 }
 0x139   :  { %v1213_v33 = vpop.permute.xlu1 %1212  ;;  %9210 = vmatmul.mubr.msk.f32.gmra.mxu1 %vm1514_vm6, %v8720_v31  ;;  %v1210_v34 = vpop.permute.xlu0 %1209 }
 0x13a   :  { %vm1341_vm5 = vcmp.eq.s32.totalorder %v1213_v33, %v9858_v15  ;;  %vm1340_vm7 = vcmp.eq.s32.totalorder %v1210_v34, %v9858_v15 }
 0x13b   :  { %v8722_v28 = vsel %vm1341_vm5, 1.0, %v9572_v22  ;;  %v8721_v36 = vsel %vm1340_vm7, 1.0, %v9572_v22 }
 0x13c   :  { %9212 = vmatprep.mubr.msk.f32.mxu1 %vm1514_vm6, %v8721_v36 }
 0x13d   :  { %v1219_v37 = vpop.permute.xlu1 %1218  ;;  %9213 = vmatmul.mubr.msk.f32.gmra.mxu1 %vm1514_vm6, %v8722_v28  ;;  %v1216_v38 = vpop.permute.xlu0 %1215 }
 0x13e   :  { %vm1343_vm8 = vcmp.eq.s32.totalorder %v1219_v37, %v9858_v15  ;;  %vm1342_vm9 = vcmp.eq.s32.totalorder %v1216_v38, %v9858_v15 }
 0x13f   :  { %v8724_v39 = vsel %vm1343_vm8, 1.0, %v9572_v22  ;;  %v8723_v40 = vsel %vm1342_vm9, 1.0, %v9572_v22 }
 0x140   :  { %9215 = vmatprep.mubr.msk.f32.mxu1 %vm1514_vm6, %v8723_v40 }
 0x141   :  { %v1225_v35 = vpop.permute.xlu1 %1224  ;;  %9216 = vmatmul.mubr.msk.f32.gmra.mxu1 %vm1514_vm6, %v8724_v39  ;;  %v1222_v41 = vpop.permute.xlu0 %1221 }
 0x142   :  { %vm1345_vm0 = vcmp.eq.s32.totalorder %v1225_v35, %v9858_v15  ;;  %vm1344_vm10 = vcmp.eq.s32.totalorder %v1222_v41, %v9858_v15 }
 0x143   :  { %v8726_v43 = vsel %vm1345_vm0, 1.0, %v9572_v22  ;;  %v8725_v44 = vsel %vm1344_vm10, 1.0, %v9572_v22 }
 0x144   :  { %v10417_v45 = vpop.f32.mrf.mxu0  ;;  %9218 = vmatprep.mubr.msk.f32.mxu1 %vm1514_vm6, %v8725_v44 }
 0x145   :  { %v1231_v46 = vpop.permute.xlu1 %1230  ;;  %9219 = vmatmul.mubr.msk.f32.gmra.mxu1 %vm1514_vm6, %v8726_v43  ;;  %v1228_v42 = vpop.permute.xlu0 %1227 }
 0x146   :  { %vm1347_vm11 = vcmp.eq.s32.totalorder %v1231_v46, %v9858_v15  ;;  %vm1346_vm12 = vcmp.eq.s32.totalorder %v1228_v42, %v9858_v15  ;;  %v10423_v47 = vpop.f32.mrf.mxu0 }
 0x147   :  { %v8728_v48 = vsel %vm1347_vm11, 1.0, %v9572_v22  ;;  %v8727_v49 = vsel %vm1346_vm12, 1.0, %v9572_v22 }
 0x148   :  { %v10427_v50 = vpop.f32.mrf.mxu0  ;;  %9221 = vmatprep.mubr.msk.f32.mxu1 %vm1514_vm6, %v8727_v49 }
 0x149   :  { %v1237_v51 = vpop.permute.xlu1 %1236  ;;  %9222 = vmatmul.mubr.msk.f32.gmra.mxu1 %vm1514_vm6, %v8728_v48  ;;  %v1234_v52 = vpop.permute.xlu0 %1233 }
 0x14a   :  { %vm1349_vm13 = vcmp.eq.s32.totalorder %v1237_v51, %v9858_v15  ;;  %vm1348_vm14 = vcmp.eq.s32.totalorder %v1234_v52, %v9858_v15  ;;  %v10433_v53 = vpop.f32.mrf.mxu0 }
 0x14b   :  { %v8730_v54 = vsel %vm1349_vm13, 1.0, %v9572_v22  ;;  %v8729_v55 = vsel %vm1348_vm14, 1.0, %v9572_v22 }
 0x14c   :  { %v10437_v56 = vpop.f32.mrf.mxu0  ;;  %9224 = vmatprep.mubr.msk.f32.mxu1 %vm1514_vm6, %v8729_v55 }
 0x14d   :  { %v1243_v57 = vpop.permute.xlu1 %1242  ;;  %9225 = vmatmul.mubr.msk.f32.gmra.mxu1 %vm1514_vm6, %v8730_v54  ;;  %v1240_v58 = vpop.permute.xlu0 %1239 }
 0x14e   :  { %vm1351_vm15 = vcmp.eq.s32.totalorder %v1243_v57, %v9858_v15  ;;  %vm1350_vm1 = vcmp.eq.s32.totalorder %v1240_v58, %v9858_v15  ;;  %v10445_v61 = vpop.f32.mrf.mxu0 }
 0x14f   :  { %v8732_v59 = vsel %vm1351_vm15, 1.0, %v9572_v22  ;;  %v8731_v60 = vsel %vm1350_vm1, 1.0, %v9572_v22 }
 0x150   :  { %9227 = vmatprep.mubr.msk.f32.mxu1 %vm1514_vm6, %v8731_v60  ;;  %v10453_v2 = vpop.f32.mrf.mxu0 }
 0x151   :  { %v1249_v62 = vpop.permute.xlu1 %1248  ;;  %9228 = vmatmul.mubr.msk.f32.gmra.mxu1 %vm1514_vm6, %v8732_v59  ;;  %v1246_v63 = vpop.permute.xlu0 %1245 }
 0x152   :  { %vm1353_vm2 = vcmp.eq.s32.totalorder %v1249_v62, %v9858_v15  ;;  %vm1352_vm3 = vcmp.eq.s32.totalorder %v1246_v63, %v9858_v15  ;;  %v10461_v7 = vpop.f32.mrf.mxu0 }
 0x153   :  { %v8734_v0 = vsel %vm1353_vm2, 1.0, %v9572_v22  ;;  %v8733_v1 = vsel %vm1352_vm3, 1.0, %v9572_v22 }
 0x154   :  { %9230 = vmatprep.mubr.msk.f32.mxu1 %vm1514_vm6, %v8733_v1  ;;  %v10469_v13 = vpop.f32.mrf.mxu0 }
 0x155   :  { %v1255_v3 = vpop.permute.xlu1 %1254  ;;  %9231 = vmatmul.mubr.msk.f32.gmra.mxu1 %vm1514_vm6, %v8734_v0  ;;  %v1252_v4 = vpop.permute.xlu0 %1251 }
 0x156   :  { %vm1355_vm4 = vcmp.eq.s32.totalorder %v1255_v3, %v9858_v15  ;;  %vm1354_vm5 = vcmp.eq.s32.totalorder %v1252_v4, %v9858_v15  ;;  %v10477_v20 = vpop.f32.mrf.mxu0 }
 0x157   :  { %v8736_v5 = vsel %vm1355_vm4, 1.0, %v9572_v22  ;;  %v8735_v6 = vsel %vm1354_vm5, 1.0, %v9572_v22 }
 0x158   :  { %9233 = vmatprep.mubr.msk.f32.mxu1 %vm1514_vm6, %v8735_v6  ;;  %v10485_v26 = vpop.f32.mrf.mxu0 }
 0x159   :  { %v1261_v8 = vpop.permute.xlu1 %1260  ;;  %9234 = vmatmul.mubr.msk.f32.gmra.mxu1 %vm1514_vm6, %v8736_v5  ;;  %v1258_v9 = vpop.permute.xlu0 %1257 }
 0x15a   :  { %vm1357_vm7 = vcmp.eq.s32.totalorder %v1261_v8, %v9858_v15  ;;  %vm1356_vm8 = vcmp.eq.s32.totalorder %v1258_v9, %v9858_v15  ;;  %v10493_v31 = vpop.f32.mrf.mxu0 }
 0x15b   :  { %v8738_v11 = vsel %vm1357_vm7, 1.0, %v9572_v22  ;;  %v8737_v12 = vsel %vm1356_vm8, 1.0, %v9572_v22 }
 0x15c   :  { %9236 = vmatprep.mubr.msk.f32.mxu1 %vm1514_vm6, %v8737_v12  ;;  %v10501_v36 = vpop.f32.mrf.mxu0 }
 0x15d   :  { %v1267_v14 = vpop.permute.xlu1 %1266  ;;  %9237 = vmatmul.mubr.msk.f32.gmra.mxu1 %vm1514_vm6, %v8738_v11  ;;  %v1264_v16 = vpop.permute.xlu0 %1263 }
 0x15e   :  { %vm1359_vm9 = vcmp.eq.s32.totalorder %v1267_v14, %v9858_v15  ;;  %vm1358_vm0 = vcmp.eq.s32.totalorder %v1264_v16, %v9858_v15  ;;  %v10509_v35 = vpop.f32.mrf.mxu0 }
 0x15f   :  { %v8740_v17 = vsel %vm1359_vm9, 1.0, %v9572_v22  ;;  %v8739_v19 = vsel %vm1358_vm0, 1.0, %v9572_v22  ;;  %vm8182_vm0 = vcmask 130112  }
 0x160   :  { %9239 = vmatprep.mubr.msk.f32.mxu1 %vm1514_vm6, %v8739_v19  ;;  %v10517_v42 = vpop.f32.mrf.mxu0 }
 0x161   :  { %v1273_v23 = vpop.permute.xlu1 %1272  ;;  %9240 = vmatmul.mubr.msk.f32.gmra.mxu1 %vm1514_vm6, %v8740_v17  ;;  %v1270_v18 = vpop.permute.xlu0 %1269 }
 0x162   :  { %vm1361_vm10 = vcmp.eq.s32.totalorder %v1273_v23, %v9858_v15  ;;  %vm1360_vm11 = vcmp.eq.s32.totalorder %v1270_v18, %v9858_v15  ;;  %v10525_v54 = vpop.f32.mrf.mxu0 }
 0x163   :  { %v8742_v24 = vsel %vm1361_vm10, 1.0, %v9572_v22  ;;  %v8741_v25 = vsel %vm1360_vm11, 1.0, %v9572_v22  ;;  %vm8189_vm10 = vcmask 195712   ;;  %vm8196_vm11 = vcmask 261312  }
 0x164   :  { %9242 = vmatprep.mubr.msk.f32.mxu1 %vm1514_vm6, %v8741_v25  ;;  %v10534_v60 = vpop.f32.mrf.mxu0 }
 0x165   :  { %v1279_v27 = vpop.permute.xlu1 %1278  ;;  %9243 = vmatmul.mubr.msk.f32.gmra.mxu1 %vm1514_vm6, %v8742_v24  ;;  %v1276_v29 = vpop.permute.xlu0 %1275 }
 0x166   :  { %vm1363_vm12 = vcmp.eq.s32.totalorder %v1279_v27, %v9858_v15  ;;  %vm1362_vm13 = vcmp.eq.s32.totalorder %v1276_v29, %v9858_v15  ;;  %v10537_v62 = vpop.f32.mrf.mxu0 }
 0x167   :  { %v8744_v21 = vsel %vm1363_vm12, 1.0, %v9572_v22  ;;  %v8743_v30 = vsel %vm1362_vm13, 1.0, %v9572_v22  ;;  %vm8203_vm12 = vcmask 326912   ;;  %vm8210_vm13 = vcmask 392512  }
 0x168   :  { %9245 = vmatprep.mubr.msk.f32.mxu1 %vm1514_vm6, %v8743_v30  ;;  %v10539_v63 = vpop.f32.mrf.mxu0 }
 0x169   :  { %v1285_v32 = vpop.permute.xlu1 %1284  ;;  %9246 = vmatmul.mubr.msk.f32.gmra.mxu1 %vm1514_vm6, %v8744_v21  ;;  %v1282_v33 = vpop.permute.xlu0 %1281 }
 0x16a   :  { %vm1365_vm14 = vcmp.eq.s32.totalorder %v1285_v32, %v9858_v15  ;;  %vm1364_vm15 = vcmp.eq.s32.totalorder %v1282_v33, %v9858_v15  ;;  %v10541_v0 = vpop.f32.mrf.mxu0 }
 0x16b   :  { %v8746_v34 = vsel %vm1365_vm14, 1.0, %v9572_v22  ;;  %v8745_v28 = vsel %vm1364_vm15, 1.0, %v9572_v22  ;;  %vm8217_vm14 = vcmask 458112   ;;  %vm8224_vm15 = vcmask 523712  }
 0x16c   :  { %9248 = vmatprep.mubr.msk.f32.mxu1 %vm1514_vm6, %v8745_v28  ;;  %v10543_v1 = vpop.f32.mrf.mxu0 }
 0x16d   :  { %v1291_v37 = vpop.permute.xlu1 %1290  ;;  %9249 = vmatmul.mubr.msk.f32.gmra.mxu1 %vm1514_vm6, %v8746_v34  ;;  %v1288_v38 = vpop.permute.xlu0 %1287 }
 0x16e   :  { %vm1367_vm1 = vcmp.eq.s32.totalorder %v1291_v37, %v9858_v15  ;;  %vm1366_vm2 = vcmp.eq.s32.totalorder %v1288_v38, %v9858_v15  ;;  %v10545_v3 = vpop.f32.mrf.mxu0 }
 0x16f   :  { %v8748_v39 = vsel %vm1367_vm1, 1.0, %v9572_v22  ;;  %v8747_v40 = vsel %vm1366_vm2, 1.0, %v9572_v22  ;;  %vm8231_vm1 = vcmask 589312   ;;  %vm8238_vm2 = vcmask 654912  }
 0x170   :  { %9251 = vmatprep.mubr.msk.f32.mxu1 %vm1514_vm6, %v8747_v40  ;;  %v10547_v4 = vpop.f32.mrf.mxu0 }
 0x171   :  { %v1297_v41 = vpop.permute.xlu1 %1296  ;;  %9252 = vmatmul.mubr.msk.f32.gmra.mxu1 %vm1514_vm6, %v8748_v39  ;;  %v1294_v43 = vpop.permute.xlu0 %1293 }
 0x172   :  { %vm1369_vm3 = vcmp.eq.s32.totalorder %v1297_v41, %v9858_v15  ;;  %vm1368_vm4 = vcmp.eq.s32.totalorder %v1294_v43, %v9858_v15  ;;  %v10549_v5 = vpop.f32.mrf.mxu0 }
 0x173   :  { %v8750_v44 = vsel %vm1369_vm3, 1.0, %v9572_v22  ;;  %v8749_v46 = vsel %vm1368_vm4, 1.0, %v9572_v22  ;;  %vm8245_vm3 = vcmask 720512   ;;  %vm8252_vm4 = vcmask 786112  }
 0x174   :  { %9254 = vmatprep.mubr.msk.f32.mxu1 %vm1514_vm6, %v8749_v46 }
 0x175   :  { %v1303_v48 = vpop.permute.xlu1 %1302  ;;  %9255 = vmatmul.mubr.msk.f32.gmra.mxu1 %vm1514_vm6, %v8750_v44  ;;  %v1300_v49 = vpop.permute.xlu0 %1299 }
 0x176   :  { %vm1371_vm5 = vcmp.eq.s32.totalorder %v1303_v48, %v9858_v15  ;;  %vm1370_vm7 = vcmp.eq.s32.totalorder %v1300_v49, %v9858_v15 }
 0x177   :  { %v8752_v51 = vsel %vm1371_vm5, 1.0, %v9572_v22  ;;  %v8751_v52 = vsel %vm1370_vm7, 1.0, %v9572_v22  ;;  %vm8259_vm5 = vcmask 851712   ;;  %vm8266_vm7 = vcmask 917312  }
 0x178   :  { %9257 = vmatprep.mubr.msk.f32.mxu1 %vm1514_vm6, %v8751_v52 }
 0x179   :  { %v1309_v55 = vpop.permute.xlu1 %1308  ;;  %9258 = vmatmul.mubr.msk.f32.gmra.mxu1 %vm1514_vm6, %v8752_v51  ;;  %v1306_v57 = vpop.permute.xlu0 %1305 }
 0x17a   :  { %vm1373_vm8 = vcmp.eq.s32.totalorder %v1309_v55, %v9858_v15  ;;  %vm1372_vm9 = vcmp.eq.s32.totalorder %v1306_v57, %v9858_v15 }
 0x17b   :  { %v8754_v58 = vsel %vm1373_vm8, 1.0, %v9572_v22  ;;  %v8753_v59 = vsel %vm1372_vm9, 1.0, %v9572_v22  ;;  %v10551_v22 = vpop.f32.mrf.mxu0  ;;  %vm8273_vm8 = vcmask 982912   ;;  %vm8280_vm9 = vcmask 1048512  }
 0x17c   :  { %9260 = vmatprep.mubr.msk.f32.mxu1 %vm1514_vm6, %v8753_v59 }
 0x17d   :  { %9261 = vmatmul.mubr.msk.f32.gmra.mxu1 %vm1514_vm6, %v8754_v58  ;;  %v10553_v6 = vpop.f32.mrf.mxu0  ;;  %vm2156_vm6 = vcmask 261120  }
 0x17f   :  { %v10555_v8 = vpop.f32.mrf.mxu0 }
 0x181   :  { %v10557_v9 = vpop.f32.mrf.mxu0 }
 0x183   :  { %v10559_v11 = vpop.f32.mrf.mxu0 }
 0x185   :  { %v10561_v12 = vpop.f32.mrf.mxu0 }
 0x187   :  { %v10563_v14 = vpop.f32.mrf.mxu0 }
 0x189   :  { %v10565_v16 = vpop.f32.mrf.mxu0 }
 0x18b   :  { %v10567_v17 = vpop.f32.mrf.mxu0 }
 0x18d   :  { %v10569_v19 = vpop.f32.mrf.mxu0 }
 0x18f   :  { %v10571_v23 = vpop.f32.mrf.mxu0 }
 0x191   :  { %v10576_v21 = vpop.f32.mrf.mxu0 }
 0x193   :  { %v10581_v37 = vpop.f32.mrf.mxu0 }
 0x195   :  { %v10587_v43 = vpop.f32.mrf.mxu0 }
 0x197   :  { %v10593_v51 = vpop.f32.mrf.mxu0 }
 0x199   :  { %v10599_v59 = vpop.f32.mrf.mxu0 }
 0x1c5   :  { %v9172_v18 = vpop.f32.mrf.mxu1 }
 0x1c6   :  { %v2095_v24 = vmul.f32 %v9172_v18, %v10427_v50 }
 0x1c7   :  { %v1783_v25 = vpop.f32.mrf.mxu1 }
 0x1c8   :  { %v2094_v27 = vmul.f32 %v1783_v25, %v10433_v53  ;;  %v2166_v29 = vsel %vm2156_vm6, %v2095_v24, 0.0 }
 0x1c9   :  { %2167 = vadd.xlane.f32.xlu0 %v2166_v29  ;;  %v9175_v30 = vpop.f32.mrf.mxu1  ;;  %v10605_v29 = vpop.f32.mrf.mxu0 }
 0x1ca   :  { %v2097_v33 = vmul.f32 %v9175_v30, %v10437_v56  ;;  %v2163_v28 = vsel %vm2156_vm6, %v2094_v27, 0.0 }
 0x1cb   :  { %v1793_v32 = vpop.f32.mrf.mxu1 }
 0x1cc   :  { %v2096_v34 = vmul.f32 %v1793_v32, %v10445_v61  ;;  %v2172_v41 = vsel %vm2156_vm6, %v2097_v33, 0.0 }
 0x1cd   :  { %2164 = vadd.xlane.f32.xlu0 %v2163_v28  ;;  %v9178_v50 = vpop.f32.mrf.mxu1  ;;  %v10611_v28 = vpop.f32.mrf.mxu0 }
 0x1ce   :  { %v2169_v38 = vsel %vm2156_vm6, %v2096_v34, 0.0  ;;  %v2099_v39 = vmul.f32 %v9178_v50, %v10453_v2 }
 0x1cf   :  { %2170 = vadd.xlane.f32.xlu1 %v2169_v38  ;;  %v1803_v53 = vpop.f32.mrf.mxu1 }
 0x1d0   :  { %v2098_v40 = vmul.f32 %v1803_v53, %v10461_v7  ;;  %v2178_v49 = vsel %vm2156_vm6, %v2099_v39, 0.0 }
 0x1d1   :  { %2173 = vadd.xlane.f32.xlu0 %v2172_v41  ;;  %v9181_v56 = vpop.f32.mrf.mxu1 }
 0x1d2   :  { %v2175_v61 = vsel %vm2156_vm6, %v2098_v40, 0.0  ;;  %v2101_v46 = vmul.f32 %v9181_v56, %v10469_v13  ;;  %v10617_v40 = vpop.f32.mrf.mxu0 }
 0x1d3   :  { %2176 = vadd.xlane.f32.xlu1 %v2175_v61  ;;  %v1813_v44 = vpop.f32.mrf.mxu1 }
 0x1d4   :  { %v2100_v48 = vmul.f32 %v1813_v44, %v10477_v20  ;;  %v2184_v58 = vsel %vm2156_vm6, %v2101_v46, 0.0  ;;  %v10623_v46 = vpop.f32.mrf.mxu0 }
 0x1d5   :  { %2179 = vadd.xlane.f32.xlu0 %v2178_v49  ;;  %v9184_v2 = vpop.f32.mrf.mxu1 }
 0x1d6   :  { %v2181_v7 = vsel %vm2156_vm6, %v2100_v48, 0.0  ;;  %v2103_v55 = vmul.f32 %v9184_v2, %v10485_v26 }
 0x1d7   :  { %2182 = vadd.xlane.f32.xlu1 %v2181_v7  ;;  %v1823_v52 = vpop.f32.mrf.mxu1 }
 0x1d8   :  { %v2102_v57 = vmul.f32 %v1823_v52, %v10493_v31  ;;  %v2190_v27 = vsel %vm2156_vm6, %v2103_v55, 0.0  ;;  %v10629_v52 = vpop.f32.mrf.mxu0 }
 0x1d9   :  { %2185 = vadd.xlane.f32.xlu0 %v2184_v58  ;;  %v9187_v13 = vpop.f32.mrf.mxu1 }
 0x1da   :  { %v2187_v20 = vsel %vm2156_vm6, %v2102_v57, 0.0  ;;  %v2105_v24 = vmul.f32 %v9187_v13, %v10501_v36 }
 0x1db   :  { %2188 = vadd.xlane.f32.xlu1 %v2187_v20  ;;  %v1833_v18 = vpop.f32.mrf.mxu1  ;;  %v10635_v20 = vpop.f32.mrf.mxu0 }
 0x1dc   :  { %v2104_v25 = vmul.f32 %v1833_v18, %v10509_v35  ;;  %v2196_v34 = vsel %vm2156_vm6, %v2105_v24, 0.0 }
 0x1dd   :  { %2191 = vadd.xlane.f32.xlu0 %v2190_v27  ;;  %v9190_v26 = vpop.f32.mrf.mxu1 }
 0x1de   :  { %v2193_v31 = vsel %vm2156_vm6, %v2104_v25, 0.0  ;;  %v2107_v32 = vmul.f32 %v9190_v26, %v10517_v42  ;;  %v10641_v26 = vpop.f32.mrf.mxu0 }
 0x1df   :  { %2194 = vadd.xlane.f32.xlu1 %v2193_v31  ;;  %v1843_v30 = vpop.f32.mrf.mxu1 }
 0x1e0   :  { %v2106_v33 = vmul.f32 %v1843_v30, %v10525_v54  ;;  %v2202_v39 = vsel %vm2156_vm6, %v2107_v32, 0.0 }
 0x1e1   :  { %2197 = vadd.xlane.f32.xlu0 %v2196_v34  ;;  %v9193_v36 = vpop.f32.mrf.mxu1  ;;  %v10647_v34 = vpop.f32.mrf.mxu0 }
 0x1e2   :  { %v2199_v35 = vsel %vm2156_vm6, %v2106_v33, 0.0  ;;  %v2109_v38 = vmul.f32 %v9193_v36, %v10534_v60 }
 0x1e3   :  { %2200 = vadd.xlane.f32.xlu1 %v2199_v35  ;;  %v1853_v50 = vpop.f32.mrf.mxu1 }
 0x1e4   :  { %v2108_v53 = vmul.f32 %v1853_v50, %v10537_v62  ;;  %v2208_v44 = vsel %vm2156_vm6, %v2109_v38, 0.0 }
 0x1e5   :  { %2203 = vadd.xlane.f32.xlu0 %v2202_v39  ;;  %v9196_v42 = vpop.f32.mrf.mxu1 }
 0x1e6   :  { %v2205_v54 = vsel %vm2156_vm6, %v2108_v53, 0.0  ;;  %v2111_v56 = vmul.f32 %v9196_v42, %v10539_v63  ;;  %v10653_v53 = vpop.f32.mrf.mxu0 }
 0x1e7   :  { %2206 = vadd.xlane.f32.xlu1 %v2205_v54  ;;  %v1863_v41 = vpop.f32.mrf.mxu1 }
 0x1e8   :  { %v2110_v61 = vmul.f32 %v1863_v41, %v10541_v0  ;;  %v2214_v7 = vsel %vm2156_vm6, %v2111_v56, 0.0  ;;  %v10659_v56 = vpop.f32.mrf.mxu0 }
 0x1e9   :  { %2209 = vadd.xlane.f32.xlu0 %v2208_v44  ;;  %v9199_v60 = vpop.f32.mrf.mxu1 }
 0x1ea   :  { %v2211_v62 = vsel %vm2156_vm6, %v2110_v61, 0.0  ;;  %v2113_v49 = vmul.f32 %v9199_v60, %v10543_v1 }
 0x1eb   :  { %2212 = vadd.xlane.f32.xlu1 %v2211_v62  ;;  %v1873_v48 = vpop.f32.mrf.mxu1 }
 0x1ec   :  { %v2112_v2 = vmul.f32 %v1873_v48, %v10545_v3  ;;  %v2220_v13 = vsel %vm2156_vm6, %v2113_v49, 0.0  ;;  %v10665_v48 = vpop.f32.mrf.mxu0 }
 0x1ed   :  { %2215 = vadd.xlane.f32.xlu0 %v2214_v7  ;;  %v9202_v63 = vpop.f32.mrf.mxu1 }
 0x1ee   :  { %v2217_v0 = vsel %vm2156_vm6, %v2112_v2, 0.0  ;;  %v2115_v57 = vmul.f32 %v9202_v63, %v10547_v4 }
 0x1ef   :  { %2218 = vadd.xlane.f32.xlu1 %v2217_v0  ;;  %v1883_v55 = vpop.f32.mrf.mxu1  ;;  %v10671_v0 = vpop.f32.mrf.mxu0 }
 0x1f0   :  { %v2114_v58 = vmul.f32 %v1883_v55, %v10549_v5  ;;  %v2226_v27 = vsel %vm2156_vm6, %v2115_v57, 0.0 }
 0x1f1   :  { %2221 = vadd.xlane.f32.xlu0 %v2220_v13  ;;  %v9205_v1 = vpop.f32.mrf.mxu1 }
 0x1f2   :  { %v2223_v3 = vsel %vm2156_vm6, %v2114_v58, 0.0  ;;  %v2117_v24 = vmul.f32 %v9205_v1, %v10551_v22  ;;  %v10677_v1 = vpop.f32.mrf.mxu0 }
 0x1f3   :  { %2224 = vadd.xlane.f32.xlu1 %v2223_v3  ;;  %v1893_v18 = vpop.f32.mrf.mxu1 }
 0x1f4   :  { %v2116_v25 = vmul.f32 %v1893_v18, %v10553_v6  ;;  %v2232_v33 = vsel %vm2156_vm6, %v2117_v24, 0.0 }
 0x1f5   :  { %2227 = vadd.xlane.f32.xlu0 %v2226_v27  ;;  %v9208_v4 = vpop.f32.mrf.mxu1  ;;  %v1059_v27 = vpop.f32.mrf.mxu0 }
 0x1f6   :  { %v2229_v5 = vsel %vm2156_vm6, %v2116_v25, 0.0  ;;  %v2119_v30 = vmul.f32 %v9208_v4, %v10555_v8 }
 0x1f7   :  { %2230 = vadd.xlane.f32.xlu1 %v2229_v5  ;;  %v1903_v31 = vpop.f32.mrf.mxu1 }
 0x1f8   :  { %v2118_v32 = vmul.f32 %v1903_v31, %v10557_v9  ;;  %v2238_v38 = vsel %vm2156_vm6, %v2119_v30, 0.0 }
 0x1f9   :  { %2233 = vadd.xlane.f32.xlu0 %v2232_v33  ;;  %v9211_v22 = vpop.f32.mrf.mxu1 }
 0x1fa   :  { %v2235_v6 = vsel %vm2156_vm6, %v2118_v32, 0.0  ;;  %v2121_v35 = vmul.f32 %v9211_v22, %v10559_v11  ;;  %v9130_v32 = vpop.f32.mrf.mxu0 }
 0x1fb   :  { %2236 = vadd.xlane.f32.xlu1 %v2235_v6  ;;  %v1913_v36 = vpop.f32.mrf.mxu1 }
 0x1fc   :  { %v2120_v50 = vmul.f32 %v1913_v36, %v10561_v12  ;;  %v2244_v41 = vsel %vm2156_vm6, %v2121_v35, 0.0  ;;  %v1069_v35 = vpop.f32.mrf.mxu0 }
 0x1fd   :  { %2239 = vadd.xlane.f32.xlu0 %v2238_v38  ;;  %v9214_v8 = vpop.f32.mrf.mxu1 }
 0x1fe   :  { %v2241_v9 = vsel %vm2156_vm6, %v2120_v50, 0.0  ;;  %v2123_v42 = vmul.f32 %v9214_v8, %v10563_v14 }
 0x1ff   :  { %2242 = vadd.xlane.f32.xlu1 %v2241_v9  ;;  %v1923_v39 = vpop.f32.mrf.mxu1 }
 0x200   :  { %v2122_v54 = vmul.f32 %v1923_v39, %v10565_v16  ;;  %v2250_v62 = vsel %vm2156_vm6, %v2123_v42, 0.0  ;;  %v9133_v39 = vpop.f32.mrf.mxu0 }
 0x201   :  { %2245 = vadd.xlane.f32.xlu0 %v2244_v41  ;;  %v9217_v11 = vpop.f32.mrf.mxu1 }
 0x202   :  { %v2247_v12 = vsel %vm2156_vm6, %v2122_v54, 0.0  ;;  %v2125_v44 = vmul.f32 %v9217_v11, %v10567_v17 }
 0x203   :  { %2248 = vadd.xlane.f32.xlu1 %v2247_v12  ;;  %v1933_v61 = vpop.f32.mrf.mxu1  ;;  %v1079_v12 = vpop.f32.mrf.mxu0 }
 0x204   :  { %v2124_v60 = vmul.f32 %v1933_v61, %v10569_v19  ;;  %v2256_v63 = vsel %vm2156_vm6, %v2125_v44, 0.0 }
 0x205   :  { %2251 = vadd.xlane.f32.xlu0 %v2250_v62  ;;  %v9220_v14 = vpop.f32.mrf.mxu1 }
 0x206   :  { %v2253_v16 = vsel %vm2156_vm6, %v2124_v60, 0.0  ;;  %v2127_v2 = vmul.f32 %v9220_v14, %v10571_v23  ;;  %v9136_v14 = vpop.f32.mrf.mxu0 }
 0x207   :  { %2254 = vadd.xlane.f32.xlu1 %v2253_v16  ;;  %v1943_v49 = vpop.f32.mrf.mxu1 }
 0x208   :  { %v2126_v7 = vmul.f32 %v1943_v49, %v10576_v21  ;;  %v2262_v13 = vsel %vm2156_vm6, %v2127_v2, 0.0 }
 0x209   :  { %2257 = vadd.xlane.f32.xlu0 %v2256_v63  ;;  %v9223_v17 = vpop.f32.mrf.mxu1  ;;  %v1089_v63 = vpop.f32.mrf.mxu0 }
 0x20a   :  { %v2259_v19 = vsel %vm2156_vm6, %v2126_v7, 0.0  ;;  %v2129_v57 = vmul.f32 %v9223_v17, %v10581_v37 }
 0x20b   :  { %2260 = vadd.xlane.f32.xlu1 %v2259_v19  ;;  %v1953_v55 = vpop.f32.mrf.mxu1 }
 0x20c   :  { %v2128_v58 = vmul.f32 %v1953_v55, %v10587_v43  ;;  %v2268_v25 = vsel %vm2156_vm6, %v2129_v57, 0.0 }
 0x20d   :  { %2263 = vadd.xlane.f32.xlu0 %v2262_v13  ;;  %v9226_v23 = vpop.f32.mrf.mxu1 }
 0x20e   :  { %v2265_v21 = vsel %vm2156_vm6, %v2128_v58, 0.0  ;;  %v2131_v18 = vmul.f32 %v9226_v23, %v10593_v51  ;;  %v9139_v58 = vpop.f32.mrf.mxu0 }
 0x20f   :  { %2266 = vadd.xlane.f32.xlu1 %v2265_v21  ;;  %v1963_v3 = vpop.f32.mrf.mxu1 }
 0x210   :  { %v2130_v24 = vmul.f32 %v1963_v3, %v10599_v59  ;;  %v2274_v30 = vsel %vm2156_vm6, %v2131_v18, 0.0  ;;  %v1099_v18 = vpop.f32.mrf.mxu0 }
 0x211   :  { %2269 = vadd.xlane.f32.xlu0 %v2268_v25  ;;  %v9229_v37 = vpop.f32.mrf.mxu1 }
 0x212   :  { %v2271_v43 = vsel %vm2156_vm6, %v2130_v24, 0.0  ;;  %v2133_v5 = vmul.f32 %v9229_v37, %v10605_v29 }
 0x213   :  { %2272 = vadd.xlane.f32.xlu1 %v2271_v43  ;;  %v1973_v4 = vpop.f32.mrf.mxu1 }
 0x214   :  { %v2132_v31 = vmul.f32 %v1973_v4, %v10611_v28  ;;  %v2280_v36 = vsel %vm2156_vm6, %v2133_v5, 0.0  ;;  %v9142_v4 = vpop.f32.mrf.mxu0 }
 0x215   :  { %2275 = vadd.xlane.f32.xlu0 %v2274_v30  ;;  %v9232_v51 = vpop.f32.mrf.mxu1 }
 0x216   :  { %v2277_v59 = vsel %vm2156_vm6, %v2132_v31, 0.0  ;;  %v2135_v22 = vmul.f32 %v9232_v51, %v10617_v40 }
 0x217   :  { %2278 = vadd.xlane.f32.xlu1 %v2277_v59  ;;  %v1983_v33 = vpop.f32.mrf.mxu1 }
 0x218   :  { %v2134_v6 = vmul.f32 %v1983_v33, %v10623_v46  ;;  %v2286_v9 = vsel %vm2156_vm6, %v2135_v22, 0.0  ;;  %v1109_v33 = vpop.f32.mrf.mxu0 }
 0x219   :  { %2281 = vadd.xlane.f32.xlu0 %v2280_v36  ;;  %v9235_v29 = vpop.f32.mrf.mxu1 }
 0x21a   :  { %v2283_v28 = vsel %vm2156_vm6, %v2134_v6, 0.0  ;;  %v2137_v38 = vmul.f32 %v9235_v29, %v10629_v52 }
 0x21b   :  { %2284 = vadd.xlane.f32.xlu1 %v2283_v28  ;;  %v1993_v50 = vpop.f32.mrf.mxu1 }
 0x21c   :  { %v2136_v8 = vmul.f32 %v1993_v50, %v10635_v20  ;;  %v2292_v11 = vsel %vm2156_vm6, %v2137_v38, 0.0  ;;  %v9169_v50 = vpop.f32.mrf.mxu0 }
 0x21d   :  { %2287 = vadd.xlane.f32.xlu0 %v2286_v9  ;;  %v9238_v40 = vpop.f32.mrf.mxu1 }
 0x21e   :  { %v2289_v46 = vsel %vm2156_vm6, %v2136_v8, 0.0  ;;  %v2139_v54 = vmul.f32 %v9238_v40, %v10641_v26 }
 0x21f   :  { %2290 = vadd.xlane.f32.xlu1 %v2289_v46  ;;  %v2003_v42 = vpop.f32.mrf.mxu1 }
 0x220   :  { %v2138_v41 = vmul.f32 %v2003_v42, %v10647_v34  ;;  %v2298_v62 = vsel %vm2156_vm6, %v2139_v54, 0.0  ;;  %v1773_v42 = vpop.f32.mrf.mxu0  ;;  %v2093_v54 = vmul.f32 %v9169_v50, %v10417_v45 }
 0x221   :  { %2293 = vadd.xlane.f32.xlu0 %v2292_v11  ;;  %v9241_v52 = vpop.f32.mrf.mxu1  ;;  %v2092_v11 = vmul.f32 %v1773_v42, %v10423_v47 }
 0x222   :  { %v2295_v20 = vsel %vm2156_vm6, %v2138_v41, 0.0  ;;  %v2141_v44 = vmul.f32 %v9241_v52, %v10653_v53  ;;  %v2160_v52 = vsel %vm2156_vm6, %v2093_v54, 0.0 }
 0x223   :  { %2296 = vadd.xlane.f32.xlu1 %v2295_v20  ;;  %v2013_v61 = vpop.f32.mrf.mxu1  ;;  %v2157_v20 = vsel %vm2156_vm6, %v2092_v11, 0.0 }
 0x224   :  { %v2140_v60 = vmul.f32 %v2013_v61, %v10659_v56  ;;  %v2304_v7 = vsel %vm2156_vm6, %v2141_v44, 0.0 }
 0x225   :  { %2299 = vadd.xlane.f32.xlu0 %v2298_v62  ;;  %v9244_v26 = vpop.f32.mrf.mxu1 }
 0x226   :  { %v2301_v34 = vsel %vm2156_vm6, %v2140_v60, 0.0  ;;  %v2143_v49 = vmul.f32 %v9244_v26, %v10665_v48 }
 0x227   :  { %2302 = vadd.xlane.f32.xlu1 %v2301_v34  ;;  %v2023_v16 = vpop.f32.mrf.mxu1 }
 0x228   :  { %v2142_v2 = vmul.f32 %v2023_v16, %v10671_v0  ;;  %v2310_v57 = vsel %vm2156_vm6, %v2143_v49, 0.0 }
 0x229   :  { %2305 = vadd.xlane.f32.xlu0 %v2304_v7  ;;  %v9247_v53 = vpop.f32.mrf.mxu1 }
 0x22a   :  { %v2307_v56 = vsel %vm2156_vm6, %v2142_v2, 0.0  ;;  %v2145_v19 = vmul.f32 %v9247_v53, %v10677_v1 }
 0x22b   :  { %2308 = vadd.xlane.f32.xlu1 %v2307_v56  ;;  %v2033_v17 = vpop.f32.mrf.mxu1 }
 0x22c   :  { %v2144_v55 = vmul.f32 %v2033_v17, %v1059_v27  ;;  %v2316_v3 = vsel %vm2156_vm6, %v2145_v19, 0.0 }
 0x22d   :  { %2311 = vadd.xlane.f32.xlu0 %v2310_v57  ;;  %v9250_v13 = vpop.f32.mrf.mxu1 }
 0x22e   :  { %v2313_v48 = vsel %vm2156_vm6, %v2144_v55, 0.0  ;;  %v2147_v23 = vmul.f32 %v9250_v13, %v9130_v32 }
 0x22f   :  { %2314 = vadd.xlane.f32.xlu1 %v2313_v48  ;;  %v2043_v0 = vpop.f32.mrf.mxu1 }
 0x230   :  { %v2146_v21 = vmul.f32 %v2043_v0, %v1069_v35  ;;  %v2322_v43 = vsel %vm2156_vm6, %v2147_v23, 0.0 }
 0x231   :  { %2317 = vadd.xlane.f32.xlu0 %v2316_v3  ;;  %v9253_v24 = vpop.f32.mrf.mxu1 }
 0x232   :  { %v2319_v25 = vsel %vm2156_vm6, %v2146_v21, 0.0  ;;  %v2149_v27 = vmul.f32 %v9253_v24, %v9133_v39 }
 0x233   :  { %2320 = vadd.xlane.f32.xlu1 %v2319_v25  ;;  %v2053_v1 = vpop.f32.mrf.mxu1 }
 0x234   :  { %v2148_v37 = vmul.f32 %v2053_v1, %v1079_v12  ;;  %v2328_v59 = vsel %vm2156_vm6, %v2149_v27, 0.0  ;;  %v10727_v1 = vshrl.u32 %v12573_v10, 7  ;;  %v8191_v10 = vadd.s32 4294967272, %v9858_v15 }
 0x235   :  { %2323 = vadd.xlane.f32.xlu0 %v2322_v43  ;;  %v9256_v5 = vpop.f32.mrf.mxu1 }
 0x236   :  { %v2325_v31 = vsel %vm2156_vm6, %v2148_v37, 0.0  ;;  %v2151_v32 = vmul.f32 %v9256_v5, %v9136_v14  ;;  %v9573_v5 = vmov 1966171168   ;;  %v10751_v42 = vsub.s32 7, %v10727_v1 }
 0x237   :  { %2326 = vadd.xlane.f32.xlu1 %v2325_v31  ;;  %v2063_v30 = vpop.f32.mrf.mxu1  ;;  %v4850_v31 = vunpack.c.l.s4 %v9573_v5 }
 0x238   :  { %v2150_v51 = vmul.f32 %v2063_v30, %v1089_v63  ;;  %v2334_v28 = vsel %vm2156_vm6, %v2151_v32, 0.0 }
 0x239   :  { %2329 = vadd.xlane.f32.xlu0 %v2328_v59  ;;  %v9259_v22 = vpop.f32.mrf.mxu1 }
 0x23a   :  { %v2331_v6 = vsel %vm2156_vm6, %v2150_v51, 0.0  ;;  %v2153_v35 = vmul.f32 %v9259_v22, %v9139_v58  ;;  %v10733_v22 = vsub.s32 1, %v10727_v1 }
 0x23b   :  { %2332 = vadd.xlane.f32.xlu1 %v2331_v6  ;;  %v2073_v36 = vpop.f32.mrf.mxu1 }
 0x23c   :  { %v2152_v29 = vmul.f32 %v2073_v36, %v1099_v18  ;;  %v2340_v46 = vsel %vm2156_vm6, %v2153_v35, 0.0 }
 0x23d   :  { %2335 = vadd.xlane.f32.xlu0 %v2334_v28  ;;  %v9262_v38 = vpop.f32.mrf.mxu1  ;;  %v10739_v28 = vsub.s32 3, %v10727_v1 }
 0x23e   :  { %v2337_v8 = vsel %vm2156_vm6, %v2152_v29, 0.0  ;;  %v2155_v39 = vmul.f32 %v9262_v38, %v9142_v4  ;;  %v10736_v29 = vsub.s32 2, %v10727_v1  ;;  %v10742_v38 = vsub.s32 4, %v10727_v1 }
 0x23f   :  { %2338 = vadd.xlane.f32.xlu1 %v2337_v8  ;;  %v2083_v9 = vpop.f32.mrf.mxu1  ;;  %v4851_v8 = vunpack.c.0.s8 %v4850_v31 }
 0x240   :  { %v2154_v40 = vmul.f32 %v2083_v9, %v1109_v33  ;;  %v2346_v12 = vsel %vm2156_vm6, %v2155_v39, 0.0  ;;  %v10730_v33 = vsub.s32 0, %v10727_v1 }
 0x241   :  { %2341 = vadd.xlane.f32.xlu0 %v2340_v46  ;;  %v10748_v46 = vsub.s32 6, %v10727_v1 }
 0x242   :  { %v2343_v41 = vsel %vm2156_vm6, %v2154_v40, 0.0  ;;  %v10745_v40 = vsub.s32 5, %v10727_v1 }
 0x243   :  { %2344 = vadd.xlane.f32.xlu1 %v2343_v41 }
 0x245   :  { %2347 = vadd.xlane.f32.xlu0 %v2346_v12 }
 0x247   :  { %2161 = vadd.xlane.f32.xlu1 %v2160_v52 }
 0x249   :  { %2158 = vadd.xlane.f32.xlu0 %v2157_v20 }
 0x252   :  { %v2168_v61 = vpop.xlane.xlu0 %2167 }
 0x253   :  { %v8822_v44 = vmul.f32 -1.442695, %v2168_v61 }
 0x255   :  { %9293 = vpow2.f32 %v8822_v44 }
 0x256   :  { %v2165_v60 = vpop.xlane.xlu0 %2164 }
 0x257   :  { %v8821_v62 = vmul.f32 -1.442695, %v2165_v60 }
 0x258   :  { %v2171_v45 = vpop.xlane.xlu1 %2170 }
 0x259   :  { %9295 = vpow2.f32 %v8821_v62  ;;  %v8823_v14 = vmul.f32 -1.442695, %v2171_v45 }
 0x25a   :  { %v2174_v26 = vpop.xlane.xlu0 %2173 }
 0x25b   :  { %9297 = vpow2.f32 %v8823_v14  ;;  %v8824_v47 = vmul.f32 -1.442695, %v2174_v26  ;;  %v10759_v14 = vsub.s32 %v4851_v8, %v10727_v1 }
 0x25c   :  { %v2177_v34 = vpop.xlane.xlu1 %2176 }
 0x25d   :  { %9299 = vpow2.f32 %v8824_v47  ;;  %v8825_v16 = vmul.f32 -1.442695, %v2177_v34  ;;  %12576 = vst [vmem:[#allocation5_spill] sm:$0xff] %v10759_v14 }
 0x25e   :  { %v2180_v49 = vpop.xlane.xlu0 %2179 }
 0x25f   :  { %9301 = vpow2.f32 %v8825_v16  ;;  %v8826_v2 = vmul.f32 -1.442695, %v2180_v49 }
 0x260   :  { %v2183_v7 = vpop.xlane.xlu1 %2182 }
 0x261   :  { %9303 = vpow2.f32 %v8826_v2  ;;  %v8827_v63 = vmul.f32 -1.442695, %v2183_v7 }
 0x262   :  { %v9294_v53 = vpop.eup %9293  ;;  %v2186_v56 = vpop.xlane.xlu0 %2185 }
 0x263   :  { %v2544_v17 = vadd.f32 1.0, %v9294_v53  ;;  %9305 = vpow2.f32 %v8827_v63  ;;  %v8828_v19 = vmul.f32 -1.442695, %v2186_v56 }
 0x264   :  { %v2189_v55 = vpop.xlane.xlu1 %2188 }
 0x265   :  { %9307 = vrcp.f32 %v2544_v17  ;;  %v8829_v57 = vmul.f32 -1.442695, %v2189_v55 }
 0x266   :  { %v9296_v58 = vpop.eup %9295  ;;  %9309 = vpow2.f32 %v8828_v19  ;;  %v2192_v13 = vpop.xlane.xlu0 %2191 }
 0x267   :  { %9311 = vpow2.f32 %v8829_v57  ;;  %v8830_v0 = vmul.f32 -1.442695, %v2192_v13  ;;  %v2543_v21 = vadd.f32 1.0, %v9296_v58 }
 0x268   :  { %v9298_v48 = vpop.eup %9297  ;;  %v2195_v23 = vpop.xlane.xlu1 %2194 }
 0x269   :  { %v8831_v18 = vmul.f32 -1.442695, %v2195_v23  ;;  %v2545_v25 = vadd.f32 1.0, %v9298_v48  ;;  %9313 = vpow2.f32 %v8830_v0 }
 0x26a   :  { %v9300_v3 = vpop.eup %9299  ;;  %v2198_v24 = vpop.xlane.xlu0 %2197  ;;  %9315 = vrcp.f32 %v2543_v21 }
 0x26b   :  { %v8832_v37 = vmul.f32 -1.442695, %v2198_v24  ;;  %v2546_v4 = vadd.f32 1.0, %v9300_v3  ;;  %9317 = vpow2.f32 %v8831_v18 }
 0x26c   :  { %v9302_v27 = vpop.eup %9301  ;;  %v2201_v43 = vpop.xlane.xlu1 %2200  ;;  %9319 = vrcp.f32 %v2545_v25 }
 0x26d   :  { %v8833_v32 = vmul.f32 -1.442695, %v2201_v43  ;;  %v2547_v59 = vadd.f32 1.0, %v9302_v27  ;;  %9321 = vpow2.f32 %v8832_v37 }
 0x26e   :  { %v9304_v30 = vpop.eup %9303  ;;  %v2204_v51 = vpop.xlane.xlu0 %2203  ;;  %9323 = vrcp.f32 %v2546_v4 }
 0x26f   :  { %v2548_v36 = vadd.f32 1.0, %v9304_v30  ;;  %v8834_v50 = vmul.f32 -1.442695, %v2204_v51  ;;  %9325 = vpow2.f32 %v8833_v32 }
 0x270   :  { %v9306_v6 = vpop.eup %9305  ;;  %v2207_v35 = vpop.xlane.xlu1 %2206  ;;  %9327 = vrcp.f32 %v2547_v59 }
 0x271   :  { %v2549_v41 = vadd.f32 1.0, %v9306_v6  ;;  %9329 = vrcp.f32 %v2548_v36  ;;  %v8835_v20 = vmul.f32 -1.442695, %v2207_v35 }
 0x272   :  { %v9308_v9 = vpop.eup %9307  ;;  %v2210_v39 = vpop.xlane.xlu0 %2209  ;;  %9331 = vpow2.f32 %v8834_v50 }
 0x273   :  { %v9310_v54 = vpop.eup %9309  ;;  %v2896_v11 = vrot.slane %v9308_v9, %v10730_v33  ;;  %v2900_v12 = vrot.slane %v9308_v9, %v10733_v22  ;;  %v2904_v44 = vrot.slane %v9308_v9, %v10736_v29  ;;  %v2908_v60 = vrot.slane %v9308_v9, %v10739_v28 }
 0x274   :  { %v9312_v52 = vpop.eup %9311  ;;  %v2213_v61 = vpop.xlane.xlu1 %2212  ;;  %v8836_v62 = vmul.f32 -1.442695, %v2210_v39  ;;  %v2912_v45 = vrot.slane %v9308_v9, %v10742_v38  ;;  %v2550_v26 = vadd.f32 1.0, %v9310_v54  ;;  %v2916_v34 = vrot.slane %v9308_v9, %v10745_v40 }
 0x275   :  { %v2920_v16 = vrot.slane %v9308_v9, %v10748_v46  ;;  %v2924_v49 = vrot.slane %v9308_v9, %v10751_v42  ;;  %9333 = vrcp.f32 %v2549_v41  ;;  %v2551_v2 = vadd.f32 1.0, %v9312_v52 }
 0x276   :  { %v2216_v47 = vpop.xlane.xlu0 %2215  ;;  %v4992_v7 = vcombine.low %v2896_v11, %v2900_v12  ;;  %v4993_v63 = vcombine.low %v2904_v44, %v2908_v60  ;;  %9335 = vpow2.f32 %v8835_v20  ;;  %v8837_v53 = vmul.f32 -1.442695, %v2213_v61  ;;  %v9314_v55 = vpop.eup %9313 }
 0x277   :  { %v4994_v17 = vcombine.low %v2912_v45, %v2916_v34  ;;  %v4995_v19 = vcombine.low %v2920_v16, %v2924_v49  ;;  %9337 = vpow2.f32 %v8836_v62  ;;  %v9316_v13 = vpop.eup %9315  ;;  %v8838_v3 = vmul.f32 -1.442695, %v2216_v47 }
 0x278   :  { %v2219_v56 = vpop.xlane.xlu1 %2218  ;;  %v5002_v57 = vrot.slane %v4992_v7, %v10759_v14  ;;  %v5009_v58 = vrot.slane %v4993_v63, %v10759_v14  ;;  %9339 = vrcp.f32 %v2550_v26  ;;  %v9318_v21 = vpop.eup %9317  ;;  %v2552_v25 = vadd.f32 1.0, %v9314_v55 }
 0x279   :  { %v5016_v0 = vrot.slane %v4994_v17, %v10759_v14  ;;  %v5023_v23 = vrot.slane %v4995_v19, %v10759_v14  ;;  %9341 = vrcp.f32 %v2551_v2  ;;  %v10768_v24 = vpop.eup %9319  ;;  %v8839_v43 = vmul.f32 -1.442695, %v2219_v56 }
 0x27a   :  { %v2222_v48 = vpop.xlane.xlu0 %2221  ;;  %v5024_v18 = vcombine.low %v5002_v57, %v5009_v58  ;;  %9343 = vpow2.f32 %v8837_v53  ;;  %v9322_v37 = vpop.eup %9321  ;;  %v2864_v5 = vrot.slane %v9316_v13, %v10730_v33  ;;  %v2868_v31 = vrot.slane %v9316_v13, %v10733_v22 }
 0x27b   :  { %v5025_v27 = vcombine.low %v5016_v0, %v5023_v23  ;;  %v10773_v30 = vpop.eup %9323  ;;  %v2553_v32 = vadd.f32 1.0, %v9318_v21  ;;  %v2872_v6 = vrot.slane %v9316_v13, %v10736_v29  ;;  %v2876_v36 = vrot.slane %v9316_v13, %v10739_v28 }
 0x27c   :  { %v5032_v4 = vrot.slane %v5024_v18, %v10759_v14  ;;  %v2225_v51 = vpop.xlane.xlu1 %2224  ;;  %v9326_v35 = vpop.eup %9325  ;;  %9345 = vpow2.f32 %v8838_v3  ;;  %v8840_v50 = vmul.f32 -1.442695, %v2222_v48  ;;  %v2880_v8 = vrot.slane %v9316_v13, %v10742_v38 }
 0x27d   :  { %v5039_v59 = vrot.slane %v5025_v27, %v10759_v14  ;;  %v2884_v9 = vrot.slane %v9316_v13, %v10745_v40  ;;  %v10780_v39 = vpop.eup %9327  ;;  %9347 = vrcp.f32 %v2552_v25  ;;  %v2554_v54 = vadd.f32 1.0, %v9322_v37 }
 0x27e   :  { %v2228_v41 = vpop.xlane.xlu0 %2227  ;;  %v2888_v12 = vrot.slane %v9316_v13, %v10748_v46  ;;  %v10783_v52 = vpop.eup %9329  ;;  %9349 = vpow2.f32 %v8839_v43  ;;  %v8841_v20 = vmul.f32 -1.442695, %v2225_v51  ;;  %v2892_v61 = vrot.slane %v9316_v13, %v10751_v42 }
 0x27f   :  { %v5040_v11 = vcombine.low %v5032_v4, %v5039_v59  ;;  %v4943_v44 = vcombine.low %v2864_v5, %v2868_v31  ;;  %v9332_v60 = vpop.eup %9331  ;;  %9351 = vrcp.f32 %v2553_v32  ;;  %v2555_v62 = vadd.f32 1.0, %v9326_v35 }
 0x280   :  { %v4944_v45 = vcombine.low %v2872_v6, %v2876_v36  ;;  %v4945_v26 = vcombine.low %v2880_v8, %v2884_v9  ;;  %9353 = vpow2.f32 %v8840_v50  ;;  %v8842_v47 = vmul.f32 -1.442695, %v2228_v41  ;;  %v2231_v49 = vpop.xlane.xlu1 %2230 }
 0x281   :  { %7991 = vperm.xlu1 %9292, %v5040_v11   ;;  %v4946_v34 = vcombine.low %v2888_v12, %v2892_v61  ;;  %9355 = vrcp.f32 %v2554_v54  ;;  %v4953_v2 = vrot.slane %v4943_v44, %v10759_v14  ;;  %v2556_v56 = vadd.f32 1.0, %v9332_v60 }
 0x282   :  { %v10786_v16 = vpop.eup %9333  ;;  %v4960_v7 = vrot.slane %v4944_v45, %v10759_v14  ;;  %v4967_v63 = vrot.slane %v4945_v26, %v10759_v14  ;;  %9357 = vpow2.f32 %v8841_v20  ;;  %v2928_v57 = vrot.slane %v10768_v24, %v10730_v33  ;;  %v2234_v18 = vpop.xlane.xlu0 %2233 }
 0x283   :  { %v9336_v53 = vpop.eup %9335  ;;  %v4974_v17 = vrot.slane %v4946_v34, %v10759_v14  ;;  %9359 = vrcp.f32 %v2555_v62  ;;  %v2932_v58 = vrot.slane %v10768_v24, %v10733_v22  ;;  %v8843_v48 = vmul.f32 -1.442695, %v2231_v49 }
 0x284   :  { %v9338_v19 = vpop.eup %9337  ;;  %v4975_v55 = vcombine.low %v4953_v2, %v4960_v7  ;;  %9361 = vpow2.f32 %v8842_v47  ;;  %v2936_v23 = vrot.slane %v10768_v24, %v10736_v29  ;;  %v2557_v3 = vadd.f32 1.0, %v9336_v53  ;;  %v2237_v32 = vpop.xlane.xlu1 %2236 }
 0x285   :  { %v10796_v13 = vpop.eup %9339  ;;  %v4976_v0 = vcombine.low %v4967_v63, %v4974_v17  ;;  %v2940_v27 = vrot.slane %v10768_v24, %v10739_v28  ;;  %v2944_v37 = vrot.slane %v10768_v24, %v10742_v38  ;;  %9363 = vrcp.f32 %v2556_v56 }
 0x286   :  { %v10800_v21 = vpop.eup %9341  ;;  %v4983_v25 = vrot.slane %v4975_v55, %v10759_v14  ;;  %v2558_v4 = vadd.f32 1.0, %v9338_v19  ;;  %v2948_v31 = vrot.slane %v10768_v24, %v10745_v40  ;;  %v2952_v51 = vrot.slane %v10768_v24, %v10748_v46 }
 0x287   :  { %v9344_v43 = vpop.eup %9343  ;;  %v4990_v5 = vrot.slane %v4976_v0, %v10759_v14  ;;  %v2956_v59 = vrot.slane %v10768_v24, %v10751_v42  ;;  %v5041_v6 = vcombine.low %v2928_v57, %v2932_v58  ;;  %v5042_v36 = vcombine.low %v2936_v23, %v2940_v27 }
 0x288   :  { %9365 = vpow2.f32 %v8843_v48  ;;  %v8844_v35 = vmul.f32 -1.442695, %v2234_v18  ;;  %v5043_v8 = vcombine.low %v2944_v37, %v2948_v31  ;;  %v2559_v20 = vadd.f32 1.0, %v9344_v43 }
 0x289   :  { %v4991_v50 = vcombine.low %v4983_v25, %v4990_v5  ;;  %v9346_v9 = vpop.eup %9345  ;;  %9367 = vrcp.f32 %v2557_v3  ;;  %v5044_v54 = vcombine.low %v2952_v51, %v2956_v59  ;;  %v5051_v41 = vrot.slane %v5041_v6, %v10759_v14 }
 0x28a   :  { %v5058_v11 = vrot.slane %v5042_v36, %v10759_v14  ;;  %v10816_v12 = vpop.eup %9347  ;;  %9369 = vrcp.f32 %v2558_v4  ;;  %v8845_v61 = vmul.f32 -1.442695, %v2237_v32  ;;  %v5065_v24 = vrot.slane %v5043_v8, %v10759_v14  ;;  %v2240_v4 = vpop.xlane.xlu0 %2239 }
 0x28b   :  { %7988 = vperm.xlu1 %9292, %v4991_v50   ;;  %v9350_v44 = vpop.eup %9349  ;;  %v5072_v60 = vrot.slane %v5044_v54, %v10759_v14  ;;  %v2960_v45 = vrot.slane %v10773_v30, %v10730_v33  ;;  %v2964_v26 = vrot.slane %v10773_v30, %v10733_v22  ;;  %v2560_v34 = vadd.f32 1.0, %v9346_v9 }
 0x28c   :  { %v5073_v62 = vcombine.low %v5051_v41, %v5058_v11  ;;  %v10824_v47 = vpop.eup %9351  ;;  %9371 = vpow2.f32 %v8844_v35  ;;  %v2968_v49 = vrot.slane %v10773_v30, %v10736_v29  ;;  %v2972_v2 = vrot.slane %v10773_v30, %v10739_v28 }
 0x28d   :  { %v9354_v7 = vpop.eup %9353  ;;  %v5074_v63 = vcombine.low %v5065_v24, %v5072_v60  ;;  %v2976_v56 = vrot.slane %v10773_v30, %v10742_v38  ;;  %v2980_v17 = vrot.slane %v10773_v30, %v10745_v40  ;;  %v2561_v55 = vadd.f32 1.0, %v9350_v44 }
 0x28e   :  { %v5081_v53 = vrot.slane %v5073_v62, %v10759_v14  ;;  %v10835_v19 = vpop.eup %9355  ;;  %9373 = vpow2.f32 %v8845_v61  ;;  %v2984_v57 = vrot.slane %v10773_v30, %v10748_v46  ;;  %v2988_v58 = vrot.slane %v10773_v30, %v10751_v42 }
 0x28f   :  { %v9358_v48 = vpop.eup %9357  ;;  %v5088_v0 = vrot.slane %v5074_v63, %v10759_v14  ;;  %v5090_v23 = vcombine.low %v2960_v45, %v2964_v26  ;;  %v5091_v3 = vcombine.low %v2968_v49, %v2972_v2  ;;  %v5092_v18 = vcombine.low %v2976_v56, %v2980_v17 }
 0x290   :  { %v10842_v25 = vpop.eup %9359  ;;  %9375 = vrcp.f32 %v2559_v20  ;;  %v5093_v27 = vcombine.low %v2984_v57, %v2988_v58  ;;  %v2562_v32 = vadd.f32 1.0, %v9354_v7  ;;  %v2992_v59 = vrot.slane %v10780_v39, %v10730_v33 }
 0x291   :  { %v9362_v37 = vpop.eup %9361  ;;  %9377 = vrcp.f32 %v2560_v34  ;;  %v5089_v43 = vcombine.low %v5081_v53, %v5088_v0  ;;  %v5100_v5 = vrot.slane %v5090_v23, %v10759_v14  ;;  %v5107_v31 = vrot.slane %v5091_v3, %v10759_v14 }
 0x292   :  { %v5114_v30 = vrot.slane %v5092_v18, %v10759_v14  ;;  %v5121_v51 = vrot.slane %v5093_v27, %v10759_v14  ;;  %v10850_v6 = vpop.eup %9363  ;;  %9379 = vrcp.f32 %v2561_v55  ;;  %v2996_v35 = vrot.slane %v10780_v39, %v10733_v22 }
 0x293   :  { %7994 = vperm.xlu0 %9291, %v5089_v43   ;;  %v5122_v36 = vcombine.low %v5100_v5, %v5107_v31  ;;  %v3000_v50 = vrot.slane %v10780_v39, %v10736_v29  ;;  %v8846_v8 = vmul.f32 -1.442695, %v2240_v4  ;;  %v3004_v54 = vrot.slane %v10780_v39, %v10739_v28 }
 0x294   :  { %v5123_v9 = vcombine.low %v5114_v30, %v5121_v51  ;;  %v3008_v41 = vrot.slane %v10780_v39, %v10742_v38  ;;  %v3012_v61 = vrot.slane %v10780_v39, %v10745_v40  ;;  %v3016_v24 = vrot.slane %v10780_v39, %v10748_v46 }
 0x295   :  { %v9366_v11 = vpop.eup %9365  ;;  %v5130_v20 = vrot.slane %v5122_v36, %v10759_v14  ;;  %v3020_v44 = vrot.slane %v10780_v39, %v10751_v42  ;;  %9381 = vrcp.f32 %v2562_v32  ;;  %v5139_v45 = vcombine.low %v2992_v59, %v2996_v35 }
 0x296   :  { %v10867_v60 = vpop.eup %9367  ;;  %v5137_v62 = vrot.slane %v5123_v9, %v10759_v14  ;;  %v5140_v26 = vcombine.low %v3000_v50, %v3004_v54  ;;  %v2563_v49 = vadd.f32 1.0, %v9358_v48  ;;  %v5141_v2 = vcombine.low %v3008_v41, %v3012_v61 }
 0x297   :  { %v10870_v34 = vpop.eup %9369  ;;  %v5142_v7 = vcombine.low %v3016_v24, %v3020_v44  ;;  %v3024_v63 = vrot.slane %v10783_v52, %v10730_v33  ;;  %v5149_v56 = vrot.slane %v5139_v45, %v10759_v14  ;;  %v3028_v17 = vrot.slane %v10783_v52, %v10733_v22 }
 0x298   :  { %v5138_v53 = vcombine.low %v5130_v20, %v5137_v62  ;;  %v5156_v39 = vrot.slane %v5140_v26, %v10759_v14  ;;  %9383 = vpow2.f32 %v8846_v8  ;;  %v5163_v57 = vrot.slane %v5141_v2, %v10759_v14  ;;  %v2243_v62 = vpop.xlane.xlu1 %2242 }
 0x299   :  { %v9372_v55 = vpop.eup %9371  ;;  %v5170_v58 = vrot.slane %v5142_v7, %v10759_v14  ;;  %v3032_v48 = vrot.slane %v10783_v52, %v10736_v29  ;;  %v3036_v23 = vrot.slane %v10783_v52, %v10739_v28  ;;  %v3040_v3 = vrot.slane %v10783_v52, %v10742_v38 }
 0x29a   :  { %7997 = vperm.xlu1 %9292, %v5138_v53   ;;  %v5171_v0 = vcombine.low %v5149_v56, %v5156_v39  ;;  %v3044_v18 = vrot.slane %v10783_v52, %v10745_v40  ;;  %v2564_v43 = vadd.f32 1.0, %v9362_v37  ;;  %v3048_v5 = vrot.slane %v10783_v52, %v10748_v46 }
 0x29b   :  { %v9374_v27 = vpop.eup %9373  ;;  %v5172_v4 = vcombine.low %v5163_v57, %v5170_v58  ;;  %v3052_v31 = vrot.slane %v10783_v52, %v10751_v42  ;;  %v5188_v30 = vcombine.low %v3024_v63, %v3028_v17  ;;  %v5189_v51 = vcombine.low %v3032_v48, %v3036_v23 }
 0x29c   :  { %v5179_v32 = vrot.slane %v5171_v0, %v10759_v14  ;;  %v5190_v59 = vcombine.low %v3040_v3, %v3044_v18  ;;  %v2565_v35 = vadd.f32 1.0, %v9366_v11  ;;  %v3056_v37 = vrot.slane %v10786_v16, %v10730_v33 }
 0x29d   :  { %v10893_v36 = vpop.eup %9375  ;;  %v5186_v50 = vrot.slane %v5172_v4, %v10759_v14  ;;  %v5191_v8 = vcombine.low %v3048_v5, %v3052_v31  ;;  %v5198_v54 = vrot.slane %v5188_v30, %v10759_v14  ;;  %v5205_v52 = vrot.slane %v5189_v51, %v10759_v14 }
 0x29e   :  { %v10898_v9 = vpop.eup %9377  ;;  %v5212_v41 = vrot.slane %v5190_v59, %v10759_v14  ;;  %v3060_v20 = vrot.slane %v10786_v16, %v10733_v22  ;;  %9385 = vrcp.f32 %v2563_v49  ;;  %v3064_v24 = vrot.slane %v10786_v16, %v10736_v29 }
 0x29f   :  { %v5187_v61 = vcombine.low %v5179_v32, %v5186_v50  ;;  %v5219_v11 = vrot.slane %v5191_v8, %v10759_v14  ;;  %v10908_v44 = vpop.eup %9379  ;;  %9387 = vrcp.f32 %v2564_v43  ;;  %v5220_v45 = vcombine.low %v5198_v54, %v5205_v52 }
 0x2a0   :  { %v3068_v26 = vrot.slane %v10786_v16, %v10739_v28  ;;  %v3072_v2 = vrot.slane %v10786_v16, %v10742_v38  ;;  %v3076_v49 = vrot.slane %v10786_v16, %v10745_v40  ;;  %v3080_v63 = vrot.slane %v10786_v16, %v10748_v46 }
 0x2a1   :  { %8000 = vperm.xlu0 %9291, %v5187_v61   ;;  %v5221_v7 = vcombine.low %v5212_v41, %v5219_v11  ;;  %v3084_v53 = vrot.slane %v10786_v16, %v10751_v42  ;;  %9389 = vrcp.f32 %v2565_v35  ;;  %v5228_v56 = vrot.slane %v5220_v45, %v10759_v14 }
 0x2a2   :  { %v5237_v39 = vcombine.low %v3056_v37, %v3060_v20  ;;  %v5238_v17 = vcombine.low %v3064_v24, %v3068_v26  ;;  %v10921_v57 = vpop.eup %9381  ;;  %v8847_v58 = vmul.f32 -1.442695, %v2243_v62  ;;  %v5239_v0 = vcombine.low %v3072_v2, %v3076_v49 }
 0x2a3   :  { %v5235_v48 = vrot.slane %v5221_v7, %v10759_v14  ;;  %v5240_v23 = vcombine.low %v3080_v63, %v3084_v53  ;;  %v3088_v43 = vrot.slane %v10796_v13, %v10730_v33  ;;  %v3092_v16 = vrot.slane %v10796_v13, %v10733_v22 }
 0x2a4   :  { %v5247_v3 = vrot.slane %v5237_v39, %v10759_v14  ;;  %v5254_v18 = vrot.slane %v5238_v17, %v10759_v14  ;;  %v2566_v4 = vadd.f32 1.0, %v9372_v55  ;;  %v5261_v31 = vrot.slane %v5239_v0, %v10759_v14 }
 0x2a5   :  { %v5236_v5 = vcombine.low %v5228_v56, %v5235_v48  ;;  %v5268_v32 = vrot.slane %v5240_v23, %v10759_v14  ;;  %v10932_v30 = vpop.eup %9383  ;;  %v2567_v51 = vadd.f32 1.0, %v9374_v27  ;;  %v3096_v35 = vrot.slane %v10796_v13, %v10736_v29  ;;  %v2246_v27 = vpop.xlane.xlu0 %2245 }
 0x2a6   :  { %v5269_v59 = vcombine.low %v5247_v3, %v5254_v18  ;;  %v3100_v50 = vrot.slane %v10796_v13, %v10739_v28  ;;  %v3104_v55 = vrot.slane %v10796_v13, %v10742_v38  ;;  %v3108_v37 = vrot.slane %v10796_v13, %v10745_v40  ;;  %v2249_v18 = vpop.xlane.xlu1 %2248 }
 0x2a7   :  { %8003 = vperm.xlu1 %9292, %v5236_v5   ;;  %v5270_v8 = vcombine.low %v5261_v31, %v5268_v32  ;;  %v3112_v54 = vrot.slane %v10796_v13, %v10748_v46  ;;  %9391 = vpow2.f32 %v8847_v58  ;;  %v3116_v41 = vrot.slane %v10796_v13, %v10751_v42 }
 0x2a8   :  { %v5277_v52 = vrot.slane %v5269_v59, %v10759_v14  ;;  %v5286_v20 = vcombine.low %v3088_v43, %v3092_v16  ;;  %9393 = vrcp.f32 %v2566_v4  ;;  %v5287_v11 = vcombine.low %v3096_v35, %v3100_v50 }
 0x2a9   :  { %v5284_v61 = vrot.slane %v5270_v8, %v10759_v14  ;;  %v5288_v24 = vcombine.low %v3104_v55, %v3108_v37  ;;  %v5289_v62 = vcombine.low %v3112_v54, %v3116_v41  ;;  %v3120_v26 = vrot.slane %v10800_v21, %v10730_v33  ;;  %v2252_v59 = vpop.xlane.xlu0 %2251 }
 0x2aa   :  { %v5296_v45 = vrot.slane %v5286_v20, %v10759_v14  ;;  %v3124_v2 = vrot.slane %v10800_v21, %v10733_v22  ;;  %v8848_v7 = vmul.f32 -1.442695, %v2246_v27  ;;  %v5303_v63 = vrot.slane %v5287_v11, %v10759_v14 }
 0x2ab   :  { %v5285_v49 = vcombine.low %v5277_v52, %v5284_v61  ;;  %v5310_v13 = vrot.slane %v5288_v24, %v10759_v14  ;;  %v10955_v53 = vpop.eup %9385  ;;  %v5317_v56 = vrot.slane %v5289_v62, %v10759_v14  ;;  %v3128_v39 = vrot.slane %v10800_v21, %v10736_v29 }
 0x2ac   :  { %v3132_v17 = vrot.slane %v10800_v21, %v10739_v28  ;;  %v3136_v58 = vrot.slane %v10800_v21, %v10742_v38  ;;  %v10964_v48 = vpop.eup %9387  ;;  %9395 = vrcp.f32 %v2567_v51  ;;  %v5318_v0 = vcombine.low %v5296_v45, %v5303_v63 }
 0x2ad   :  { %8006 = vperm.xlu0 %9291, %v5285_v49   ;;  %v3140_v23 = vrot.slane %v10800_v21, %v10745_v40  ;;  %v3144_v3 = vrot.slane %v10800_v21, %v10748_v46  ;;  %v5319_v43 = vcombine.low %v5310_v13, %v5317_v56  ;;  %v3148_v16 = vrot.slane %v10800_v21, %v10751_v42 }
 0x2ae   :  { %v5335_v4 = vcombine.low %v3120_v26, %v3124_v2  ;;  %v5336_v5 = vcombine.low %v3128_v39, %v3132_v17  ;;  %v10972_v31 = vpop.eup %9389  ;;  %9397 = vpow2.f32 %v8848_v7  ;;  %v5326_v32 = vrot.slane %v5318_v0, %v10759_v14  ;;  %v2255_v0 = vpop.xlane.xlu1 %2254 }
 0x2af   :  { %v5337_v51 = vcombine.low %v3136_v58, %v3140_v23  ;;  %v5333_v35 = vrot.slane %v5319_v43, %v10759_v14  ;;  %v5338_v50 = vcombine.low %v3144_v3, %v3148_v16  ;;  %v8849_v37 = vmul.f32 -1.442695, %v2249_v18 }
 0x2b0   :  { %v5345_v8 = vrot.slane %v5335_v4, %v10759_v14  ;;  %v5352_v55 = vrot.slane %v5336_v5, %v10759_v14  ;;  %v3152_v21 = vrot.slane %v10816_v12, %v10730_v33  ;;  %v3156_v27 = vrot.slane %v10816_v12, %v10733_v22 }
 0x2b1   :  { %v5359_v54 = vrot.slane %v5337_v51, %v10759_v14  ;;  %v5334_v52 = vcombine.low %v5326_v32, %v5333_v35  ;;  %v5366_v41 = vrot.slane %v5338_v50, %v10759_v14  ;;  %v3160_v61 = vrot.slane %v10816_v12, %v10736_v29 }
 0x2b2   :  { %v5367_v20 = vcombine.low %v5345_v8, %v5352_v55  ;;  %v8850_v11 = vmul.f32 -1.442695, %v2252_v59  ;;  %v3164_v24 = vrot.slane %v10816_v12, %v10739_v28  ;;  %v3168_v62 = vrot.slane %v10816_v12, %v10742_v38 }
 0x2b3   :  { %v3172_v45 = vrot.slane %v10816_v12, %v10745_v40  ;;  %8009 = vperm.xlu1 %9292, %v5334_v52   ;;  %v5368_v26 = vcombine.low %v5359_v54, %v5366_v41  ;;  %v3176_v7 = vrot.slane %v10816_v12, %v10748_v46  ;;  %v3180_v49 = vrot.slane %v10816_v12, %v10751_v42 }
 0x2b4   :  { %v5375_v2 = vrot.slane %v5367_v20, %v10759_v14  ;;  %v9392_v63 = vpop.eup %9391  ;;  %v2568_v13 = vadd.f32 1.0, %v10932_v30  ;;  %v5384_v56 = vcombine.low %v3152_v21, %v3156_v27  ;;  %v5385_v39 = vcombine.low %v3160_v61, %v3164_v24 }
 0x2b5   :  { %v5386_v17 = vcombine.low %v3168_v62, %v3172_v45  ;;  %v10998_v58 = vpop.eup %9393  ;;  %9399 = vpow2.f32 %v8849_v37  ;;  %v5382_v23 = vrot.slane %v5368_v26, %v10759_v14  ;;  %v5387_v3 = vcombine.low %v3176_v7, %v3180_v49 }
 0x2b6   :  { %v3184_v18 = vrot.slane %v10824_v47, %v10730_v33  ;;  %v5394_v43 = vrot.slane %v5384_v56, %v10759_v14  ;;  %v5401_v12 = vrot.slane %v5385_v39, %v10759_v14  ;;  %v3188_v30 = vrot.slane %v10824_v47, %v10733_v22 }
 0x2b7   :  { %v5408_v16 = vrot.slane %v5386_v17, %v10759_v14  ;;  %9401 = vpow2.f32 %v8850_v11  ;;  %v5383_v4 = vcombine.low %v5375_v2, %v5382_v23  ;;  %v5415_v5 = vrot.slane %v5387_v3, %v10759_v14  ;;  %v2258_v11 = vpop.xlane.xlu0 %2257 }
 0x2b8   :  { %v3192_v32 = vrot.slane %v10824_v47, %v10736_v29  ;;  %v8851_v51 = vmul.f32 -1.442695, %v2255_v0  ;;  %v5416_v59 = vcombine.low %v5394_v43, %v5401_v12  ;;  %v3196_v35 = vrot.slane %v10824_v47, %v10739_v28 }
 0x2b9   :  { %v3200_v50 = vrot.slane %v10824_v47, %v10742_v38  ;;  %v11015_v8 = vpop.eup %9395  ;;  %8012 = vperm.xlu0 %9291, %v5383_v4   ;;  %v5417_v55 = vcombine.low %v5408_v16, %v5415_v5  ;;  %v3204_v37 = vrot.slane %v10824_v47, %v10745_v40  ;;  %v3208_v54 = vrot.slane %v10824_v47, %v10748_v46 }
 0x2ba   :  { %v3212_v21 = vrot.slane %v10824_v47, %v10751_v42  ;;  %9403 = vrcp.f32 %v2568_v13  ;;  %v5424_v27 = vrot.slane %v5416_v59, %v10759_v14  ;;  %v5433_v52 = vcombine.low %v3184_v18, %v3188_v30 }
 0x2bb   :  { %v5434_v41 = vcombine.low %v3192_v32, %v3196_v35  ;;  %v9398_v20 = vpop.eup %9397  ;;  %v2569_v61 = vadd.f32 1.0, %v9392_v63  ;;  %v5431_v24 = vrot.slane %v5417_v55, %v10759_v14  ;;  %v5435_v62 = vcombine.low %v3200_v50, %v3204_v37 }
 0x2bc   :  { %v5436_v45 = vcombine.low %v3208_v54, %v3212_v21  ;;  %v5443_v26 = vrot.slane %v5433_v52, %v10759_v14  ;;  %v3216_v7 = vrot.slane %v10835_v19, %v10730_v33  ;;  %v3220_v47 = vrot.slane %v10835_v19, %v10733_v22  ;;  %v2261_v52 = vpop.xlane.xlu1 %2260 }
 0x2bd   :  { %v5450_v2 = vrot.slane %v5434_v41, %v10759_v14  ;;  %9405 = vpow2.f32 %v8851_v51  ;;  %v5432_v49 = vcombine.low %v5424_v27, %v5431_v24  ;;  %v5457_v13 = vrot.slane %v5435_v62, %v10759_v14 }
 0x2be   :  { %v5464_v63 = vrot.slane %v5436_v45, %v10759_v14  ;;  %v8852_v56 = vmul.f32 -1.442695, %v2258_v11  ;;  %v3224_v17 = vrot.slane %v10835_v19, %v10736_v29  ;;  %v3228_v0 = vrot.slane %v10835_v19, %v10739_v28 }
 0x2bf   :  { %v5465_v39 = vcombine.low %v5443_v26, %v5450_v2  ;;  %8015 = vperm.xlu1 %9292, %v5432_v49   ;;  %v3232_v3 = vrot.slane %v10835_v19, %v10742_v38  ;;  %v3236_v18 = vrot.slane %v10835_v19, %v10745_v40  ;;  %v3240_v43 = vrot.slane %v10835_v19, %v10748_v46 }
 0x2c0   :  { %v5466_v23 = vcombine.low %v5457_v13, %v5464_v63  ;;  %9407 = vrcp.f32 %v2569_v61  ;;  %v3244_v16 = vrot.slane %v10835_v19, %v10751_v42  ;;  %v5482_v30 = vcombine.low %v3216_v7, %v3220_v47 }
 0x2c1   :  { %v5473_v12 = vrot.slane %v5465_v39, %v10759_v14  ;;  %v2570_v4 = vadd.f32 1.0, %v9398_v20  ;;  %v5483_v32 = vcombine.low %v3224_v17, %v3228_v0  ;;  %v5484_v51 = vcombine.low %v3232_v3, %v3236_v18 }
 0x2c2   :  { %v5480_v5 = vrot.slane %v5466_v23, %v10759_v14  ;;  %v9400_v59 = vpop.eup %9399  ;;  %v5485_v35 = vcombine.low %v3240_v43, %v3244_v16  ;;  %v5492_v50 = vrot.slane %v5482_v30, %v10759_v14  ;;  %v3248_v55 = vrot.slane %v10842_v25, %v10730_v33 }
 0x2c3   :  { %v3252_v37 = vrot.slane %v10842_v25, %v10733_v22  ;;  %9409 = vpow2.f32 %v8852_v56  ;;  %v5499_v19 = vrot.slane %v5483_v32, %v10759_v14  ;;  %v5506_v21 = vrot.slane %v5484_v51, %v10759_v14 }
 0x2c4   :  { %v5481_v54 = vcombine.low %v5473_v12, %v5480_v5  ;;  %v9402_v27 = vpop.eup %9401  ;;  %v5513_v41 = vrot.slane %v5485_v35, %v10759_v14  ;;  %v3256_v20 = vrot.slane %v10842_v25, %v10736_v29  ;;  %v3260_v61 = vrot.slane %v10842_v25, %v10739_v28 }
 0x2c5   :  { %v3264_v11 = vrot.slane %v10842_v25, %v10742_v38  ;;  %9411 = vrcp.f32 %v2570_v4  ;;  %v5514_v24 = vcombine.low %v5492_v50, %v5499_v19  ;;  %v3268_v62 = vrot.slane %v10842_v25, %v10745_v40 }
 0x2c6   :  { %8018 = vperm.xlu0 %9291, %v5481_v54   ;;  %v3272_v45 = vrot.slane %v10842_v25, %v10748_v46  ;;  %v5515_v26 = vcombine.low %v5506_v21, %v5513_v41  ;;  %v3276_v2 = vrot.slane %v10842_v25, %v10751_v42  ;;  %v5531_v7 = vcombine.low %v3248_v55, %v3252_v37 }
 0x2c7   :  { %v5532_v47 = vcombine.low %v3256_v20, %v3260_v61  ;;  %v11067_v49 = vpop.eup %9403  ;;  %v2571_v13 = vadd.f32 1.0, %v9400_v59  ;;  %v8853_v63 = vmul.f32 -1.442695, %v2261_v52  ;;  %v5522_v56 = vrot.slane %v5514_v24, %v10759_v14 }
 0x2c8   :  { %v5533_v39 = vcombine.low %v3264_v11, %v3268_v62  ;;  %v5529_v17 = vrot.slane %v5515_v26, %v10759_v14  ;;  %v5534_v0 = vcombine.low %v3272_v45, %v3276_v2  ;;  %v5541_v23 = vrot.slane %v5531_v7, %v10759_v14  ;;  %v2264_v2 = vpop.xlane.xlu0 %2263 }
 0x2c9   :  { %v5548_v3 = vrot.slane %v5532_v47, %v10759_v14  ;;  %v2572_v18 = vadd.f32 1.0, %v9402_v27  ;;  %v3280_v25 = vrot.slane %v10850_v6, %v10730_v33  ;;  %v3284_v12 = vrot.slane %v10850_v6, %v10733_v22 }
 0x2ca   :  { %v5555_v43 = vrot.slane %v5533_v39, %v10759_v14  ;;  %v9406_v16 = vpop.eup %9405  ;;  %v5530_v30 = vcombine.low %v5522_v56, %v5529_v17  ;;  %v5562_v4 = vrot.slane %v5534_v0, %v10759_v14  ;;  %v3288_v32 = vrot.slane %v10850_v6, %v10736_v29 }
 0x2cb   :  { %v5563_v5 = vcombine.low %v5541_v23, %v5548_v3  ;;  %9413 = vpow2.f32 %v8853_v63  ;;  %v3292_v51 = vrot.slane %v10850_v6, %v10739_v28  ;;  %v3296_v59 = vrot.slane %v10850_v6, %v10742_v38 }
 0x2cc   :  { %v3300_v35 = vrot.slane %v10850_v6, %v10745_v40  ;;  %8021 = vperm.xlu1 %9292, %v5530_v30   ;;  %v5564_v50 = vcombine.low %v5555_v43, %v5562_v4  ;;  %v3304_v37 = vrot.slane %v10850_v6, %v10748_v46  ;;  %v3308_v54 = vrot.slane %v10850_v6, %v10751_v42 }
 0x2cd   :  { %v5571_v55 = vrot.slane %v5563_v5, %v10759_v14  ;;  %v11092_v19 = vpop.eup %9407  ;;  %v2573_v21 = vadd.f32 1.0, %v9406_v16  ;;  %v5580_v27 = vcombine.low %v3280_v25, %v3284_v12  ;;  %v5581_v52 = vcombine.low %v3288_v32, %v3292_v51  ;;  %v2267_v25 = vpop.xlane.xlu1 %2266 }
 0x2ce   :  { %v5582_v41 = vcombine.low %v3296_v59, %v3300_v35  ;;  %9415 = vrcp.f32 %v2571_v13  ;;  %v5578_v20 = vrot.slane %v5564_v50, %v10759_v14  ;;  %v5583_v61 = vcombine.low %v3304_v37, %v3308_v54 }
 0x2cf   :  { %v3312_v11 = vrot.slane %v10867_v60, %v10730_v33  ;;  %v5590_v24 = vrot.slane %v5580_v27, %v10759_v14  ;;  %v5597_v62 = vrot.slane %v5581_v52, %v10759_v14  ;;  %v3316_v6 = vrot.slane %v10867_v60, %v10733_v22 }
 0x2d0   :  { %v5604_v45 = vrot.slane %v5582_v41, %v10759_v14  ;;  %v9410_v26 = vpop.eup %9409  ;;  %9417 = vrcp.f32 %v2572_v18  ;;  %v5579_v7 = vcombine.low %v5571_v55, %v5578_v20  ;;  %v5611_v47 = vrot.slane %v5583_v61, %v10759_v14 }
 0x2d1   :  { %v3320_v13 = vrot.slane %v10867_v60, %v10736_v29  ;;  %9419 = vrcp.f32 %v2573_v21  ;;  %v5612_v63 = vcombine.low %v5590_v24, %v5597_v62  ;;  %v3324_v56 = vrot.slane %v10867_v60, %v10739_v28 }
 0x2d2   :  { %v3328_v39 = vrot.slane %v10867_v60, %v10742_v38  ;;  %v11109_v17 = vpop.eup %9411  ;;  %8024 = vperm.xlu0 %9291, %v5579_v7   ;;  %v5613_v0 = vcombine.low %v5604_v45, %v5611_v47  ;;  %v3332_v23 = vrot.slane %v10867_v60, %v10745_v40  ;;  %v3336_v3 = vrot.slane %v10867_v60, %v10748_v46 }
 0x2d3   :  { %v3340_v18 = vrot.slane %v10867_v60, %v10751_v42  ;;  %v8854_v43 = vmul.f32 -1.442695, %v2264_v2  ;;  %v5620_v12 = vrot.slane %v5612_v63, %v10759_v14  ;;  %v5629_v16 = vcombine.low %v3312_v11, %v3316_v6  ;;  %v2270_v63 = vpop.xlane.xlu0 %2269 }
 0x2d4   :  { %v5630_v30 = vcombine.low %v3320_v13, %v3324_v56  ;;  %v2574_v4 = vadd.f32 1.0, %v9410_v26  ;;  %v5627_v5 = vrot.slane %v5613_v0, %v10759_v14  ;;  %v5631_v32 = vcombine.low %v3328_v39, %v3332_v23 }
 0x2d5   :  { %v5632_v51 = vcombine.low %v3336_v3, %v3340_v18  ;;  %v5639_v59 = vrot.slane %v5629_v16, %v10759_v14  ;;  %v3344_v50 = vrot.slane %v10870_v34, %v10730_v33  ;;  %v3348_v60 = vrot.slane %v10870_v34, %v10733_v22 }
 0x2d6   :  { %v5646_v35 = vrot.slane %v5630_v30, %v10759_v14  ;;  %v8855_v55 = vmul.f32 -1.442695, %v2267_v25  ;;  %v5628_v37 = vcombine.low %v5620_v12, %v5627_v5  ;;  %v5653_v54 = vrot.slane %v5631_v32, %v10759_v14 }
 0x2d7   :  { %v5660_v21 = vrot.slane %v5632_v51, %v10759_v14  ;;  %9421 = vpow2.f32 %v8854_v43  ;;  %v3352_v52 = vrot.slane %v10870_v34, %v10736_v29  ;;  %v3356_v41 = vrot.slane %v10870_v34, %v10739_v28 }
 0x2d8   :  { %v5661_v27 = vcombine.low %v5639_v59, %v5646_v35  ;;  %v9414_v20 = vpop.eup %9413  ;;  %8027 = vperm.xlu1 %9292, %v5628_v37   ;;  %v3360_v11 = vrot.slane %v10870_v34, %v10742_v38  ;;  %v3364_v24 = vrot.slane %v10870_v34, %v10745_v40  ;;  %v3368_v62 = vrot.slane %v10870_v34, %v10748_v46 }
 0x2d9   :  { %v5662_v61 = vcombine.low %v5653_v54, %v5660_v21  ;;  %9423 = vrcp.f32 %v2574_v4  ;;  %v3372_v6 = vrot.slane %v10870_v34, %v10751_v42  ;;  %v5678_v26 = vcombine.low %v3344_v50, %v3348_v60 }
 0x2da   :  { %v5669_v45 = vrot.slane %v5661_v27, %v10759_v14  ;;  %9425 = vpow2.f32 %v8855_v55  ;;  %v5679_v7 = vcombine.low %v3352_v52, %v3356_v41  ;;  %v5680_v47 = vcombine.low %v3360_v11, %v3364_v24  ;;  %v2273_v27 = vpop.xlane.xlu1 %2272 }
 0x2db   :  { %v5676_v2 = vrot.slane %v5662_v61, %v10759_v14  ;;  %v11141_v13 = vpop.eup %9415  ;;  %v5681_v56 = vcombine.low %v3368_v62, %v3372_v6  ;;  %v5688_v39 = vrot.slane %v5678_v26, %v10759_v14  ;;  %v3376_v0 = vrot.slane %v10893_v36, %v10730_v33  ;;  %v2276_v62 = vpop.xlane.xlu0 %2275 }
 0x2dc   :  { %v3380_v23 = vrot.slane %v10893_v36, %v10733_v22  ;;  %v2575_v3 = vadd.f32 1.0, %v9414_v20  ;;  %v5695_v18 = vrot.slane %v5679_v7, %v10759_v14  ;;  %v5702_v43 = vrot.slane %v5680_v47, %v10759_v14 }
 0x2dd   :  { %v5677_v34 = vcombine.low %v5669_v45, %v5676_v2  ;;  %v11150_v25 = vpop.eup %9417  ;;  %v5709_v12 = vrot.slane %v5681_v56, %v10759_v14  ;;  %v3384_v16 = vrot.slane %v10893_v36, %v10736_v29  ;;  %v3388_v30 = vrot.slane %v10893_v36, %v10739_v28 }
 0x2de   :  { %v3392_v4 = vrot.slane %v10893_v36, %v10742_v38  ;;  %v11159_v5 = vpop.eup %9419  ;;  %v8856_v32 = vmul.f32 -1.442695, %v2270_v63  ;;  %v5710_v51 = vcombine.low %v5688_v39, %v5695_v18  ;;  %v3396_v59 = vrot.slane %v10893_v36, %v10745_v40 }
 0x2df   :  { %8030 = vperm.xlu0 %9291, %v5677_v34   ;;  %v3400_v35 = vrot.slane %v10893_v36, %v10748_v46  ;;  %v5711_v50 = vcombine.low %v5702_v43, %v5709_v12  ;;  %v3404_v60 = vrot.slane %v10893_v36, %v10751_v42  ;;  %v5727_v55 = vcombine.low %v3376_v0, %v3380_v23 }
 0x2e0   :  { %v5728_v37 = vcombine.low %v3384_v16, %v3388_v30  ;;  %9427 = vrcp.f32 %v2575_v3  ;;  %v5718_v54 = vrot.slane %v5710_v51, %v10759_v14  ;;  %v5729_v21 = vcombine.low %v3392_v4, %v3396_v59 }
 0x2e1   :  { %v5725_v52 = vrot.slane %v5711_v50, %v10759_v14  ;;  %v5730_v41 = vcombine.low %v3400_v35, %v3404_v60  ;;  %v5737_v20 = vrot.slane %v5727_v55, %v10759_v14  ;;  %9429 = vpow2.f32 %v8856_v32 }
 0x2e2   :  { %v5744_v61 = vrot.slane %v5728_v37, %v10759_v14  ;;  %v5751_v11 = vrot.slane %v5729_v21, %v10759_v14  ;;  %v3408_v36 = vrot.slane %v10898_v9, %v10730_v33  ;;  %v3412_v24 = vrot.slane %v10898_v9, %v10733_v22 }
 0x2e3   :  { %v5726_v45 = vcombine.low %v5718_v54, %v5725_v52  ;;  %v5758_v6 = vrot.slane %v5730_v41, %v10759_v14  ;;  %v3416_v2 = vrot.slane %v10898_v9, %v10736_v29  ;;  %v8857_v47 = vmul.f32 -1.442695, %v2273_v27 }
 0x2e4   :  { %v5759_v26 = vcombine.low %v5737_v20, %v5744_v61  ;;  %v9422_v7 = vpop.eup %9421  ;;  %v3420_v63 = vrot.slane %v10898_v9, %v10739_v28  ;;  %v3424_v56 = vrot.slane %v10898_v9, %v10742_v38  ;;  %v3428_v39 = vrot.slane %v10898_v9, %v10745_v40 }
 0x2e5   :  { %8033 = vperm.xlu1 %9292, %v5726_v45   ;;  %v5760_v0 = vcombine.low %v5751_v11, %v5758_v6  ;;  %v3432_v3 = vrot.slane %v10898_v9, %v10748_v46  ;;  %v3436_v34 = vrot.slane %v10898_v9, %v10751_v42  ;;  %v8858_v43 = vmul.f32 -1.442695, %v2276_v62 }
 0x2e6   :  { %v5767_v23 = vrot.slane %v5759_v26, %v10759_v14  ;;  %v11190_v18 = vpop.eup %9423  ;;  %v5776_v12 = vcombine.low %v3408_v36, %v3412_v24  ;;  %v5777_v16 = vcombine.low %v3416_v2, %v3420_v63  ;;  %v5778_v30 = vcombine.low %v3424_v56, %v3428_v39  ;;  %v2279_v24 = vpop.xlane.xlu1 %2278 }
 0x2e7   :  { %v9426_v4 = vpop.eup %9425  ;;  %v2576_v32 = vadd.f32 1.0, %v9422_v7  ;;  %v5774_v51 = vrot.slane %v5760_v0, %v10759_v14  ;;  %v5779_v59 = vcombine.low %v3432_v3, %v3436_v34  ;;  %v3440_v35 = vrot.slane %v10908_v44, %v10730_v33  ;;  %v2282_v7 = vpop.xlane.xlu0 %2281 }
 0x2e8   :  { %v5786_v50 = vrot.slane %v5776_v12, %v10759_v14  ;;  %v5793_v60 = vrot.slane %v5777_v16, %v10759_v14  ;;  %v5800_v9 = vrot.slane %v5778_v30, %v10759_v14  ;;  %v3444_v55 = vrot.slane %v10908_v44, %v10733_v22 }
 0x2e9   :  { %9431 = vpow2.f32 %v8857_v47  ;;  %v5775_v37 = vcombine.low %v5767_v23, %v5774_v51  ;;  %v5807_v54 = vrot.slane %v5779_v59, %v10759_v14  ;;  %v3448_v21 = vrot.slane %v10908_v44, %v10736_v29 }
 0x2ea   :  { %9433 = vpow2.f32 %v8858_v43  ;;  %v5808_v27 = vcombine.low %v5786_v50, %v5793_v60  ;;  %v3452_v52 = vrot.slane %v10908_v44, %v10739_v28  ;;  %v3456_v41 = vrot.slane %v10908_v44, %v10742_v38 }
 0x2eb   :  { %8036 = vperm.xlu0 %9291, %v5775_v37   ;;  %v5809_v20 = vcombine.low %v5800_v9, %v5807_v54  ;;  %v3460_v61 = vrot.slane %v10908_v44, %v10745_v40  ;;  %v3464_v11 = vrot.slane %v10908_v44, %v10748_v46  ;;  %v3468_v36 = vrot.slane %v10908_v44, %v10751_v42 }
 0x2ec   :  { %9435 = vrcp.f32 %v2576_v32  ;;  %v5816_v62 = vrot.slane %v5808_v27, %v10759_v14  ;;  %v5825_v45 = vcombine.low %v3440_v35, %v3444_v55  ;;  %v5826_v6 = vcombine.low %v3448_v21, %v3452_v52 }
 0x2ed   :  { %v11214_v26 = vpop.eup %9427  ;;  %v2577_v2 = vadd.f32 1.0, %v9426_v4  ;;  %v5823_v47 = vrot.slane %v5809_v20, %v10759_v14  ;;  %v5827_v63 = vcombine.low %v3456_v41, %v3460_v61  ;;  %v5828_v56 = vcombine.low %v3464_v11, %v3468_v36 }
 0x2ee   :  { %v5835_v39 = vrot.slane %v5825_v45, %v10759_v14  ;;  %v5842_v0 = vrot.slane %v5826_v6, %v10759_v14  ;;  %v3472_v44 = vrot.slane %v10921_v57, %v10730_v33  ;;  %v3476_v23 = vrot.slane %v10921_v57, %v10733_v22  ;;  %v9430_v3 = vpop.eup %9429 }
 0x2ef   :  { %v8859_v34 = vmul.f32 -1.442695, %v2279_v24  ;;  %v5824_v43 = vcombine.low %v5816_v62, %v5823_v47  ;;  %v5849_v12 = vrot.slane %v5827_v63, %v10759_v14  ;;  %v5856_v16 = vrot.slane %v5828_v56, %v10759_v14  ;;  %v2285_v62 = vpop.xlane.xlu1 %2284 }
 0x2f0   :  { %v8860_v30 = vmul.f32 -1.442695, %v2282_v7  ;;  %v5857_v4 = vcombine.low %v5835_v39, %v5842_v0  ;;  %v3480_v32 = vrot.slane %v10921_v57, %v10736_v29  ;;  %v3484_v51 = vrot.slane %v10921_v57, %v10739_v28 }
 0x2f1   :  { %8039 = vperm.xlu1 %9292, %v5824_v43   ;;  %v5858_v59 = vcombine.low %v5849_v12, %v5856_v16  ;;  %v3488_v35 = vrot.slane %v10921_v57, %v10742_v38  ;;  %v3492_v50 = vrot.slane %v10921_v57, %v10745_v40  ;;  %v3496_v60 = vrot.slane %v10921_v57, %v10748_v46 }
 0x2f2   :  { %9437 = vrcp.f32 %v2577_v2  ;;  %v5865_v9 = vrot.slane %v5857_v4, %v10759_v14  ;;  %v3500_v55 = vrot.slane %v10921_v57, %v10751_v42  ;;  %v5874_v37 = vcombine.low %v3472_v44, %v3476_v23 }
 0x2f3   :  { %9439 = vpow2.f32 %v8859_v34  ;;  %v5872_v54 = vrot.slane %v5858_v59, %v10759_v14  ;;  %v5875_v21 = vcombine.low %v3480_v32, %v3484_v51  ;;  %v5876_v27 = vcombine.low %v3488_v35, %v3492_v50 }
 0x2f4   :  { %v5877_v52 = vcombine.low %v3496_v60, %v3500_v55  ;;  %v5884_v41 = vrot.slane %v5874_v37, %v10759_v14  ;;  %v3504_v20 = vrot.slane %v10955_v53, %v10730_v33  ;;  %v3508_v61 = vrot.slane %v10955_v53, %v10733_v22 }
 0x2f5   :  { %9441 = vpow2.f32 %v8860_v30  ;;  %v5873_v11 = vcombine.low %v5865_v9, %v5872_v54  ;;  %v5891_v36 = vrot.slane %v5875_v21, %v10759_v14  ;;  %v5898_v57 = vrot.slane %v5876_v27, %v10759_v14 }
 0x2f6   :  { %v9432_v24 = vpop.eup %9431  ;;  %v5905_v45 = vrot.slane %v5877_v52, %v10759_v14  ;;  %v3512_v6 = vrot.slane %v10955_v53, %v10736_v29  ;;  %v3516_v2 = vrot.slane %v10955_v53, %v10739_v28  ;;  %v3520_v7 = vrot.slane %v10955_v53, %v10742_v38 }
 0x2f7   :  { %v9434_v47 = vpop.eup %9433  ;;  %v2578_v63 = vadd.f32 1.0, %v9430_v3  ;;  %8042 = vperm.xlu0 %9291, %v5873_v11   ;;  %v5906_v56 = vcombine.low %v5884_v41, %v5891_v36  ;;  %v3524_v39 = vrot.slane %v10955_v53, %v10745_v40  ;;  %v3528_v0 = vrot.slane %v10955_v53, %v10748_v46 }
 0x2f8   :  { %v5907_v44 = vcombine.low %v5898_v57, %v5905_v45  ;;  %v3532_v23 = vrot.slane %v10955_v53, %v10751_v42  ;;  %v5923_v34 = vcombine.low %v3504_v20, %v3508_v61  ;;  %v5924_v43 = vcombine.low %v3512_v6, %v3516_v2  ;;  %v2288_v2 = vpop.xlane.xlu0 %2287 }
 0x2f9   :  { %v11259_v12 = vpop.eup %9435  ;;  %v2579_v16 = vadd.f32 1.0, %v9432_v24  ;;  %v8861_v30 = vmul.f32 -1.442695, %v2285_v62  ;;  %v5914_v3 = vrot.slane %v5906_v56, %v10759_v14  ;;  %v5925_v4 = vcombine.low %v3520_v7, %v3524_v39 }
 0x2fa   :  { %v5921_v32 = vrot.slane %v5907_v44, %v10759_v14  ;;  %v5926_v51 = vcombine.low %v3528_v0, %v3532_v23  ;;  %v5933_v59 = vrot.slane %v5923_v34, %v10759_v14  ;;  %v5940_v35 = vrot.slane %v5924_v43, %v10759_v14 }
 0x2fb   :  { %v2580_v50 = vadd.f32 1.0, %v9434_v47  ;;  %v5947_v60 = vrot.slane %v5925_v4, %v10759_v14  ;;  %v3536_v53 = vrot.slane %v10964_v48, %v10730_v33  ;;  %v3540_v9 = vrot.slane %v10964_v48, %v10733_v22 }
 0x2fc   :  { %v5922_v55 = vcombine.low %v5914_v3, %v5921_v32  ;;  %v5954_v37 = vrot.slane %v5926_v51, %v10759_v14  ;;  %v5955_v54 = vcombine.low %v5933_v59, %v5940_v35  ;;  %v3544_v21 = vrot.slane %v10964_v48, %v10736_v29 }
 0x2fd   :  { %9443 = vpow2.f32 %v8861_v30  ;;  %v3548_v27 = vrot.slane %v10964_v48, %v10739_v28  ;;  %v3552_v52 = vrot.slane %v10964_v48, %v10742_v38  ;;  %v3556_v41 = vrot.slane %v10964_v48, %v10745_v40 }
 0x2fe   :  { %8045 = vperm.xlu1 %9292, %v5922_v55   ;;  %v5956_v20 = vcombine.low %v5947_v60, %v5954_v37  ;;  %v5963_v61 = vrot.slane %v5955_v54, %v10759_v14  ;;  %v3560_v11 = vrot.slane %v10964_v48, %v10748_v46  ;;  %v3564_v36 = vrot.slane %v10964_v48, %v10751_v42  ;;  %v2291_v60 = vpop.xlane.xlu1 %2290 }
 0x2ff   :  { %v11284_v57 = vpop.eup %9437  ;;  %9445 = vrcp.f32 %v2578_v63  ;;  %v5972_v24 = vcombine.low %v3536_v53, %v3540_v9  ;;  %v5973_v62 = vcombine.low %v3544_v21, %v3548_v27  ;;  %v5974_v45 = vcombine.low %v3552_v52, %v3556_v41 }
 0x300   :  { %v9440_v6 = vpop.eup %9439  ;;  %9447 = vrcp.f32 %v2579_v16  ;;  %v5970_v7 = vrot.slane %v5956_v20, %v10759_v14  ;;  %v5975_v47 = vcombine.low %v3560_v11, %v3564_v36  ;;  %v3568_v56 = vrot.slane %v10972_v31, %v10730_v33 }
 0x301   :  { %v5982_v39 = vrot.slane %v5972_v24, %v10759_v14  ;;  %v5989_v0 = vrot.slane %v5973_v62, %v10759_v14  ;;  %v5996_v48 = vrot.slane %v5974_v45, %v10759_v14  ;;  %v3572_v63 = vrot.slane %v10972_v31, %v10733_v22 }
 0x302   :  { %v9442_v44 = vpop.eup %9441  ;;  %9449 = vrcp.f32 %v2580_v50  ;;  %v5971_v23 = vcombine.low %v5963_v61, %v5970_v7  ;;  %v6003_v34 = vrot.slane %v5975_v47, %v10759_v14  ;;  %v3576_v43 = vrot.slane %v10972_v31, %v10736_v29 }
 0x303   :  { %v8862_v16 = vmul.f32 -1.442695, %v2288_v2  ;;  %v6004_v30 = vcombine.low %v5982_v39, %v5989_v0  ;;  %v3580_v3 = vrot.slane %v10972_v31, %v10739_v28  ;;  %v3584_v4 = vrot.slane %v10972_v31, %v10742_v38  ;;  %v11327_v39 = vpop.xlane.xlu1 %2296 }
 0x304   :  { %8048 = vperm.xlu0 %9291, %v5971_v23   ;;  %v6005_v32 = vcombine.low %v5996_v48, %v6003_v34  ;;  %v3588_v51 = vrot.slane %v10972_v31, %v10745_v40  ;;  %v3592_v59 = vrot.slane %v10972_v31, %v10748_v46  ;;  %v3596_v35 = vrot.slane %v10972_v31, %v10751_v42  ;;  %v2294_v34 = vpop.xlane.xlu0 %2293 }
 0x305   :  { %v2581_v50 = vadd.f32 1.0, %v9440_v6  ;;  %v6012_v53 = vrot.slane %v6004_v30, %v10759_v14  ;;  %v6021_v9 = vcombine.low %v3568_v56, %v3572_v63  ;;  %v6022_v55 = vcombine.low %v3576_v43, %v3580_v3 }
 0x306   :  { %v2582_v37 = vadd.f32 1.0, %v9442_v44  ;;  %v6019_v54 = vrot.slane %v6005_v32, %v10759_v14  ;;  %v6023_v21 = vcombine.low %v3584_v4, %v3588_v51  ;;  %v6024_v27 = vcombine.low %v3592_v59, %v3596_v35 }
 0x307   :  { %v6031_v52 = vrot.slane %v6021_v9, %v10759_v14  ;;  %v6038_v41 = vrot.slane %v6022_v55, %v10759_v14  ;;  %v3600_v20 = vrot.slane %v10998_v58, %v10730_v33  ;;  %v3604_v31 = vrot.slane %v10998_v58, %v10733_v22 }
 0x308   :  { %9451 = vpow2.f32 %v8862_v16  ;;  %v6020_v61 = vcombine.low %v6012_v53, %v6019_v54  ;;  %v6045_v11 = vrot.slane %v6023_v21, %v10759_v14  ;;  %v6052_v36 = vrot.slane %v6024_v27, %v10759_v14 }
 0x309   :  { %9453 = vrcp.f32 %v2581_v50  ;;  %v6053_v24 = vcombine.low %v6031_v52, %v6038_v41  ;;  %v3608_v62 = vrot.slane %v10998_v58, %v10736_v29  ;;  %v3612_v45 = vrot.slane %v10998_v58, %v10739_v28 }
 0x30a   :  { %v9444_v6 = vpop.eup %9443  ;;  %8051 = vperm.xlu1 %9292, %v6020_v61   ;;  %v6054_v2 = vcombine.low %v6045_v11, %v6052_v36  ;;  %v3616_v7 = vrot.slane %v10998_v58, %v10742_v38  ;;  %v3620_v47 = vrot.slane %v10998_v58, %v10745_v40  ;;  %v3624_v56 = vrot.slane %v10998_v58, %v10748_v46 }
 0x30b   :  { %9455 = vrcp.f32 %v2582_v37  ;;  %v6061_v0 = vrot.slane %v6053_v24, %v10759_v14  ;;  %v3628_v48 = vrot.slane %v10998_v58, %v10751_v42  ;;  %v6070_v63 = vcombine.low %v3600_v20, %v3604_v31  ;;  %v2303_v20 = vpop.xlane.xlu1 %2302  ;;  %v11359_v24 = vpop.xlane.xlu0 %2299 }
 0x30c   :  { %v11332_v44 = vpop.eup %9445  ;;  %v8863_v23 = vmul.f32 -1.442695, %v2291_v60  ;;  %v6068_v43 = vrot.slane %v6054_v2, %v10759_v14  ;;  %v6071_v16 = vcombine.low %v3608_v62, %v3612_v45  ;;  %v6072_v30 = vcombine.low %v3616_v7, %v3620_v47 }
 0x30d   :  { %v11335_v3 = vpop.eup %9447  ;;  %v6073_v4 = vcombine.low %v3624_v56, %v3628_v48  ;;  %v6080_v32 = vrot.slane %v6070_v63, %v10759_v14  ;;  %v3632_v51 = vrot.slane %v11015_v8, %v10730_v33  ;;  %v3636_v58 = vrot.slane %v11015_v8, %v10733_v22 }
 0x30e   :  { %v2583_v59 = vadd.f32 1.0, %v9444_v6  ;;  %v6069_v35 = vcombine.low %v6061_v0, %v6068_v43  ;;  %v6087_v50 = vrot.slane %v6071_v16, %v10759_v14  ;;  %v6094_v60 = vrot.slane %v6072_v30, %v10759_v14 }
 0x30f   :  { %v11344_v53 = vpop.eup %9449  ;;  %v6101_v9 = vrot.slane %v6073_v4, %v10759_v14  ;;  %v3640_v55 = vrot.slane %v11015_v8, %v10736_v29  ;;  %v3644_v37 = vrot.slane %v11015_v8, %v10739_v28  ;;  %v3648_v54 = vrot.slane %v11015_v8, %v10742_v38 }
 0x310   :  { %9457 = vpow2.f32 %v8863_v23  ;;  %8054 = vperm.xlu0 %9291, %v6069_v35   ;;  %v6102_v21 = vcombine.low %v6080_v32, %v6087_v50  ;;  %v3652_v27 = vrot.slane %v11015_v8, %v10745_v40  ;;  %v3656_v52 = vrot.slane %v11015_v8, %v10748_v46 }
 0x311   :  { %v6103_v41 = vcombine.low %v6094_v60, %v6101_v9  ;;  %v3660_v31 = vrot.slane %v11015_v8, %v10751_v42  ;;  %v6119_v61 = vcombine.low %v3632_v51, %v3636_v58  ;;  %v6120_v11 = vcombine.low %v3640_v55, %v3644_v37  ;;  %v2306_v55 = vpop.xlane.xlu0 %2305 }
 0x312   :  { %9459 = vrcp.f32 %v2583_v59  ;;  %v8864_v36 = vmul.f32 -1.442695, %v2294_v34  ;;  %v6110_v62 = vrot.slane %v6102_v21, %v10759_v14  ;;  %v6121_v45 = vcombine.low %v3648_v54, %v3652_v27 }
 0x313   :  { %v6117_v6 = vrot.slane %v6103_v41, %v10759_v14  ;;  %v6122_v2 = vcombine.low %v3656_v52, %v3660_v31  ;;  %v6129_v7 = vrot.slane %v6119_v61, %v10759_v14  ;;  %v6136_v47 = vrot.slane %v6120_v11, %v10759_v14 }
 0x314   :  { %v8867_v56 = vmul.f32 -1.442695, %v2303_v20  ;;  %v6143_v0 = vrot.slane %v6121_v45, %v10759_v14  ;;  %v3664_v8 = vrot.slane %v11067_v49, %v10730_v33  ;;  %v3668_v48 = vrot.slane %v11067_v49, %v10733_v22 }
 0x315   :  { %v9452_v63 = vpop.eup %9451  ;;  %v6118_v23 = vcombine.low %v6110_v62, %v6117_v6  ;;  %v6150_v34 = vrot.slane %v6122_v2, %v10759_v14  ;;  %v6151_v43 = vcombine.low %v6129_v7, %v6136_v47  ;;  %v3672_v16 = vrot.slane %v11067_v49, %v10736_v29 }
 0x316   :  { %v11373_v30 = vpop.eup %9453  ;;  %9461 = vpow2.f32 %v8864_v36  ;;  %v3676_v4 = vrot.slane %v11067_v49, %v10739_v28  ;;  %v3680_v32 = vrot.slane %v11067_v49, %v10742_v38  ;;  %v3684_v51 = vrot.slane %v11067_v49, %v10745_v40 }
 0x317   :  { %8057 = vperm.xlu1 %9292, %v6118_v23   ;;  %v6152_v58 = vcombine.low %v6143_v0, %v6150_v34  ;;  %v6159_v59 = vrot.slane %v6151_v43, %v10759_v14  ;;  %v3688_v35 = vrot.slane %v11067_v49, %v10748_v46  ;;  %v3692_v50 = vrot.slane %v11067_v49, %v10751_v42 }
 0x318   :  { %v11386_v60 = vpop.eup %9455  ;;  %v2584_v9 = vadd.f32 1.0, %v9452_v63  ;;  %v6168_v37 = vcombine.low %v3664_v8, %v3668_v48  ;;  %v6169_v54 = vcombine.low %v3672_v16, %v3676_v4  ;;  %v6170_v21 = vcombine.low %v3680_v32, %v3684_v51  ;;  %v2309_v32 = vpop.xlane.xlu1 %2308 }
 0x319   :  { %9463 = vpow2.f32 %v8867_v56  ;;  %v6166_v27 = vrot.slane %v6152_v58, %v10759_v14  ;;  %v6171_v52 = vcombine.low %v3688_v35, %v3692_v50  ;;  %v3696_v41 = vrot.slane %v11092_v19, %v10730_v33 }
 0x31a   :  { %v6178_v20 = vrot.slane %v6168_v37, %v10759_v14  ;;  %v6185_v31 = vrot.slane %v6169_v54, %v10759_v14  ;;  %v6192_v49 = vrot.slane %v6170_v21, %v10759_v14  ;;  %v3700_v61 = vrot.slane %v11092_v19, %v10733_v22 }
 0x31b   :  { %v6167_v11 = vcombine.low %v6159_v59, %v6166_v27  ;;  %v8868_v36 = vmul.f32 -1.442695, %v2306_v55  ;;  %v6199_v62 = vrot.slane %v6171_v52, %v10759_v14  ;;  %v3704_v45 = vrot.slane %v11092_v19, %v10736_v29 }
 0x31c   :  { %9465 = vrcp.f32 %v2584_v9  ;;  %v6200_v6 = vcombine.low %v6178_v20, %v6185_v31  ;;  %v3708_v2 = vrot.slane %v11092_v19, %v10739_v28  ;;  %v3712_v7 = vrot.slane %v11092_v19, %v10742_v38 }
 0x31d   :  { %v9458_v47 = vpop.eup %9457  ;;  %8060 = vperm.xlu0 %9291, %v6167_v11   ;;  %v6201_v56 = vcombine.low %v6192_v49, %v6199_v62  ;;  %v3716_v0 = vrot.slane %v11092_v19, %v10745_v40  ;;  %v3720_v8 = vrot.slane %v11092_v19, %v10748_v46  ;;  %v3724_v48 = vrot.slane %v11092_v19, %v10751_v42 }
 0x31e   :  { %v8865_v63 = vmul.f32 -1.442695, %v11327_v39  ;;  %v6208_v23 = vrot.slane %v6200_v6, %v10759_v14  ;;  %v6217_v34 = vcombine.low %v3696_v41, %v3700_v61  ;;  %v6218_v43 = vcombine.low %v3704_v45, %v3708_v2 }
 0x31f   :  { %v11411_v16 = vpop.eup %9459  ;;  %9467 = vpow2.f32 %v8868_v36  ;;  %v6215_v4 = vrot.slane %v6201_v56, %v10759_v14  ;;  %v6219_v51 = vcombine.low %v3712_v7, %v3716_v0  ;;  %v6220_v58 = vcombine.low %v3720_v8, %v3724_v48 }
 0x320   :  { %v6227_v59 = vrot.slane %v6217_v34, %v10759_v14  ;;  %v6234_v35 = vrot.slane %v6218_v43, %v10759_v14  ;;  %v3728_v19 = vrot.slane %v11109_v17, %v10730_v33  ;;  %v3732_v39 = vrot.slane %v11109_v17, %v10733_v22 }
 0x321   :  { %v2585_v50 = vadd.f32 1.0, %v9458_v47  ;;  %v6216_v9 = vcombine.low %v6208_v23, %v6215_v4  ;;  %v6241_v55 = vrot.slane %v6219_v51, %v10759_v14  ;;  %v6248_v37 = vrot.slane %v6220_v58, %v10759_v14  ;;  %v2312_v47 = vpop.xlane.xlu0 %2311 }
 0x322   :  { %v8869_v54 = vmul.f32 -1.442695, %v2309_v32  ;;  %v6249_v21 = vcombine.low %v6227_v59, %v6234_v35  ;;  %v3736_v27 = vrot.slane %v11109_v17, %v10736_v29  ;;  %v3740_v52 = vrot.slane %v11109_v17, %v10739_v28 }
 0x323   :  { %v11426_v41 = vpop.eup %9461  ;;  %8063 = vperm.xlu1 %9292, %v6216_v9   ;;  %v6250_v20 = vcombine.low %v6241_v55, %v6248_v37  ;;  %v3744_v31 = vrot.slane %v11109_v17, %v10742_v38  ;;  %v3748_v49 = vrot.slane %v11109_v17, %v10745_v40  ;;  %v3752_v61 = vrot.slane %v11109_v17, %v10748_v46 }
 0x324   :  { %9469 = vpow2.f32 %v8865_v63  ;;  %v6257_v11 = vrot.slane %v6249_v21, %v10759_v14  ;;  %v3756_v36 = vrot.slane %v11109_v17, %v10751_v42  ;;  %v6266_v62 = vcombine.low %v3728_v19, %v3732_v39 }
 0x325   :  { %9471 = vrcp.f32 %v2585_v50  ;;  %v6264_v45 = vrot.slane %v6250_v20, %v10759_v14  ;;  %v6267_v6 = vcombine.low %v3736_v27, %v3740_v52  ;;  %v6268_v2 = vcombine.low %v3744_v31, %v3748_v49 }
 0x326   :  { %v9464_v7 = vpop.eup %9463  ;;  %v6269_v56 = vcombine.low %v3752_v61, %v3756_v36  ;;  %v6276_v0 = vrot.slane %v6266_v62, %v10759_v14  ;;  %v3760_v8 = vrot.slane %v11141_v13, %v10730_v33  ;;  %v3764_v48 = vrot.slane %v11141_v13, %v10733_v22 }
 0x327   :  { %9473 = vpow2.f32 %v8869_v54  ;;  %v6265_v63 = vcombine.low %v6257_v11, %v6264_v45  ;;  %v6283_v17 = vrot.slane %v6267_v6, %v10759_v14  ;;  %v6290_v23 = vrot.slane %v6268_v2, %v10759_v14 }
 0x328   :  { %v6297_v34 = vrot.slane %v6269_v56, %v10759_v14  ;;  %v3768_v43 = vrot.slane %v11141_v13, %v10736_v29  ;;  %v3772_v4 = vrot.slane %v11141_v13, %v10739_v28  ;;  %v3776_v32 = vrot.slane %v11141_v13, %v10742_v38 }
 0x329   :  { %v11452_v51 = vpop.eup %9465  ;;  %8066 = vperm.xlu0 %9291, %v6265_v63   ;;  %v8870_v58 = vmul.f32 -1.442695, %v2312_v47  ;;  %v6298_v59 = vcombine.low %v6276_v0, %v6283_v17  ;;  %v3780_v35 = vrot.slane %v11141_v13, %v10745_v40  ;;  %v3784_v19 = vrot.slane %v11141_v13, %v10748_v46 }
 0x32a   :  { %v6299_v39 = vcombine.low %v6290_v23, %v6297_v34  ;;  %v3788_v50 = vrot.slane %v11141_v13, %v10751_v42  ;;  %v6315_v9 = vcombine.low %v3760_v8, %v3764_v48  ;;  %v6316_v55 = vcombine.low %v3768_v43, %v3772_v4 }
 0x32b   :  { %v8866_v37 = vmul.f32 -1.442695, %v11359_v24  ;;  %v2589_v54 = vadd.f32 1.0, %v9464_v7  ;;  %v6306_v21 = vrot.slane %v6298_v59, %v10759_v14  ;;  %v6317_v27 = vcombine.low %v3776_v32, %v3780_v35  ;;  %v2315_v32 = vpop.xlane.xlu1 %2314 }
 0x32c   :  { %v9468_v52 = vpop.eup %9467  ;;  %v6313_v20 = vrot.slane %v6299_v39, %v10759_v14  ;;  %v6318_v31 = vcombine.low %v3784_v19, %v3788_v50  ;;  %v6325_v49 = vrot.slane %v6315_v9, %v10759_v14  ;;  %v6332_v61 = vrot.slane %v6316_v55, %v10759_v14 }
 0x32d   :  { %9475 = vpow2.f32 %v8870_v58  ;;  %v6339_v11 = vrot.slane %v6317_v27, %v10759_v14  ;;  %v3792_v13 = vrot.slane %v11150_v25, %v10730_v33  ;;  %v3796_v24 = vrot.slane %v11150_v25, %v10733_v22  ;;  %v2318_v27 = vpop.xlane.xlu0 %2317 }
 0x32e   :  { %v6314_v36 = vcombine.low %v6306_v21, %v6313_v20  ;;  %v6346_v62 = vrot.slane %v6318_v31, %v10759_v14  ;;  %v6347_v45 = vcombine.low %v6325_v49, %v6332_v61  ;;  %v3800_v6 = vrot.slane %v11150_v25, %v10736_v29 }
 0x32f   :  { %v2590_v2 = vadd.f32 1.0, %v9468_v52  ;;  %v3804_v7 = vrot.slane %v11150_v25, %v10739_v28  ;;  %v3808_v47 = vrot.slane %v11150_v25, %v10742_v38  ;;  %v3812_v56 = vrot.slane %v11150_v25, %v10745_v40 }
 0x330   :  { %8069 = vperm.xlu1 %9292, %v6314_v36   ;;  %v6348_v0 = vcombine.low %v6339_v11, %v6346_v62  ;;  %v6355_v8 = vrot.slane %v6347_v45, %v10759_v14  ;;  %v3816_v48 = vrot.slane %v11150_v25, %v10748_v46  ;;  %v3820_v63 = vrot.slane %v11150_v25, %v10751_v42 }
 0x331   :  { %v11484_v17 = vpop.eup %9469  ;;  %9477 = vpow2.f32 %v8866_v37  ;;  %v6364_v23 = vcombine.low %v3792_v13, %v3796_v24  ;;  %v6365_v34 = vcombine.low %v3800_v6, %v3804_v7  ;;  %v6366_v43 = vcombine.low %v3808_v47, %v3812_v56 }
 0x332   :  { %v11486_v4 = vpop.eup %9471  ;;  %9479 = vrcp.f32 %v2589_v54  ;;  %v6362_v58 = vrot.slane %v6348_v0, %v10759_v14  ;;  %v6367_v59 = vcombine.low %v3816_v48, %v3820_v63  ;;  %v3824_v35 = vrot.slane %v11159_v5, %v10730_v33 }
 0x333   :  { %v6374_v19 = vrot.slane %v6364_v23, %v10759_v14  ;;  %v6381_v25 = vrot.slane %v6365_v34, %v10759_v14  ;;  %v6388_v39 = vrot.slane %v6366_v43, %v10759_v14  ;;  %v3828_v50 = vrot.slane %v11159_v5, %v10733_v22 }
 0x334   :  { %v9474_v9 = vpop.eup %9473  ;;  %9481 = vrcp.f32 %v2590_v2  ;;  %v6363_v55 = vcombine.low %v6355_v8, %v6362_v58  ;;  %v6395_v37 = vrot.slane %v6367_v59, %v10759_v14  ;;  %v3832_v54 = vrot.slane %v11159_v5, %v10736_v29 }
 0x335   :  { %v8871_v21 = vmul.f32 -1.442695, %v2315_v32  ;;  %v6396_v52 = vcombine.low %v6374_v19, %v6381_v25  ;;  %v3836_v20 = vrot.slane %v11159_v5, %v10739_v28  ;;  %v3840_v31 = vrot.slane %v11159_v5, %v10742_v38 }
 0x336   :  { %8072 = vperm.xlu0 %9291, %v6363_v55   ;;  %v6397_v49 = vcombine.low %v6388_v39, %v6395_v37  ;;  %v3844_v61 = vrot.slane %v11159_v5, %v10745_v40  ;;  %v3848_v11 = vrot.slane %v11159_v5, %v10748_v46  ;;  %v3852_v13 = vrot.slane %v11159_v5, %v10751_v42  ;;  %v2321_v39 = vpop.xlane.xlu1 %2320 }
 0x337   :  { %v2591_v24 = vadd.f32 1.0, %v9474_v9  ;;  %v6404_v36 = vrot.slane %v6396_v52, %v10759_v14  ;;  %v6413_v62 = vcombine.low %v3824_v35, %v3828_v50  ;;  %v6414_v45 = vcombine.low %v3832_v54, %v3836_v20 }
 0x338   :  { %v8872_v6 = vmul.f32 -1.442695, %v2318_v27  ;;  %v6411_v2 = vrot.slane %v6397_v49, %v10759_v14  ;;  %v6415_v7 = vcombine.low %v3840_v31, %v3844_v61  ;;  %v6416_v47 = vcombine.low %v3848_v11, %v3852_v13 }
 0x339   :  { %v6423_v56 = vrot.slane %v6413_v62, %v10759_v14  ;;  %v6430_v0 = vrot.slane %v6414_v45, %v10759_v14  ;;  %v3856_v8 = vrot.slane %v11190_v18, %v10730_v33  ;;  %v3860_v5 = vrot.slane %v11190_v18, %v10733_v22 }
 0x33a   :  { %v9476_v48 = vpop.eup %9475  ;;  %9483 = vpow2.f32 %v8871_v21  ;;  %v6412_v63 = vcombine.low %v6404_v36, %v6411_v2  ;;  %v6437_v23 = vrot.slane %v6415_v7, %v10759_v14  ;;  %v6444_v34 = vrot.slane %v6416_v47, %v10759_v14 }
 0x33b   :  { %9485 = vrcp.f32 %v2591_v24  ;;  %v6445_v43 = vcombine.low %v6423_v56, %v6430_v0  ;;  %v3864_v32 = vrot.slane %v11190_v18, %v10736_v29  ;;  %v3868_v58 = vrot.slane %v11190_v18, %v10739_v28 }
 0x33c   :  { %8075 = vperm.xlu1 %9292, %v6412_v63   ;;  %v6446_v59 = vcombine.low %v6437_v23, %v6444_v34  ;;  %v3872_v35 = vrot.slane %v11190_v18, %v10742_v38  ;;  %v3876_v19 = vrot.slane %v11190_v18, %v10745_v40  ;;  %v3880_v25 = vrot.slane %v11190_v18, %v10748_v46 }
 0x33d   :  { %9487 = vpow2.f32 %v8872_v6  ;;  %v6453_v50 = vrot.slane %v6445_v43, %v10759_v14  ;;  %v3884_v9 = vrot.slane %v11190_v18, %v10751_v42  ;;  %v6462_v55 = vcombine.low %v3856_v8, %v3860_v5  ;;  %v2324_v8 = vpop.xlane.xlu0 %2323 }
 0x33e   :  { %v11532_v37 = vpop.eup %9477  ;;  %v2592_v54 = vadd.f32 1.0, %v9476_v48  ;;  %v6460_v21 = vrot.slane %v6446_v59, %v10759_v14  ;;  %v6463_v27 = vcombine.low %v3864_v32, %v3868_v58  ;;  %v6464_v52 = vcombine.low %v3872_v35, %v3876_v19  ;;  %v2327_v58 = vpop.xlane.xlu1 %2326 }
 0x33f   :  { %v11535_v20 = vpop.eup %9479  ;;  %v6465_v31 = vcombine.low %v3880_v25, %v3884_v9  ;;  %v6472_v49 = vrot.slane %v6462_v55, %v10759_v14  ;;  %v3888_v61 = vrot.slane %v11214_v26, %v10730_v33  ;;  %v3892_v11 = vrot.slane %v11214_v26, %v10733_v22 }
 0x340   :  { %v8873_v18 = vmul.f32 -1.442695, %v2321_v39  ;;  %v6461_v13 = vcombine.low %v6453_v50, %v6460_v21  ;;  %v6479_v24 = vrot.slane %v6463_v27, %v10759_v14  ;;  %v6486_v36 = vrot.slane %v6464_v52, %v10759_v14 }
 0x341   :  { %v11544_v62 = vpop.eup %9481  ;;  %v6493_v45 = vrot.slane %v6465_v31, %v10759_v14  ;;  %v3896_v6 = vrot.slane %v11214_v26, %v10736_v29  ;;  %v3900_v2 = vrot.slane %v11214_v26, %v10739_v28  ;;  %v3904_v7 = vrot.slane %v11214_v26, %v10742_v38 }
 0x342   :  { %9489 = vrcp.f32 %v2592_v54  ;;  %8078 = vperm.xlu0 %9291, %v6461_v13   ;;  %v6494_v47 = vcombine.low %v6472_v49, %v6479_v24  ;;  %v3908_v56 = vrot.slane %v11214_v26, %v10745_v40  ;;  %v3912_v0 = vrot.slane %v11214_v26, %v10748_v46 }
 0x343   :  { %v6495_v5 = vcombine.low %v6486_v36, %v6493_v45  ;;  %v3916_v48 = vrot.slane %v11214_v26, %v10751_v42  ;;  %v6511_v63 = vcombine.low %v3888_v61, %v3892_v11  ;;  %v6512_v23 = vcombine.low %v3896_v6, %v3900_v2 }
 0x344   :  { %9491 = vpow2.f32 %v8873_v18  ;;  %v6502_v34 = vrot.slane %v6494_v47, %v10759_v14  ;;  %v6513_v43 = vcombine.low %v3904_v7, %v3908_v56  ;;  %v8874_v25 = vmul.f32 -1.442695, %v2324_v8 }
 0x345   :  { %v6509_v32 = vrot.slane %v6495_v5, %v10759_v14  ;;  %v6514_v59 = vcombine.low %v3912_v0, %v3916_v48  ;;  %v6521_v35 = vrot.slane %v6511_v63, %v10759_v14  ;;  %v6528_v19 = vrot.slane %v6512_v23, %v10759_v14 }
 0x346   :  { %v6535_v39 = vrot.slane %v6513_v43, %v10759_v14  ;;  %v3920_v26 = vrot.slane %v11259_v12, %v10730_v33  ;;  %v3924_v50 = vrot.slane %v11259_v12, %v10733_v22  ;;  %v3928_v27 = vrot.slane %v11259_v12, %v10736_v29 }
 0x347   :  { %v9484_v9 = vpop.eup %9483  ;;  %v6510_v55 = vcombine.low %v6502_v34, %v6509_v32  ;;  %v6542_v54 = vrot.slane %v6514_v59, %v10759_v14  ;;  %v6543_v21 = vcombine.low %v6521_v35, %v6528_v19  ;;  %v8875_v31 = vmul.f32 -1.442695, %v2327_v58  ;;  %v2330_v58 = vpop.xlane.xlu0 %2329 }
 0x348   :  { %v11571_v52 = vpop.eup %9485  ;;  %v3932_v49 = vrot.slane %v11259_v12, %v10739_v28  ;;  %v3936_v61 = vrot.slane %v11259_v12, %v10742_v38  ;;  %v3940_v11 = vrot.slane %v11259_v12, %v10745_v40  ;;  %v3944_v24 = vrot.slane %v11259_v12, %v10748_v46 }
 0x349   :  { %8081 = vperm.xlu1 %9292, %v6510_v55   ;;  %v6544_v18 = vcombine.low %v6535_v39, %v6542_v54  ;;  %v6551_v13 = vrot.slane %v6543_v21, %v10759_v14  ;;  %v3948_v36 = vrot.slane %v11259_v12, %v10751_v42  ;;  %v2593_v6 = vadd.f32 1.0, %v9484_v9 }
 0x34a   :  { %v9488_v45 = vpop.eup %9487  ;;  %v6560_v2 = vcombine.low %v3920_v26, %v3924_v50  ;;  %v6561_v7 = vcombine.low %v3928_v27, %v3932_v49  ;;  %v6562_v47 = vcombine.low %v3936_v61, %v3940_v11  ;;  %9493 = vpow2.f32 %v8874_v25  ;;  %v2333_v61 = vpop.xlane.xlu1 %2332 }
 0x34b   :  { %v6558_v56 = vrot.slane %v6544_v18, %v10759_v14  ;;  %v6563_v0 = vcombine.low %v3944_v24, %v3948_v36  ;;  %v3952_v8 = vrot.slane %v11284_v57, %v10730_v33  ;;  %v3956_v12 = vrot.slane %v11284_v57, %v10733_v22 }
 0x34c   :  { %v6570_v5 = vrot.slane %v6560_v2, %v10759_v14  ;;  %v6577_v48 = vrot.slane %v6561_v7, %v10759_v14  ;;  %v6584_v63 = vrot.slane %v6562_v47, %v10759_v14  ;;  %9495 = vpow2.f32 %v8875_v31 }
 0x34d   :  { %v6559_v23 = vcombine.low %v6551_v13, %v6558_v56  ;;  %v6591_v34 = vrot.slane %v6563_v0, %v10759_v14  ;;  %v3960_v43 = vrot.slane %v11284_v57, %v10736_v29  ;;  %v2594_v32 = vadd.f32 1.0, %v9488_v45 }
 0x34e   :  { %v6592_v59 = vcombine.low %v6570_v5, %v6577_v48  ;;  %v3964_v35 = vrot.slane %v11284_v57, %v10739_v28  ;;  %v3968_v19 = vrot.slane %v11284_v57, %v10742_v38  ;;  %v3972_v26 = vrot.slane %v11284_v57, %v10745_v40 }
 0x34f   :  { %v11599_v25 = vpop.eup %9489  ;;  %8084 = vperm.xlu0 %9291, %v6559_v23   ;;  %v6593_v39 = vcombine.low %v6584_v63, %v6591_v34  ;;  %v3976_v50 = vrot.slane %v11284_v57, %v10748_v46  ;;  %v3980_v9 = vrot.slane %v11284_v57, %v10751_v42  ;;  %9497 = vrcp.f32 %v2593_v6 }
 0x350   :  { %v6600_v55 = vrot.slane %v6592_v59, %v10759_v14  ;;  %v6609_v54 = vcombine.low %v3952_v8, %v3956_v12  ;;  %v6610_v21 = vcombine.low %v3960_v43, %v3964_v35  ;;  %v8876_v31 = vmul.f32 -1.442695, %v2330_v58 }
 0x351   :  { %v9492_v27 = vpop.eup %9491  ;;  %v6607_v49 = vrot.slane %v6593_v39, %v10759_v14  ;;  %v6611_v11 = vcombine.low %v3968_v19, %v3972_v26  ;;  %v6612_v18 = vcombine.low %v3976_v50, %v3980_v9  ;;  %v3984_v36 = vrot.slane %v11332_v44, %v10730_v33 }
 0x352   :  { %v6619_v13 = vrot.slane %v6609_v54, %v10759_v14  ;;  %v6626_v24 = vrot.slane %v6610_v21, %v10759_v14  ;;  %v3988_v57 = vrot.slane %v11332_v44, %v10733_v22  ;;  %9499 = vrcp.f32 %v2594_v32 }
 0x353   :  { %v6608_v45 = vcombine.low %v6600_v55, %v6607_v49  ;;  %v6633_v6 = vrot.slane %v6611_v11, %v10759_v14  ;;  %v6640_v2 = vrot.slane %v6612_v18, %v10759_v14  ;;  %v8877_v7 = vmul.f32 -1.442695, %v2333_v61 }
 0x354   :  { %v6641_v47 = vcombine.low %v6619_v13, %v6626_v24  ;;  %v3992_v56 = vrot.slane %v11332_v44, %v10736_v29  ;;  %v3996_v0 = vrot.slane %v11332_v44, %v10739_v28  ;;  %v4000_v5 = vrot.slane %v11332_v44, %v10742_v38  ;;  %v2336_v13 = vpop.xlane.xlu0 %2335 }
 0x355   :  { %8087 = vperm.xlu1 %9292, %v6608_v45   ;;  %v6642_v8 = vcombine.low %v6633_v6, %v6640_v2  ;;  %v4004_v48 = vrot.slane %v11332_v44, %v10745_v40  ;;  %v4008_v63 = vrot.slane %v11332_v44, %v10748_v46  ;;  %9501 = vpow2.f32 %v8876_v31 }
 0x356   :  { %v6649_v12 = vrot.slane %v6641_v47, %v10759_v14  ;;  %v4012_v23 = vrot.slane %v11332_v44, %v10751_v42  ;;  %v6658_v34 = vcombine.low %v3984_v36, %v3988_v57  ;;  %v2595_v43 = vadd.f32 1.0, %v9492_v27 }
 0x357   :  { %v6656_v32 = vrot.slane %v6642_v8, %v10759_v14  ;;  %v6659_v58 = vcombine.low %v3992_v56, %v3996_v0  ;;  %v6660_v59 = vcombine.low %v4000_v5, %v4004_v48  ;;  %v9494_v35 = vpop.eup %9493  ;;  %v4016_v26 = vrot.slane %v11335_v3, %v10730_v33 }
 0x358   :  { %v6661_v19 = vcombine.low %v4008_v63, %v4012_v23  ;;  %v6668_v39 = vrot.slane %v6658_v34, %v10759_v14  ;;  %v4020_v50 = vrot.slane %v11335_v3, %v10733_v22  ;;  %9503 = vpow2.f32 %v8877_v7 }
 0x359   :  { %v6657_v9 = vcombine.low %v6649_v12, %v6656_v32  ;;  %v6675_v44 = vrot.slane %v6659_v58, %v10759_v14  ;;  %v6682_v55 = vrot.slane %v6660_v59, %v10759_v14  ;;  %v9496_v54 = vpop.eup %9495  ;;  %v4024_v27 = vrot.slane %v11335_v3, %v10736_v29 }
 0x35a   :  { %v6689_v21 = vrot.slane %v6661_v19, %v10759_v14  ;;  %v4028_v31 = vrot.slane %v11335_v3, %v10739_v28  ;;  %v4032_v49 = vrot.slane %v11335_v3, %v10742_v38  ;;  %9505 = vrcp.f32 %v2595_v43 }
 0x35b   :  { %8090 = vperm.xlu0 %9291, %v6657_v9   ;;  %v6690_v61 = vcombine.low %v6668_v39, %v6675_v44  ;;  %v4036_v11 = vrot.slane %v11335_v3, %v10745_v40  ;;  %v4040_v18 = vrot.slane %v11335_v3, %v10748_v46  ;;  %v4044_v36 = vrot.slane %v11335_v3, %v10751_v42  ;;  %v2342_v44 = vpop.xlane.xlu0 %2341 }
 0x35c   :  { %v6691_v24 = vcombine.low %v6682_v55, %v6689_v21  ;;  %v6707_v57 = vcombine.low %v4016_v26, %v4020_v50  ;;  %v6708_v45 = vcombine.low %v4024_v27, %v4028_v31  ;;  %v11651_v6 = vpop.eup %9497  ;;  %v2596_v2 = vadd.f32 1.0, %v9494_v35  ;;  %v2339_v35 = vpop.xlane.xlu1 %2338 }
 0x35d   :  { %v2597_v7 = vadd.f32 1.0, %v9496_v54  ;;  %v6698_v47 = vrot.slane %v6690_v61, %v10759_v14  ;;  %v6709_v56 = vcombine.low %v4032_v49, %v4036_v11  ;;  %v6710_v8 = vcombine.low %v4040_v18, %v4044_v36 }
 0x35e   :  { %v6705_v0 = vrot.slane %v6691_v24, %v10759_v14  ;;  %v6717_v5 = vrot.slane %v6707_v57, %v10759_v14  ;;  %v6724_v48 = vrot.slane %v6708_v45, %v10759_v14  ;;  %v8878_v63 = vmul.f32 -1.442695, %v2336_v13 }
 0x35f   :  { %v6731_v12 = vrot.slane %v6709_v56, %v10759_v14  ;;  %v4048_v3 = vrot.slane %v11344_v53, %v10730_v33  ;;  %v4052_v23 = vrot.slane %v11344_v53, %v10733_v22  ;;  %v11662_v34 = vpop.eup %9499  ;;  %v6738_v32 = vrot.slane %v6710_v8, %v10759_v14 }
 0x360   :  { %v6706_v43 = vcombine.low %v6698_v47, %v6705_v0  ;;  %v6739_v58 = vcombine.low %v6717_v5, %v6724_v48  ;;  %v4056_v59 = vrot.slane %v11344_v53, %v10736_v29  ;;  %9507 = vrcp.f32 %v2596_v2  ;;  %v11689_v8 = vpop.xlane.xlu1 %2344 }
 0x361   :  { %v4060_v19 = vrot.slane %v11344_v53, %v10739_v28  ;;  %v4064_v39 = vrot.slane %v11344_v53, %v10742_v38  ;;  %v4068_v26 = vrot.slane %v11344_v53, %v10745_v40  ;;  %v6740_v50 = vcombine.low %v6731_v12, %v6738_v32  ;;  %v11703_v32 = vpop.xlane.xlu0 %2347 }
 0x362   :  { %8093 = vperm.xlu1 %9292, %v6706_v43   ;;  %v6747_v9 = vrot.slane %v6739_v58, %v10759_v14  ;;  %v4072_v55 = vrot.slane %v11344_v53, %v10748_v46  ;;  %v4076_v54 = vrot.slane %v11344_v53, %v10751_v42  ;;  %v9502_v21 = vpop.eup %9501  ;;  %9509 = vrcp.f32 %v2597_v7 }
 0x363   :  { %v6756_v27 = vcombine.low %v4048_v3, %v4052_v23  ;;  %v6757_v31 = vcombine.low %v4056_v59, %v4060_v19  ;;  %v6758_v49 = vcombine.low %v4064_v39, %v4068_v26  ;;  %9511 = vpow2.f32 %v8878_v63 }
 0x364   :  { %v6754_v61 = vrot.slane %v6740_v50, %v10759_v14  ;;  %v6759_v11 = vcombine.low %v4072_v55, %v4076_v54  ;;  %v4080_v18 = vrot.slane %v11373_v30, %v10730_v33  ;;  %v4084_v53 = vrot.slane %v11373_v30, %v10733_v22 }
 0x365   :  { %v6766_v13 = vrot.slane %v6756_v27, %v10759_v14  ;;  %v6773_v24 = vrot.slane %v6757_v31, %v10759_v14  ;;  %v6780_v36 = vrot.slane %v6758_v49, %v10759_v14  ;;  %v9504_v57 = vpop.eup %9503  ;;  %v2598_v45 = vadd.f32 1.0, %v9502_v21 }
 0x366   :  { %v6755_v2 = vcombine.low %v6747_v9, %v6754_v61  ;;  %v6787_v7 = vrot.slane %v6759_v11, %v10759_v14  ;;  %v4088_v47 = vrot.slane %v11373_v30, %v10736_v29  ;;  %v8879_v56 = vmul.f32 -1.442695, %v2339_v35 }
 0x367   :  { %v6788_v0 = vcombine.low %v6766_v13, %v6773_v24  ;;  %v4092_v5 = vrot.slane %v11373_v30, %v10739_v28  ;;  %v4096_v48 = vrot.slane %v11373_v30, %v10742_v38  ;;  %v11695_v63 = vpop.eup %9505  ;;  %v4100_v3 = vrot.slane %v11373_v30, %v10745_v40 }
 0x368   :  { %8096 = vperm.xlu0 %9291, %v6755_v2   ;;  %v6789_v12 = vcombine.low %v6780_v36, %v6787_v7  ;;  %v4104_v23 = vrot.slane %v11373_v30, %v10748_v46  ;;  %v4108_v43 = vrot.slane %v11373_v30, %v10751_v42  ;;  %v2599_v58 = vadd.f32 1.0, %v9504_v57 }
 0x369   :  { %v6796_v59 = vrot.slane %v6788_v0, %v10759_v14  ;;  %v6805_v35 = vcombine.low %v4080_v18, %v4084_v53  ;;  %v6806_v19 = vcombine.low %v4088_v47, %v4092_v5  ;;  %9513 = vrcp.f32 %v2598_v45  ;;  %v2162_v18 = vpop.xlane.xlu1 %2161  ;;  %v2159_v45 = vpop.xlane.xlu0 %2158 }
 0x36a   :  { %v6803_v39 = vrot.slane %v6789_v12, %v10759_v14  ;;  %v6807_v26 = vcombine.low %v4096_v48, %v4100_v3  ;;  %v6808_v50 = vcombine.low %v4104_v23, %v4108_v43  ;;  %v4112_v54 = vrot.slane %v11386_v60, %v10730_v33 }
 0x36b   :  { %v6815_v9 = vrot.slane %v6805_v35, %v10759_v14  ;;  %v6822_v55 = vrot.slane %v6806_v19, %v10759_v14  ;;  %v4116_v30 = vrot.slane %v11386_v60, %v10733_v22  ;;  %9515 = vpow2.f32 %v8879_v56 }
 0x36c   :  { %v6804_v21 = vcombine.low %v6796_v59, %v6803_v39  ;;  %v6829_v27 = vrot.slane %v6807_v26, %v10759_v14  ;;  %v6836_v31 = vrot.slane %v6808_v50, %v10759_v14  ;;  %9517 = vrcp.f32 %v2599_v58 }
 0x36d   :  { %v6837_v49 = vcombine.low %v6815_v9, %v6822_v55  ;;  %v4120_v61 = vrot.slane %v11386_v60, %v10736_v29  ;;  %v4124_v11 = vrot.slane %v11386_v60, %v10739_v28  ;;  %v11719_v13 = vpop.eup %9507  ;;  %v4128_v36 = vrot.slane %v11386_v60, %v10742_v38 }
 0x36e   :  { %8099 = vperm.xlu1 %9292, %v6804_v21   ;;  %v6838_v24 = vcombine.low %v6829_v27, %v6836_v31  ;;  %v4132_v53 = vrot.slane %v11386_v60, %v10745_v40  ;;  %v4136_v57 = vrot.slane %v11386_v60, %v10748_v46  ;;  %v8880_v2 = vmul.f32 -1.442695, %v2342_v44 }
 0x36f   :  { %v6845_v7 = vrot.slane %v6837_v49, %v10759_v14  ;;  %v4140_v47 = vrot.slane %v11386_v60, %v10751_v42  ;;  %v6854_v56 = vcombine.low %v4112_v54, %v4116_v30  ;;  %v11730_v0 = vpop.eup %9509  ;;  %v6855_v48 = vcombine.low %v4120_v61, %v4124_v11 }
 0x370   :  { %v6852_v5 = vrot.slane %v6838_v24, %v10759_v14  ;;  %v6856_v12 = vcombine.low %v4128_v36, %v4132_v53  ;;  %v8820_v3 = vmul.f32 -1.442695, %v2162_v18  ;;  %v9512_v23 = vpop.eup %9511  ;;  %v8819_v59 = vmul.f32 -1.442695, %v2159_v45 }
 0x371   :  { %v6857_v43 = vcombine.low %v4136_v57, %v4140_v47  ;;  %v6864_v58 = vrot.slane %v6854_v56, %v10759_v14  ;;  %v4176_v44 = vrot.slane %v11452_v51, %v10730_v33  ;;  %v6871_v19 = vrot.slane %v6855_v48, %v10759_v14 }
 0x372   :  { %v6853_v35 = vcombine.low %v6845_v7, %v6852_v5  ;;  %v6878_v60 = vrot.slane %v6856_v12, %v10759_v14  ;;  %9519 = vpow2.f32 %v8820_v3  ;;  %v4180_v26 = vrot.slane %v11452_v51, %v10733_v22 }
 0x373   :  { %v6885_v39 = vrot.slane %v6857_v43, %v10759_v14  ;;  %9521 = vpow2.f32 %v8819_v59  ;;  %v4184_v50 = vrot.slane %v11452_v51, %v10736_v29  ;;  %v6886_v9 = vcombine.low %v6864_v58, %v6871_v19 }
 0x374   :  { %9523 = vpow2.f32 %v8880_v2  ;;  %8102 = vperm.xlu0 %9291, %v6853_v35   ;;  %v4188_v55 = vrot.slane %v11452_v51, %v10739_v28  ;;  %v4192_v54 = vrot.slane %v11452_v51, %v10742_v38  ;;  %v4196_v21 = vrot.slane %v11452_v51, %v10745_v40 }
 0x375   :  { %v6887_v30 = vcombine.low %v6878_v60, %v6885_v39  ;;  %v4200_v27 = vrot.slane %v11452_v51, %v10748_v46  ;;  %v4204_v31 = vrot.slane %v11452_v51, %v10751_v42  ;;  %v2600_v49 = vadd.f32 1.0, %v9512_v23 }
 0x376   :  { %v6894_v61 = vrot.slane %v6886_v9, %v10759_v14  ;;  %v6952_v11 = vcombine.low %v4176_v44, %v4180_v26  ;;  %v6953_v18 = vcombine.low %v4184_v50, %v4188_v55  ;;  %v11754_v24 = vpop.eup %9513  ;;  %v6954_v53 = vcombine.low %v4192_v54, %v4196_v21 }
 0x377   :  { %v6901_v36 = vrot.slane %v6887_v30, %v10759_v14  ;;  %v6955_v57 = vcombine.low %v4200_v27, %v4204_v31  ;;  %v4144_v45 = vrot.slane %v11411_v16, %v10730_v33  ;;  %v4148_v51 = vrot.slane %v11411_v16, %v10733_v22 }
 0x378   :  { %v6962_v2 = vrot.slane %v6952_v11, %v10759_v14  ;;  %v6969_v7 = vrot.slane %v6953_v18, %v10759_v14  ;;  %v4152_v47 = vrot.slane %v11411_v16, %v10736_v29  ;;  %v9516_v56 = vpop.eup %9515  ;;  %v6976_v48 = vrot.slane %v6954_v53, %v10759_v14 }
 0x379   :  { %v6902_v5 = vcombine.low %v6894_v61, %v6901_v36  ;;  %v6983_v12 = vrot.slane %v6955_v57, %v10759_v14  ;;  %v4156_v3 = vrot.slane %v11411_v16, %v10739_v28  ;;  %v11769_v23 = vpop.eup %9517  ;;  %9525 = vrcp.f32 %v2600_v49 }
 0x37a   :  { %v6984_v43 = vcombine.low %v6962_v2, %v6969_v7  ;;  %v4160_v58 = vrot.slane %v11411_v16, %v10742_v38  ;;  %v4164_v59 = vrot.slane %v11411_v16, %v10745_v40  ;;  %v4168_v35 = vrot.slane %v11411_v16, %v10748_v46 }
 0x37b   :  { %8105 = vperm.xlu1 %9292, %v6902_v5   ;;  %v6985_v44 = vcombine.low %v6976_v48, %v6983_v12  ;;  %v4172_v19 = vrot.slane %v11411_v16, %v10751_v42  ;;  %v6903_v60 = vcombine.low %v4144_v45, %v4148_v51  ;;  %v11779_v39 = vadd.f32 1.0, %v9516_v56 }
 0x37c   :  { %v6992_v26 = vrot.slane %v6984_v43, %v10759_v14  ;;  %v6904_v50 = vcombine.low %v4152_v47, %v4156_v3  ;;  %v6905_v9 = vcombine.low %v4160_v58, %v4164_v59  ;;  %v4336_v21 = vrot.slane %v11535_v20, %v10730_v33 }
 0x37d   :  { %v6999_v55 = vrot.slane %v6985_v44, %v10759_v14  ;;  %v6906_v54 = vcombine.low %v4168_v35, %v4172_v19  ;;  %v6913_v30 = vrot.slane %v6903_v60, %v10759_v14  ;;  %v4340_v16 = vrot.slane %v11535_v20, %v10733_v22 }
 0x37e   :  { %v6920_v27 = vrot.slane %v6904_v50, %v10759_v14  ;;  %v6927_v31 = vrot.slane %v6905_v9, %v10759_v14  ;;  %v4344_v49 = vrot.slane %v11535_v20, %v10736_v29  ;;  %v4348_v36 = vrot.slane %v11535_v20, %v10739_v28 }
 0x37f   :  { %v9520_v61 = vpop.eup %9519  ;;  %v7000_v11 = vcombine.low %v6992_v26, %v6999_v55  ;;  %v6934_v18 = vrot.slane %v6906_v54, %v10759_v14  ;;  %v4352_v53 = vrot.slane %v11535_v20, %v10742_v38  ;;  %v4356_v7 = vrot.slane %v11535_v20, %v10745_v40 }
 0x380   :  { %v9522_v57 = vpop.eup %9521  ;;  %v2542_v45 = vadd.f32 1.0, %v9520_v61  ;;  %v6935_v2 = vcombine.low %v6913_v30, %v6920_v27  ;;  %v4360_v51 = vrot.slane %v11535_v20, %v10748_v46  ;;  %v4364_v48 = vrot.slane %v11535_v20, %v10751_v42 }
 0x381   :  { %v11801_v47 = vpop.eup %9523  ;;  %v2541_v56 = vadd.f32 1.0, %v9522_v57  ;;  %8111 = vperm.xlu0 %9291, %v7000_v11   ;;  %v6936_v5 = vcombine.low %v6927_v31, %v6934_v18  ;;  %v7197_v12 = vcombine.low %v4336_v21, %v4340_v16  ;;  %v7198_v43 = vcombine.low %v4344_v49, %v4348_v36 }
 0x382   :  { %9527 = vrcp.f32 %v2542_v45  ;;  %v6943_v3 = vrot.slane %v6935_v2, %v10759_v14  ;;  %v7199_v58 = vcombine.low %v4352_v53, %v4356_v7  ;;  %v7200_v44 = vcombine.low %v4360_v51, %v4364_v48 }
 0x383   :  { %9529 = vrcp.f32 %v2541_v56  ;;  %v6950_v59 = vrot.slane %v6936_v5, %v10759_v14  ;;  %v7207_v35 = vrot.slane %v7197_v12, %v10759_v14  ;;  %v7214_v19 = vrot.slane %v7198_v43, %v10759_v14 }
 0x384   :  { %v7221_v60 = vrot.slane %v7199_v58, %v10759_v14  ;;  %v4368_v26 = vrot.slane %v11544_v62, %v10730_v33  ;;  %v4372_v20 = vrot.slane %v11544_v62, %v10733_v22  ;;  %v7228_v9 = vrot.slane %v7200_v44, %v10759_v14 }
 0x385   :  { %v6951_v50 = vcombine.low %v6943_v3, %v6950_v59  ;;  %v4376_v55 = vrot.slane %v11544_v62, %v10736_v29  ;;  %v4380_v54 = vrot.slane %v11544_v62, %v10739_v28  ;;  %v7229_v30 = vcombine.low %v7207_v35, %v7214_v19 }
 0x386   :  { %v4384_v21 = vrot.slane %v11544_v62, %v10742_v38  ;;  %v4388_v27 = vrot.slane %v11544_v62, %v10745_v40  ;;  %v4392_v31 = vrot.slane %v11544_v62, %v10748_v46  ;;  %v11825_v16 = vpop.eup %9525  ;;  %v7230_v49 = vcombine.low %v7221_v60, %v7228_v9 }
 0x387   :  { %8108 = vperm.xlu0 %9291, %v6951_v50   ;;  %v4396_v61 = vrot.slane %v11544_v62, %v10751_v42  ;;  %v7246_v11 = vcombine.low %v4368_v26, %v4372_v20  ;;  %v7247_v18 = vcombine.low %v4376_v55, %v4380_v54  ;;  %v7237_v36 = vrot.slane %v7229_v30, %v10759_v14 }
 0x388   :  { %v7248_v53 = vcombine.low %v4384_v21, %v4388_v27  ;;  %v4400_v57 = vrot.slane %v11571_v52, %v10730_v33  ;;  %v4404_v45 = vrot.slane %v11571_v52, %v10733_v22  ;;  %v7244_v2 = vrot.slane %v7230_v49, %v10759_v14 }
 0x389   :  { %v7249_v7 = vcombine.low %v4392_v31, %v4396_v61  ;;  %v7256_v51 = vrot.slane %v7246_v11, %v10759_v14  ;;  %v7263_v56 = vrot.slane %v7247_v18, %v10759_v14  ;;  %v4408_v5 = vrot.slane %v11571_v52, %v10736_v29 }
 0x38a   :  { %v7270_v62 = vrot.slane %v7248_v53, %v10759_v14  ;;  %v4412_v48 = vrot.slane %v11571_v52, %v10739_v28  ;;  %v4416_v12 = vrot.slane %v11571_v52, %v10742_v38  ;;  %v7245_v3 = vcombine.low %v7237_v36, %v7244_v2 }
 0x38b   :  { %v7277_v43 = vrot.slane %v7249_v7, %v10759_v14  ;;  %v7278_v58 = vcombine.low %v7256_v51, %v7263_v56  ;;  %v4420_v59 = vrot.slane %v11571_v52, %v10745_v40  ;;  %v4424_v44 = vrot.slane %v11571_v52, %v10748_v46 }
 0x38c   :  { %v4428_v35 = vrot.slane %v11571_v52, %v10751_v42  ;;  %v7295_v19 = vcombine.low %v4400_v57, %v4404_v45  ;;  %v7296_v60 = vcombine.low %v4408_v5, %v4412_v48  ;;  %8126 = vperm.xlu0 %9291, %v7245_v3   ;;  %v4432_v9 = vrot.slane %v11599_v25, %v10730_v33 }
 0x38d   :  { %v7279_v26 = vcombine.low %v7270_v62, %v7277_v43  ;;  %v7286_v20 = vrot.slane %v7278_v58, %v10759_v14  ;;  %v7297_v50 = vcombine.low %v4416_v12, %v4420_v59  ;;  %v4436_v21 = vrot.slane %v11599_v25, %v10733_v22 }
 0x38e   :  { %v7298_v55 = vcombine.low %v4424_v44, %v4428_v35  ;;  %v7305_v54 = vrot.slane %v7295_v19, %v10759_v14  ;;  %v7312_v30 = vrot.slane %v7296_v60, %v10759_v14  ;;  %v4440_v49 = vrot.slane %v11599_v25, %v10736_v29 }
 0x38f   :  { %v11858_v27 = vpop.eup %9527  ;;  %v7293_v52 = vrot.slane %v7279_v26, %v10759_v14  ;;  %v7319_v31 = vrot.slane %v7297_v50, %v10759_v14  ;;  %v4444_v61 = vrot.slane %v11599_v25, %v10739_v28  ;;  %v4448_v53 = vrot.slane %v11599_v25, %v10742_v38 }
 0x390   :  { %v11866_v11 = vpop.eup %9529  ;;  %v7326_v18 = vrot.slane %v7298_v55, %v10759_v14  ;;  %v7327_v36 = vcombine.low %v7305_v54, %v7312_v30  ;;  %v4452_v57 = vrot.slane %v11599_v25, %v10745_v40  ;;  %v4456_v2 = vrot.slane %v11599_v25, %v10748_v46 }
 0x391   :  { %v7294_v45 = vcombine.low %v7286_v20, %v7293_v52  ;;  %v4460_v7 = vrot.slane %v11599_v25, %v10751_v42  ;;  %v7344_v51 = vcombine.low %v4432_v9, %v4436_v21  ;;  %v7345_v5 = vcombine.low %v4440_v49, %v4444_v61 }
 0x392   :  { %v7328_v56 = vcombine.low %v7319_v31, %v7326_v18  ;;  %v7335_v62 = vrot.slane %v7327_v36, %v10759_v14  ;;  %v7346_v48 = vcombine.low %v4448_v53, %v4452_v57  ;;  %v4464_v43 = vrot.slane %v11651_v6, %v10730_v33 }
 0x393   :  { %8129 = vperm.xlu1 %9292, %v7294_v45   ;;  %v7347_v12 = vcombine.low %v4456_v2, %v4460_v7  ;;  %v7354_v3 = vrot.slane %v7344_v51, %v10759_v14  ;;  %v4468_v58 = vrot.slane %v11651_v6, %v10733_v22  ;;  %v7361_v25 = vrot.slane %v7345_v5, %v10759_v14 }
 0x394   :  { %v7342_v59 = vrot.slane %v7328_v56, %v10759_v14  ;;  %v7368_v44 = vrot.slane %v7346_v48, %v10759_v14  ;;  %v4472_v35 = vrot.slane %v11651_v6, %v10736_v29  ;;  %v4476_v60 = vrot.slane %v11651_v6, %v10739_v28 }
 0x395   :  { %v7375_v19 = vrot.slane %v7347_v12, %v10759_v14  ;;  %v4480_v26 = vrot.slane %v11651_v6, %v10742_v38  ;;  %v4484_v20 = vrot.slane %v11651_v6, %v10745_v40  ;;  %v7376_v9 = vcombine.low %v7354_v3, %v7361_v25 }
 0x396   :  { %v7343_v50 = vcombine.low %v7335_v62, %v7342_v59  ;;  %v4488_v55 = vrot.slane %v11651_v6, %v10748_v46  ;;  %v4492_v54 = vrot.slane %v11651_v6, %v10751_v42  ;;  %v7393_v21 = vcombine.low %v4464_v43, %v4468_v58 }
 0x397   :  { %v7377_v30 = vcombine.low %v7368_v44, %v7375_v19  ;;  %v7394_v52 = vcombine.low %v4472_v35, %v4476_v60  ;;  %v7395_v31 = vcombine.low %v4480_v26, %v4484_v20  ;;  %v7384_v49 = vrot.slane %v7376_v9, %v10759_v14 }
 0x398   :  { %8132 = vperm.xlu0 %9291, %v7343_v50   ;;  %v7396_v61 = vcombine.low %v4488_v55, %v4492_v54  ;;  %v4496_v18 = vrot.slane %v11662_v34, %v10730_v33  ;;  %v4500_v36 = vrot.slane %v11662_v34, %v10733_v22  ;;  %v7403_v57 = vrot.slane %v7393_v21, %v10759_v14 }
 0x399   :  { %v7391_v53 = vrot.slane %v7377_v30, %v10759_v14  ;;  %v7410_v6 = vrot.slane %v7394_v52, %v10759_v14  ;;  %v7417_v45 = vrot.slane %v7395_v31, %v10759_v14  ;;  %v4504_v7 = vrot.slane %v11662_v34, %v10736_v29 }
 0x39a   :  { %v7424_v2 = vrot.slane %v7396_v61, %v10759_v14  ;;  %v4508_v51 = vrot.slane %v11662_v34, %v10739_v28  ;;  %v4512_v56 = vrot.slane %v11662_v34, %v10742_v38  ;;  %v4516_v48 = vrot.slane %v11662_v34, %v10745_v40 }
 0x39b   :  { %v7392_v62 = vcombine.low %v7384_v49, %v7391_v53  ;;  %v7425_v5 = vcombine.low %v7403_v57, %v7410_v6  ;;  %v4520_v12 = vrot.slane %v11662_v34, %v10748_v46  ;;  %v4524_v43 = vrot.slane %v11662_v34, %v10751_v42 }
 0x39c   :  { %v7426_v3 = vcombine.low %v7417_v45, %v7424_v2  ;;  %v7442_v58 = vcombine.low %v4496_v18, %v4500_v36  ;;  %v7443_v59 = vcombine.low %v4504_v7, %v4508_v51  ;;  %v7444_v44 = vcombine.low %v4512_v56, %v4516_v48 }
 0x39d   :  { %8135 = vperm.xlu1 %9292, %v7392_v62   ;;  %v7433_v25 = vrot.slane %v7425_v5, %v10759_v14  ;;  %v4528_v35 = vrot.slane %v11695_v63, %v10730_v33  ;;  %v4532_v19 = vrot.slane %v11695_v63, %v10733_v22  ;;  %v7445_v26 = vcombine.low %v4520_v12, %v4524_v43 }
 0x39e   :  { %v7440_v60 = vrot.slane %v7426_v3, %v10759_v14  ;;  %v7452_v20 = vrot.slane %v7442_v58, %v10759_v14  ;;  %v7459_v50 = vrot.slane %v7443_v59, %v10759_v14  ;;  %v7466_v34 = vrot.slane %v7444_v44, %v10759_v14 }
 0x39f   :  { %v4536_v9 = vrot.slane %v11695_v63, %v10736_v29  ;;  %v4540_v55 = vrot.slane %v11695_v63, %v10739_v28  ;;  %v4544_v54 = vrot.slane %v11695_v63, %v10742_v38  ;;  %v7473_v21 = vrot.slane %v7445_v26, %v10759_v14 }
 0x3a0   :  { %v7441_v30 = vcombine.low %v7433_v25, %v7440_v60  ;;  %v7474_v52 = vcombine.low %v7452_v20, %v7459_v50  ;;  %v4548_v31 = vrot.slane %v11695_v63, %v10745_v40  ;;  %v4552_v49 = vrot.slane %v11695_v63, %v10748_v46 }
 0x3a1   :  { %v4556_v61 = vrot.slane %v11695_v63, %v10751_v42  ;;  %v7491_v18 = vcombine.low %v4528_v35, %v4532_v19  ;;  %v7492_v36 = vcombine.low %v4536_v9, %v4540_v55  ;;  %v7475_v53 = vcombine.low %v7466_v34, %v7473_v21 }
 0x3a2   :  { %8138 = vperm.xlu0 %9291, %v7441_v30   ;;  %v7482_v57 = vrot.slane %v7474_v52, %v10759_v14  ;;  %v7493_v6 = vcombine.low %v4544_v54, %v4548_v31  ;;  %v4560_v45 = vrot.slane %v11719_v13, %v10730_v33  ;;  %v4564_v56 = vrot.slane %v11719_v13, %v10733_v22 }
 0x3a3   :  { %v7494_v2 = vcombine.low %v4552_v49, %v4556_v61  ;;  %v7501_v7 = vrot.slane %v7491_v18, %v10759_v14  ;;  %v7508_v51 = vrot.slane %v7492_v36, %v10759_v14  ;;  %v7489_v63 = vrot.slane %v7475_v53, %v10759_v14  ;;  %v11983_v18 = vpop.permute.xlu1 %7991 }
 0x3a4   :  { %v7515_v62 = vrot.slane %v7493_v6, %v10759_v14  ;;  %v4568_v5 = vrot.slane %v11719_v13, %v10736_v29  ;;  %v4572_v48 = vrot.slane %v11719_v13, %v10739_v28  ;;  %v4576_v43 = vrot.slane %v11719_v13, %v10742_v38 }
 0x3a5   :  { %v7522_v12 = vrot.slane %v7494_v2, %v10759_v14  ;;  %v7523_v3 = vcombine.low %v7501_v7, %v7508_v51  ;;  %v4580_v58 = vrot.slane %v11719_v13, %v10745_v40  ;;  %v7490_v59 = vcombine.low %v7482_v57, %v7489_v63 }
 0x3a6   :  { %v4584_v25 = vrot.slane %v11719_v13, %v10748_v46  ;;  %v4588_v44 = vrot.slane %v11719_v13, %v10751_v42  ;;  %v7540_v35 = vcombine.low %v4560_v45, %v4564_v56  ;;  %v7541_v26 = vcombine.low %v4568_v5, %v4572_v48 }
 0x3a7   :  { %v7524_v19 = vcombine.low %v7515_v62, %v7522_v12  ;;  %v7531_v60 = vrot.slane %v7523_v3, %v10759_v14  ;;  %v7542_v20 = vcombine.low %v4576_v43, %v4580_v58  ;;  %8141 = vperm.xlu1 %9292, %v7490_v59   ;;  %v4592_v9 = vrot.slane %v11730_v0, %v10730_v33 }
 0x3a8   :  { %v7543_v50 = vcombine.low %v4584_v25, %v4588_v44  ;;  %v7550_v34 = vrot.slane %v7540_v35, %v10759_v14  ;;  %v4596_v55 = vrot.slane %v11730_v0, %v10733_v22  ;;  %v7557_v13 = vrot.slane %v7541_v26, %v10759_v14  ;;  %v12009_v26 = vpop.permute.xlu1 %7988 }
 0x3a9   :  { %v7538_v54 = vrot.slane %v7524_v19, %v10759_v14  ;;  %v7564_v30 = vrot.slane %v7542_v20, %v10759_v14  ;;  %v4600_v21 = vrot.slane %v11730_v0, %v10736_v29  ;;  %v4604_v31 = vrot.slane %v11730_v0, %v10739_v28 }
 0x3aa   :  { %v7571_v52 = vrot.slane %v7543_v50, %v10759_v14  ;;  %v4608_v49 = vrot.slane %v11730_v0, %v10742_v38  ;;  %v4612_v61 = vrot.slane %v11730_v0, %v10745_v40  ;;  %v7572_v53 = vcombine.low %v7550_v34, %v7557_v13 }
 0x3ab   :  { %v7539_v36 = vcombine.low %v7531_v60, %v7538_v54  ;;  %v4616_v57 = vrot.slane %v11730_v0, %v10748_v46  ;;  %v4620_v6 = vrot.slane %v11730_v0, %v10751_v42  ;;  %v7589_v2 = vcombine.low %v4592_v9, %v4596_v55 }
 0x3ac   :  { %v7573_v45 = vcombine.low %v7564_v30, %v7571_v52  ;;  %v7590_v7 = vcombine.low %v4600_v21, %v4604_v31  ;;  %v7591_v51 = vcombine.low %v4608_v49, %v4612_v61  ;;  %v7580_v56 = vrot.slane %v7572_v53, %v10759_v14 }
 0x3ad   :  { %8144 = vperm.xlu0 %9291, %v7539_v36   ;;  %v7592_v63 = vcombine.low %v4616_v57, %v4620_v6  ;;  %v4624_v62 = vrot.slane %v11754_v24, %v10730_v33  ;;  %v4628_v5 = vrot.slane %v11754_v24, %v10733_v22  ;;  %v7599_v12 = vrot.slane %v7589_v2, %v10759_v14 }
 0x3ae   :  { %v7587_v48 = vrot.slane %v7573_v45, %v10759_v14  ;;  %v7606_v0 = vrot.slane %v7590_v7, %v10759_v14  ;;  %v7613_v3 = vrot.slane %v7591_v51, %v10759_v14  ;;  %v4632_v58 = vrot.slane %v11754_v24, %v10736_v29 }
 0x3af   :  { %v7620_v43 = vrot.slane %v7592_v63, %v10759_v14  ;;  %v4636_v59 = vrot.slane %v11754_v24, %v10739_v28  ;;  %v4640_v25 = vrot.slane %v11754_v24, %v10742_v38  ;;  %v4644_v19 = vrot.slane %v11754_v24, %v10745_v40 }
 0x3b0   :  { %v7588_v44 = vcombine.low %v7580_v56, %v7587_v48  ;;  %v7621_v35 = vcombine.low %v7599_v12, %v7606_v0  ;;  %v4648_v60 = vrot.slane %v11754_v24, %v10748_v46  ;;  %v4652_v50 = vrot.slane %v11754_v24, %v10751_v42 }
 0x3b1   :  { %v7622_v20 = vcombine.low %v7613_v3, %v7620_v43  ;;  %v7638_v34 = vcombine.low %v4624_v62, %v4628_v5  ;;  %v7639_v9 = vcombine.low %v4632_v58, %v4636_v59  ;;  %v7640_v54 = vcombine.low %v4640_v25, %v4644_v19  ;;  %v12035_v62 = vpop.permute.xlu1 %7997  ;;  %v12044_v59 = vpop.permute.xlu0 %7994 }
 0x3b2   :  { %8147 = vperm.xlu1 %9292, %v7588_v44   ;;  %v7629_v55 = vrot.slane %v7621_v35, %v10759_v14  ;;  %v4688_v13 = vrot.slane %v11825_v16, %v10730_v33  ;;  %v4692_v30 = vrot.slane %v11825_v16, %v10733_v22  ;;  %v7641_v52 = vcombine.low %v4648_v60, %v4652_v50 }
 0x3b3   :  { %v7636_v21 = vrot.slane %v7622_v20, %v10759_v14  ;;  %v7648_v31 = vrot.slane %v7638_v34, %v10759_v14  ;;  %v7655_v49 = vrot.slane %v7639_v9, %v10759_v14  ;;  %v7662_v24 = vrot.slane %v7640_v54, %v10759_v14 }
 0x3b4   :  { %v4696_v61 = vrot.slane %v11825_v16, %v10736_v29  ;;  %v4700_v36 = vrot.slane %v11825_v16, %v10739_v28  ;;  %v4704_v53 = vrot.slane %v11825_v16, %v10742_v38  ;;  %v7669_v6 = vrot.slane %v7641_v52, %v10759_v14 }
 0x3b5   :  { %v7637_v57 = vcombine.low %v7629_v55, %v7636_v21  ;;  %v7670_v45 = vcombine.low %v7648_v31, %v7655_v49  ;;  %v4708_v2 = vrot.slane %v11825_v16, %v10745_v40  ;;  %v4712_v7 = vrot.slane %v11825_v16, %v10748_v46  ;;  %v12062_v49 = vpop.permute.xlu1 %8003 }
 0x3b6   :  { %v4716_v51 = vrot.slane %v11825_v16, %v10751_v42  ;;  %v7736_v56 = vcombine.low %v4688_v13, %v4692_v30  ;;  %v7737_v63 = vcombine.low %v4696_v61, %v4700_v36  ;;  %v7671_v5 = vcombine.low %v7662_v24, %v7669_v6 }
 0x3b7   :  { %8150 = vperm.xlu0 %9291, %v7637_v57   ;;  %v7678_v48 = vrot.slane %v7670_v45, %v10759_v14  ;;  %v7738_v12 = vcombine.low %v4704_v53, %v4708_v2  ;;  %v4656_v0 = vrot.slane %v11769_v23, %v10730_v33  ;;  %v4660_v16 = vrot.slane %v11769_v23, %v10733_v22  ;;  %v12073_v2 = vpop.permute.xlu0 %8000 }
 0x3b8   :  { %v7739_v3 = vcombine.low %v4712_v7, %v4716_v51  ;;  %v7746_v43 = vrot.slane %v7736_v56, %v10759_v14  ;;  %v7753_v58 = vrot.slane %v7737_v63, %v10759_v14  ;;  %v7685_v25 = vrot.slane %v7671_v5, %v10759_v14 }
 0x3b9   :  { %v7760_v44 = vrot.slane %v7738_v12, %v10759_v14  ;;  %v4664_v35 = vrot.slane %v11769_v23, %v10736_v29  ;;  %v4668_v19 = vrot.slane %v11769_v23, %v10739_v28  ;;  %v4672_v50 = vrot.slane %v11769_v23, %v10742_v38 }
 0x3ba   :  { %v7767_v60 = vrot.slane %v7739_v3, %v10759_v14  ;;  %v7768_v20 = vcombine.low %v7746_v43, %v7753_v58  ;;  %v4676_v34 = vrot.slane %v11769_v23, %v10745_v40  ;;  %v7686_v9 = vcombine.low %v7678_v48, %v7685_v25 }
 0x3bb   :  { %v4680_v55 = vrot.slane %v11769_v23, %v10748_v46  ;;  %v4684_v54 = vrot.slane %v11769_v23, %v10751_v42  ;;  %v7687_v13 = vcombine.low %v4656_v0, %v4660_v16  ;;  %v7688_v52 = vcombine.low %v4664_v35, %v4668_v19 }
 0x3bc   :  { %v7769_v30 = vcombine.low %v7760_v44, %v7767_v60  ;;  %v7776_v21 = vrot.slane %v7768_v20, %v10759_v14  ;;  %v7689_v31 = vcombine.low %v4672_v50, %v4676_v34  ;;  %v8881_v24 = vmul.f32 -1.442695, %v11689_v8  ;;  %8153 = vperm.xlu1 %9292, %v7686_v9   ;;  %v12091_v44 = vpop.permute.xlu1 %8009  ;;  %v12101_v34 = vpop.permute.xlu0 %8006 }
 0x3bd   :  { %v7690_v61 = vcombine.low %v4680_v55, %v4684_v54  ;;  %v7697_v36 = vrot.slane %v7687_v13, %v10759_v14  ;;  %v2832_v53 = vrot.slane %v11858_v27, %v10730_v33  ;;  %v7704_v23 = vrot.slane %v7688_v52, %v10759_v14 }
 0x3be   :  { %v7783_v57 = vrot.slane %v7769_v30, %v10759_v14  ;;  %v7711_v6 = vrot.slane %v7689_v31, %v10759_v14  ;;  %v2836_v45 = vrot.slane %v11858_v27, %v10733_v22  ;;  %9531 = vrcp.f32 %v11779_v39 }
 0x3bf   :  { %v7718_v8 = vrot.slane %v7690_v61, %v10759_v14  ;;  %v2840_v7 = vrot.slane %v11858_v27, %v10736_v29  ;;  %v2844_v51 = vrot.slane %v11858_v27, %v10739_v28  ;;  %v7719_v63 = vcombine.low %v7697_v36, %v7704_v23 }
 0x3c0   :  { %v7784_v56 = vcombine.low %v7776_v21, %v7783_v57  ;;  %v2848_v5 = vrot.slane %v11858_v27, %v10742_v38  ;;  %v2852_v48 = vrot.slane %v11858_v27, %v10745_v40  ;;  %v2586_v12 = vadd.f32 1.0, %v11426_v41 }
 0x3c1   :  { %v7720_v0 = vcombine.low %v7711_v6, %v7718_v8  ;;  %v2856_v39 = vrot.slane %v11858_v27, %v10748_v46  ;;  %v2860_v3 = vrot.slane %v11858_v27, %v10751_v42  ;;  %v7727_v43 = vrot.slane %v7719_v63, %v10759_v14 }
 0x3c2   :  { %8159 = vperm.xlu1 %9292, %v7784_v56   ;;  %v4894_v58 = vcombine.low %v2832_v53, %v2836_v45  ;;  %v4895_v16 = vcombine.low %v2840_v7, %v2844_v51  ;;  %v4896_v25 = vcombine.low %v2848_v5, %v2852_v48  ;;  %9533 = vpow2.f32 %v8881_v24  ;;  %v12118_v45 = vpop.permute.xlu1 %8015  ;;  %v12129_v48 = vpop.permute.xlu0 %8012 }
 0x3c3   :  { %v7734_v35 = vrot.slane %v7720_v0, %v10759_v14  ;;  %v4897_v19 = vcombine.low %v2856_v39, %v2860_v3  ;;  %v2800_v41 = vrot.slane %v11866_v11, %v10730_v33  ;;  %v2804_v50 = vrot.slane %v11866_v11, %v10733_v22 }
 0x3c4   :  { %v4904_v60 = vrot.slane %v4894_v58, %v10759_v14  ;;  %v4911_v20 = vrot.slane %v4895_v16, %v10759_v14  ;;  %v4918_v27 = vrot.slane %v4896_v25, %v10759_v14  ;;  %9535 = vrcp.f32 %v2586_v12 }
 0x3c5   :  { %v7735_v9 = vcombine.low %v7727_v43, %v7734_v35  ;;  %v4925_v55 = vrot.slane %v4897_v19, %v10759_v14  ;;  %v2808_v54 = vrot.slane %v11866_v11, %v10736_v29  ;;  %v2812_v30 = vrot.slane %v11866_v11, %v10739_v28 }
 0x3c6   :  { %v4926_v13 = vcombine.low %v4904_v60, %v4911_v20  ;;  %v2816_v21 = vrot.slane %v11866_v11, %v10742_v38  ;;  %v2820_v52 = vrot.slane %v11866_v11, %v10745_v40  ;;  %v2602_v31 = vadd.f32 1.0, %v11801_v47 }
 0x3c7   :  { %8156 = vperm.xlu1 %9292, %v7735_v9   ;;  %v4927_v24 = vcombine.low %v4918_v27, %v4925_v55  ;;  %v2824_v61 = vrot.slane %v11866_v11, %v10748_v46  ;;  %v2828_v36 = vrot.slane %v11866_v11, %v10751_v42  ;;  %v4845_v57 = vcombine.low %v2800_v41, %v2804_v50  ;;  %v12146_v9 = vpop.permute.xlu1 %8021 }
 0x3c8   :  { %v4934_v53 = vrot.slane %v4926_v13, %v10759_v14  ;;  %v4846_v23 = vcombine.low %v2808_v54, %v2812_v30  ;;  %v4847_v6 = vcombine.low %v2816_v21, %v2820_v52  ;;  %v8882_v8 = vmul.f32 -1.442695, %v11703_v32 }
 0x3c9   :  { %v4941_v7 = vrot.slane %v4927_v24, %v10759_v14  ;;  %v4848_v47 = vcombine.low %v2824_v61, %v2828_v36  ;;  %v4208_v51 = vrot.slane %v11486_v4, %v10730_v33  ;;  %v4855_v56 = vrot.slane %v4845_v57, %v10759_v14 }
 0x3ca   :  { %v4862_v63 = vrot.slane %v4846_v23, %v10759_v14  ;;  %v4869_v11 = vrot.slane %v4847_v6, %v10759_v14  ;;  %v4212_v5 = vrot.slane %v11486_v4, %v10733_v22  ;;  %9537 = vrcp.f32 %v2602_v31  ;;  %v12154_v31 = vpop.permute.xlu0 %8018 }
 0x3cb   :  { %v4942_v12 = vcombine.low %v4934_v53, %v4941_v7  ;;  %v4876_v32 = vrot.slane %v4848_v47, %v10759_v14  ;;  %v4216_v0 = vrot.slane %v11486_v4, %v10736_v29  ;;  %v9532_v39 = vpop.eup %9531  ;;  %v4220_v43 = vrot.slane %v11486_v4, %v10739_v28 }
 0x3cc   :  { %v4877_v3 = vcombine.low %v4855_v56, %v4862_v63  ;;  %v4224_v58 = vrot.slane %v11486_v4, %v10742_v38  ;;  %v4228_v16 = vrot.slane %v11486_v4, %v10745_v40  ;;  %v2587_v25 = vadd.f32 1.0, %v11484_v17 }
 0x3cd   :  { %7985 = vperm.xlu0 %9291, %v4942_v12   ;;  %v4878_v35 = vcombine.low %v4869_v11, %v4876_v32  ;;  %v4232_v19 = vrot.slane %v11486_v4, %v10748_v46  ;;  %v4236_v41 = vrot.slane %v11486_v4, %v10751_v42  ;;  %v7001_v20 = vcombine.low %v4208_v51, %v4212_v5  ;;  %v12164_v32 = vpop.permute.xlu1 %8027 }
 0x3ce   :  { %v4885_v60 = vrot.slane %v4877_v3, %v10759_v14  ;;  %v7002_v27 = vcombine.low %v4216_v0, %v4220_v43  ;;  %v7003_v50 = vcombine.low %v4224_v58, %v4228_v16  ;;  %9539 = vpow2.f32 %v8882_v8  ;;  %12577 = vst [vmem:[#allocation6_spill] sm:$0xff] %v12164_v32 }
 0x3cf   :  { %v4892_v55 = vrot.slane %v4878_v35, %v10759_v14  ;;  %v7004_v54 = vcombine.low %v4232_v19, %v4236_v41  ;;  %v4720_v17 = vrot.slane %v9532_v39, %v10730_v33  ;;  %v9534_v13 = vpop.eup %9533  ;;  %v7011_v30 = vrot.slane %v7001_v20, %v10759_v14  ;;  %v12172_v35 = vpop.permute.xlu0 %8024 }
 0x3d0   :  { %v7018_v21 = vrot.slane %v7002_v27, %v10759_v14  ;;  %v7025_v4 = vrot.slane %v7003_v50, %v10759_v14  ;;  %v4724_v52 = vrot.slane %v9532_v39, %v10733_v22  ;;  %9541 = vrcp.f32 %v2587_v25  ;;  %12578 = vst [vmem:[#allocation7_spill] sm:$0xff] %v12172_v35 }
 0x3d1   :  { %v4893_v24 = vcombine.low %v4885_v60, %v4892_v55  ;;  %v7032_v61 = vrot.slane %v7004_v54, %v10759_v14  ;;  %v4728_v36 = vrot.slane %v9532_v39, %v10736_v29  ;;  %v9536_v53 = vpop.eup %9535  ;;  %v4732_v23 = vrot.slane %v9532_v39, %v10739_v28 }
 0x3d2   :  { %v7033_v57 = vcombine.low %v7011_v30, %v7018_v21  ;;  %v4736_v6 = vrot.slane %v9532_v39, %v10742_v38  ;;  %v4740_v8 = vrot.slane %v9532_v39, %v10745_v40  ;;  %v2603_v7 = vadd.f32 1.0, %v9534_v13 }
 0x3d3   :  { %7982 = vperm.xlu1 %9292, %v4893_v24   ;;  %v7034_v47 = vcombine.low %v7025_v4, %v7032_v61  ;;  %v4744_v51 = vrot.slane %v9532_v39, %v10748_v46  ;;  %v4748_v56 = vrot.slane %v9532_v39, %v10751_v42  ;;  %v7785_v11 = vcombine.low %v4720_v17, %v4724_v52 }
 0x3d4   :  { %v7041_v63 = vrot.slane %v7033_v57, %v10759_v14  ;;  %v7786_v5 = vcombine.low %v4728_v36, %v4732_v23  ;;  %v7787_v12 = vcombine.low %v4736_v6, %v4740_v8  ;;  %v4240_v43 = vrot.slane %v9536_v53, %v10730_v33  ;;  %v12183_v36 = vpop.permute.xlu1 %8033 }
 0x3d5   :  { %v7048_v0 = vrot.slane %v7034_v47, %v10759_v14  ;;  %v7788_v3 = vcombine.low %v4744_v51, %v4748_v56  ;;  %v7795_v58 = vrot.slane %v7785_v11, %v10759_v14  ;;  %v4244_v39 = vrot.slane %v9536_v53, %v10733_v22  ;;  %v12191_v51 = vpop.permute.xlu0 %8030 }
 0x3d6   :  { %v7802_v16 = vrot.slane %v7786_v5, %v10759_v14  ;;  %v7809_v25 = vrot.slane %v7787_v12, %v10759_v14  ;;  %9543 = vrcp.f32 %v2603_v7  ;;  %v4248_v60 = vrot.slane %v9536_v53, %v10736_v29 }
 0x3d7   :  { %v7049_v19 = vcombine.low %v7041_v63, %v7048_v0  ;;  %v7816_v41 = vrot.slane %v7788_v3, %v10759_v14  ;;  %v9538_v20 = vpop.eup %9537  ;;  %v4252_v50 = vrot.slane %v9536_v53, %v10739_v28  ;;  %v4256_v55 = vrot.slane %v9536_v53, %v10742_v38 }
 0x3d8   :  { %v7817_v27 = vcombine.low %v7795_v58, %v7802_v16  ;;  %v4260_v54 = vrot.slane %v9536_v53, %v10745_v40  ;;  %v2588_v17 = vadd.f32 1.0, %v11532_v37  ;;  %v4264_v30 = vrot.slane %v9536_v53, %v10748_v46 }
 0x3d9   :  { %8114 = vperm.xlu0 %9291, %v7049_v19   ;;  %v7818_v13 = vcombine.low %v7809_v25, %v7816_v41  ;;  %v4268_v21 = vrot.slane %v9536_v53, %v10751_v42  ;;  %v7050_v52 = vcombine.low %v4240_v43, %v4244_v39  ;;  %v7051_v24 = vcombine.low %v4248_v60, %v4252_v50  ;;  %v12201_v50 = vpop.permute.xlu1 %8039 }
 0x3da   :  { %v7825_v4 = vrot.slane %v7817_v27, %v10759_v14  ;;  %v7052_v61 = vcombine.low %v4256_v55, %v4260_v54  ;;  %v4752_v6 = vrot.slane %v9538_v20, %v10730_v33  ;;  %v4756_v53 = vrot.slane %v9538_v20, %v10733_v22 }
 0x3db   :  { %v7832_v57 = vrot.slane %v7818_v13, %v10759_v14  ;;  %v7053_v23 = vcombine.low %v4264_v30, %v4268_v21  ;;  %v9540_v8 = vpop.eup %9539  ;;  %v7060_v37 = vrot.slane %v7050_v52, %v10759_v14  ;;  %v7067_v7 = vrot.slane %v7051_v24, %v10759_v14 }
 0x3dc   :  { %v7074_v47 = vrot.slane %v7052_v61, %v10759_v14  ;;  %9545 = vrcp.f32 %v2588_v17  ;;  %v4760_v11 = vrot.slane %v9538_v20, %v10736_v29  ;;  %v4764_v0 = vrot.slane %v9538_v20, %v10739_v28 }
 0x3dd   :  { %v7833_v56 = vcombine.low %v7825_v4, %v7832_v57  ;;  %v7081_v63 = vrot.slane %v7053_v23, %v10759_v14  ;;  %v9542_v5 = vpop.eup %9541  ;;  %v7082_v12 = vcombine.low %v7060_v37, %v7067_v7  ;;  %v4768_v3 = vrot.slane %v9538_v20, %v10742_v38  ;;  %v12209_v4 = vpop.permute.xlu0 %8036 }
 0x3de   :  { %v4772_v43 = vrot.slane %v9538_v20, %v10745_v40  ;;  %v2604_v58 = vadd.f32 1.0, %v9540_v8  ;;  %v4776_v25 = vrot.slane %v9538_v20, %v10748_v46  ;;  %v4780_v39 = vrot.slane %v9538_v20, %v10751_v42 }
 0x3df   :  { %8162 = vperm.xlu1 %9292, %v7833_v56   ;;  %v7083_v16 = vcombine.low %v7074_v47, %v7081_v63  ;;  %v7090_v19 = vrot.slane %v7082_v12, %v10759_v14  ;;  %v7834_v41 = vcombine.low %v4752_v6, %v4756_v53  ;;  %v7835_v60 = vcombine.low %v4760_v11, %v4764_v0  ;;  %v12219_v0 = vpop.permute.xlu1 %8045 }
 0x3e0   :  { %v7836_v27 = vcombine.low %v4768_v3, %v4772_v43  ;;  %v7837_v54 = vcombine.low %v4776_v25, %v4780_v39  ;;  %v4272_v17 = vrot.slane %v9542_v5, %v10730_v33  ;;  %v4276_v20 = vrot.slane %v9542_v5, %v10733_v22 }
 0x3e1   :  { %v7097_v55 = vrot.slane %v7083_v16, %v10759_v14  ;;  %v7844_v13 = vrot.slane %v7834_v41, %v10759_v14  ;;  %v7851_v30 = vrot.slane %v7835_v60, %v10759_v14  ;;  %9547 = vrcp.f32 %v2604_v58 }
 0x3e2   :  { %v7858_v21 = vrot.slane %v7836_v27, %v10759_v14  ;;  %v7865_v24 = vrot.slane %v7837_v54, %v10759_v14  ;;  %v4280_v61 = vrot.slane %v9542_v5, %v10736_v29  ;;  %v4284_v6 = vrot.slane %v9542_v5, %v10739_v28 }
 0x3e3   :  { %v7098_v52 = vcombine.low %v7090_v19, %v7097_v55  ;;  %v9544_v57 = vpop.eup %9543  ;;  %v7866_v23 = vcombine.low %v7844_v13, %v7851_v30  ;;  %v4288_v8 = vrot.slane %v9542_v5, %v10742_v38  ;;  %v4292_v37 = vrot.slane %v9542_v5, %v10745_v40  ;;  %v12227_v19 = vpop.permute.xlu0 %8042 }
 0x3e4   :  { %v7867_v7 = vcombine.low %v7858_v21, %v7865_v24  ;;  %v4296_v47 = vrot.slane %v9542_v5, %v10748_v46  ;;  %v4300_v53 = vrot.slane %v9542_v5, %v10751_v42  ;;  %v7099_v63 = vcombine.low %v4272_v17, %v4276_v20 }
 0x3e5   :  { %8117 = vperm.xlu0 %9291, %v7098_v52   ;;  %v7874_v56 = vrot.slane %v7866_v23, %v10759_v14  ;;  %v7100_v11 = vcombine.low %v4280_v61, %v4284_v6  ;;  %v7101_v12 = vcombine.low %v4288_v8, %v4292_v37  ;;  %v4784_v58 = vrot.slane %v9544_v57, %v10730_v33  ;;  %v12237_v8 = vpop.permute.xlu1 %8051 }
 0x3e6   :  { %v7881_v3 = vrot.slane %v7867_v7, %v10759_v14  ;;  %v7102_v43 = vcombine.low %v4296_v47, %v4300_v53  ;;  %v7109_v16 = vrot.slane %v7099_v63, %v10759_v14  ;;  %v4788_v5 = vrot.slane %v9544_v57, %v10733_v22 }
 0x3e7   :  { %v7116_v25 = vrot.slane %v7100_v11, %v10759_v14  ;;  %v7123_v39 = vrot.slane %v7101_v12, %v10759_v14  ;;  %v4792_v27 = vrot.slane %v9544_v57, %v10736_v29  ;;  %v4796_v17 = vrot.slane %v9544_v57, %v10739_v28  ;;  %v12245_v11 = vpop.permute.xlu0 %8048 }
 0x3e8   :  { %v7882_v41 = vcombine.low %v7874_v56, %v7881_v3  ;;  %v7130_v60 = vrot.slane %v7102_v43, %v10759_v14  ;;  %v4800_v13 = vrot.slane %v9544_v57, %v10742_v38  ;;  %v4804_v30 = vrot.slane %v9544_v57, %v10745_v40 }
 0x3e9   :  { %v9546_v55 = vpop.eup %9545  ;;  %v7131_v54 = vcombine.low %v7109_v16, %v7116_v25  ;;  %v4808_v20 = vrot.slane %v9544_v57, %v10748_v46  ;;  %v4812_v52 = vrot.slane %v9544_v57, %v10751_v42  ;;  %v7883_v61 = vcombine.low %v4784_v58, %v4788_v5 }
 0x3ea   :  { %8165 = vperm.xlu1 %9292, %v7882_v41   ;;  %v7132_v21 = vcombine.low %v7123_v39, %v7130_v60  ;;  %v7884_v23 = vcombine.low %v4792_v27, %v4796_v17  ;;  %v7885_v6 = vcombine.low %v4800_v13, %v4804_v30  ;;  %v4304_v47 = vrot.slane %v9546_v55, %v10730_v33 }
 0x3eb   :  { %v7139_v24 = vrot.slane %v7131_v54, %v10759_v14  ;;  %v7886_v7 = vcombine.low %v4808_v20, %v4812_v52  ;;  %v7893_v53 = vrot.slane %v7883_v61, %v10759_v14  ;;  %v4308_v57 = vrot.slane %v9546_v55, %v10733_v22 }
 0x3ec   :  { %v7146_v37 = vrot.slane %v7132_v21, %v10759_v14  ;;  %v7900_v56 = vrot.slane %v7884_v23, %v10759_v14  ;;  %v7907_v63 = vrot.slane %v7885_v6, %v10759_v14  ;;  %v4312_v43 = vrot.slane %v9546_v55, %v10736_v29  ;;  %v12255_v21 = vpop.permute.xlu1 %8057 }
 0x3ed   :  { %v7914_v3 = vrot.slane %v7886_v7, %v10759_v14  ;;  %v4316_v25 = vrot.slane %v9546_v55, %v10739_v28  ;;  %v4320_v39 = vrot.slane %v9546_v55, %v10742_v38  ;;  %v4324_v5 = vrot.slane %v9546_v55, %v10745_v40 }
 0x3ee   :  { %v7147_v12 = vcombine.low %v7139_v24, %v7146_v37  ;;  %v9548_v58 = vpop.eup %9547  ;;  %v7915_v16 = vcombine.low %v7893_v53, %v7900_v56  ;;  %v4328_v60 = vrot.slane %v9546_v55, %v10748_v46  ;;  %v4332_v27 = vrot.slane %v9546_v55, %v10751_v42  ;;  %v12263_v37 = vpop.permute.xlu0 %8054 }
 0x3ef   :  { %v7916_v41 = vcombine.low %v7907_v63, %v7914_v3  ;;  %v7148_v17 = vcombine.low %v4304_v47, %v4308_v57  ;;  %v7149_v13 = vcombine.low %v4312_v43, %v4316_v25  ;;  %v7150_v30 = vcombine.low %v4320_v39, %v4324_v5 }
 0x3f0   :  { %8120 = vperm.xlu0 %9291, %v7147_v12   ;;  %v7923_v54 = vrot.slane %v7915_v16, %v10759_v14  ;;  %v7151_v52 = vcombine.low %v4328_v60, %v4332_v27  ;;  %v4816_v24 = vrot.slane %v9548_v58, %v10730_v33  ;;  %v4820_v55 = vrot.slane %v9548_v58, %v10733_v22  ;;  %v12273_v5 = vpop.permute.xlu1 %8063 }
 0x3f1   :  { %v7930_v20 = vrot.slane %v7916_v41, %v10759_v14  ;;  %v7158_v61 = vrot.slane %v7148_v17, %v10759_v14  ;;  %v7165_v23 = vrot.slane %v7149_v13, %v10759_v14  ;;  %v7172_v6 = vrot.slane %v7150_v30, %v10759_v14 }
 0x3f2   :  { %v7179_v47 = vrot.slane %v7151_v52, %v10759_v14  ;;  %v4824_v53 = vrot.slane %v9548_v58, %v10736_v29  ;;  %v4828_v63 = vrot.slane %v9548_v58, %v10739_v28  ;;  %v4832_v33 = vrot.slane %v9548_v58, %v10742_v38  ;;  %v12279_v60 = vpop.permute.xlu0 %8060 }
 0x3f3   :  { %v7931_v7 = vcombine.low %v7923_v54, %v7930_v20  ;;  %v7180_v56 = vcombine.low %v7158_v61, %v7165_v23  ;;  %v4836_v57 = vrot.slane %v9548_v58, %v10745_v40  ;;  %v4840_v3 = vrot.slane %v9548_v58, %v10748_v46 }
 0x3f4   :  { %v7181_v12 = vcombine.low %v7172_v6, %v7179_v47  ;;  %v4844_v22 = vrot.slane %v9548_v58, %v10751_v42  ;;  %v7932_v16 = vcombine.low %v4816_v24, %v4820_v55  ;;  %v7933_v25 = vcombine.low %v4824_v53, %v4828_v63  ;;  %v12283_v17 = vpop.permute.xlu1 %8069 }
 0x3f5   :  { %8168 = vperm.xlu1 %9292, %v7931_v7   ;;  %v7188_v43 = vrot.slane %v7180_v56, %v10759_v14  ;;  %v7934_v39 = vcombine.low %v4832_v33, %v4836_v57  ;;  %v12350_v32 = vsub.s32 %v8191_v10, %v10727_v1 }
 0x3f6   :  { %v7195_v29 = vrot.slane %v7181_v12, %v10759_v14  ;;  %v7935_v28 = vcombine.low %v4840_v3, %v4844_v22  ;;  %v7942_v38 = vrot.slane %v7932_v16, %v10759_v14  ;;  %v7949_v40 = vrot.slane %v7933_v25, %v10759_v14  ;;  %v12286_v30 = vpop.permute.xlu0 %8066 }
 0x3f7   :  { %v7956_v41 = vrot.slane %v7934_v39, %v10759_v14  ;;  %v8195_v10 = vrot.slane %v11983_v18, %v12350_v32 }
 0x3f8   :  { %v7196_v46 = vcombine.low %v7188_v43, %v7195_v29  ;;  %v7963_v42 = vrot.slane %v7935_v28, %v10759_v14  ;;  %v7964_v58 = vcombine.low %v7942_v38, %v7949_v40  ;;  %v12288_v52 = vpop.permute.xlu1 %8075 }
 0x3f9   :  { %12579 = vst [vmem:[#allocation8_spill] sm:$0xff] %v12288_v52 }
 0x3fa   :  { %8123 = vperm.xlu0 %9291, %v7196_v46   ;;  %v7965_v27 = vcombine.low %v7956_v41, %v7963_v42  ;;  %v7972_v54 = vrot.slane %v7964_v58, %v10759_v14  ;;  %v12290_v24 = vpop.permute.xlu0 %8072  ;;  %v8177_v41 = vadd.s32 4294967288, %v9858_v15  ;;  %v8184_v58 = vadd.s32 4294967280, %v9858_v15 }
 0x3fb   :  { %12580 = vst [vmem:[#allocation9_spill] sm:$0xff] %v12290_v24  ;;  %v8198_v24 = vadd.s32 4294967264, %v9858_v15 }
 0x3fc   :  { %v7979_v13 = vrot.slane %v7965_v27, %v10759_v14  ;;  %v12292_v61 = vpop.permute.xlu1 %8081  ;;  %v8175_v27 = vsub.s32 %v9858_v15, %v10727_v1 }
 0x3fe   :  { %v7980_v20 = vcombine.low %v7972_v54, %v7979_v13  ;;  %v12294_v23 = vpop.permute.xlu0 %8078  ;;  %v8180_v54 = vsub.s32 %v8177_v41, %v10727_v1  ;;  %v8285_v35 = vrot.slane %v12191_v51, %v8175_v27 }
 0x400   :  { %8171 = vperm.xlu1 %9292, %v7980_v20   ;;  %v12296_v6 = vpop.permute.xlu1 %8087 }
 0x402   :  { %v12298_v55 = vpop.permute.xlu0 %8084 }
 0x404   :  { %v12300_v7 = vpop.permute.xlu1 %8093 }
 0x406   :  { %v12302_v47 = vpop.permute.xlu0 %8090 }
 0x408   :  { %v12304_v53 = vpop.permute.xlu1 %8099 }
 0x40a   :  { %v12306_v56 = vpop.permute.xlu0 %8096 }
 0x40c   :  { %v12308_v63 = vpop.permute.xlu1 %8105 }
 0x40e   :  { %v12310_v33 = vpop.permute.xlu0 %8102 }
 0x410   :  { %v12312_v57 = vpop.permute.xlu1 %8129 }
 0x412   :  { %v12314_v12 = vpop.permute.xlu0 %8111 }
 0x413   :  { %12581 = vst [vmem:[#allocation10_spill] sm:$0xff] %v12314_v12  ;;  %v8289_v12 = vrot.slane %v12183_v36, %v8180_v54  ;;  %v12359_v36 = vsub.s32 %v8198_v24, %v10727_v1 }
 0x415   :  { %v8202_v24 = vrot.slane %v12044_v59, %v12359_v36  ;;  %v8304_v18 = vrot.slane %v12227_v19, %v12359_v36  ;;  %v8447_v19 = vrot.slane %v12312_v57, %v8180_v54 }
 0x416   :  { %v12318_v22 = vpop.permute.xlu0 %8108 }
 0x418   :  { %v12316_v3 = vpop.permute.xlu1 %8135 }
 0x41a   :  { %v12320_v43 = vpop.permute.xlu0 %8126 }
 0x41e   :  { %v12324_v25 = vpop.permute.xlu0 %8132 }
 0x422   :  { %v12322_v16 = vpop.permute.xlu1 %8141  ;;  %v12328_v29 = vpop.permute.xlu0 %8138 }
 0x428   :  { %v12332_v38 = vpop.permute.xlu0 %8144 }
 0x42d   :  { %v12326_v39 = vpop.permute.xlu1 %8147 }
 0x432   :  { %v12337_v46 = vpop.permute.xlu0 %8150 }
 0x437   :  { %v12330_v28 = vpop.permute.xlu1 %8153 }
 0x438   :  { %12582 = vst [vmem:[#allocation11_spill] sm:$0xff] %v12330_v28 }
 0x43d   :  { %v12334_v40 = vpop.permute.xlu1 %8159 }
 0x43e   :  { %12583 = vst [vmem:[#allocation12_spill] sm:$0xff] %v12334_v40  ;;  %v8187_v40 = vsub.s32 %v8184_v58, %v10727_v1  ;;  %v8290_v58 = vsel %vm8182_vm0, %v8289_v12, %v8285_v35  ;;  %v8219_v35 = vadd.s32 4294967240, %v9858_v15 }
 0x440   :  { %v8294_v28 = vrot.slane %v12209_v4, %v8187_v40 }
 0x442   :  { %v12339_v42 = vpop.permute.xlu1 %8156  ;;  %v8295_v51 = vsel %vm8189_vm10, %v8294_v28, %v8290_v58  ;;  %v8368_v28 = vrot.slane %v12292_v61, %v8180_v54  ;;  %v8226_v58 = vadd.s32 4294967232, %v9858_v15  ;;  %v8364_v61 = vrot.slane %v12294_v23, %v8175_v27 }
 0x443   :  { %12584 = vst [vmem:[#allocation13_spill] sm:$0xff] %v12339_v42  ;;  %v8188_v42 = vrot.slane %v12009_v26, %v8187_v40  ;;  %v8212_v26 = vadd.s32 4294967248, %v9858_v15 }
 0x445   :  { %v12379_v12 = vsub.s32 %v8212_v26, %v10727_v1 }
 0x447   :  { %v8314_v57 = vrot.slane %v12245_v11, %v12379_v12 }
 0x448   :  { %v7986_v13 = vpop.permute.xlu0 %7985 }
 0x449   :  { %v8181_v52 = vrot.slane %v7986_v13, %v8180_v54  ;;  %v8369_v54 = vsel %vm8182_vm0, %v8368_v28, %v8364_v61  ;;  %v8254_v61 = vadd.s32 4294967200, %v9858_v15 }
 0x44e   :  { %v7983_v20 = vpop.permute.xlu1 %7982 }
 0x44f   :  { %v8176_v14 = vrot.slane %v7983_v20, %v8175_v27  ;;  %v8205_v20 = vadd.s32 4294967256, %v9858_v15 }
 0x451   :  { %v8183_v41 = vsel %vm8182_vm0, %v8181_v52, %v8176_v14  ;;  %v8299_v14 = vrot.slane %v12201_v50, %v12350_v32  ;;  %v12369_v4 = vsub.s32 %v8205_v20, %v10727_v1  ;;  %v12386_v20 = vsub.s32 %v8219_v35, %v10727_v1 }
 0x452   :  { %v8190_v13 = vsel %vm8189_vm10, %v8188_v42, %v8183_v41 }
 0x453   :  { %v8197_v52 = vsel %vm8196_vm11, %v8195_v10, %v8190_v13  ;;  %v8300_v50 = vsel %vm8196_vm11, %v8299_v14, %v8295_v51  ;;  %v8209_v41 = vrot.slane %v12035_v62, %v12369_v4  ;;  %v8309_v59 = vrot.slane %v12219_v0, %v12369_v4 }
 0x454   :  { %v8204_v42 = vsel %vm8203_vm12, %v8202_v24, %v8197_v52  ;;  %v8305_v13 = vsel %vm8203_vm12, %v8304_v18, %v8300_v50  ;;  %v8233_v10 = vadd.s32 4294967224, %v9858_v15  ;;  %v8373_v14 = vrot.slane %v12298_v55, %v8187_v40 }
 0x455   :  { %v8443_v62 = vrot.slane %v12320_v43, %v8175_v27  ;;  %v8211_v26 = vsel %vm8210_vm13, %v8209_v41, %v8204_v42  ;;  %v8216_v0 = vrot.slane %v12073_v2, %v12379_v12  ;;  %v8452_v51 = vrot.slane %v12324_v25, %v8187_v40 }
 0x456   :  { %v8310_v23 = vsel %vm8210_vm13, %v8309_v59, %v8305_v13  ;;  %v8223_v55 = vrot.slane %v12062_v49, %v12386_v20  ;;  %v12409_v43 = vsub.s32 %v8226_v58, %v10727_v1  ;;  %v8378_v2 = vrot.slane %v12296_v6, %v12350_v32  ;;  %v12446_v58 = vpop.permute.xlu0 %8114 }
 0x457   :  { %v8448_v35 = vsel %vm8182_vm0, %v8447_v19, %v8443_v62  ;;  %v8218_v11 = vsel %vm8217_vm14, %v8216_v0, %v8211_v26  ;;  %v12415_v27 = vsub.s32 %v8233_v10, %v10727_v1  ;;  %v8319_v25 = vrot.slane %v12237_v8, %v12386_v20 }
 0x458   :  { %v8374_v40 = vsel %vm8189_vm10, %v8373_v14, %v8369_v54  ;;  %v8457_v52 = vrot.slane %v12316_v3, %v12350_v32  ;;  %v8240_v49 = vadd.s32 4294967216, %v9858_v15  ;;  %v8315_v24 = vsel %vm8217_vm14, %v8314_v57, %v8310_v23 }
 0x459   :  { %v8453_v6 = vsel %vm8189_vm10, %v8452_v51, %v8448_v35  ;;  %v8247_v18 = vadd.s32 4294967208, %v9858_v15  ;;  %v8383_v50 = vrot.slane %v12302_v47, %v12359_v36  ;;  %v8225_v28 = vsel %vm8224_vm15, %v8223_v55, %v8218_v11 }
 0x45a   :  { %v8230_v8 = vrot.slane %v12101_v34, %v12409_v43  ;;  %v8324_v32 = vrot.slane %v12263_v37, %v12409_v43  ;;  %v8379_v3 = vsel %vm8196_vm11, %v8378_v2, %v8374_v40  ;;  %v8462_v42 = vrot.slane %v12328_v29, %v12359_v36  ;;  %v12470_v57 = vpop.permute.xlu1 %8162 }
 0x45b   :  { %v8320_v41 = vsel %vm8224_vm15, %v8319_v25, %v8315_v24  ;;  %v8458_v59 = vsel %vm8196_vm11, %v8457_v52, %v8453_v6  ;;  %v8237_v47 = vrot.slane %v12091_v44, %v12415_v27  ;;  %v12441_v19 = vsub.s32 %v8240_v49, %v10727_v1 }
 0x45c   :  { %v8388_v34 = vrot.slane %v12300_v7, %v12369_v4  ;;  %v8232_v37 = vsel %vm8231_vm1, %v8230_v8, %v8225_v28  ;;  %v12449_v29 = vsub.s32 %v8247_v18, %v10727_v1  ;;  %v8329_v36 = vrot.slane %v12255_v21, %v12415_v27 }
 0x45d   :  { %v8384_v13 = vsel %vm8203_vm12, %v8383_v50, %v8379_v3  ;;  %v8467_v44 = vrot.slane %v12322_v16, %v12369_v4  ;;  %v8325_v10 = vsel %vm8231_vm1, %v8324_v32, %v8320_v41  ;;  %v8463_v7 = vsel %vm8203_vm12, %v8462_v42, %v8458_v59  ;;  %v12585_v32 = vld [vmem:[#allocation11_spill] sm:$0xff] }
 0x45e   :  { %v8261_v14 = vadd.s32 4294967192, %v9858_v15  ;;  %v8393_v62 = vrot.slane %v12306_v56, %v12379_v12  ;;  %v8239_v26 = vsel %vm8238_vm2, %v8237_v47, %v8232_v37  ;;  %v8244_v21 = vrot.slane %v12129_v48, %v12441_v19  ;;  %v12587_v41 = vld [vmem:[#allocation7_spill] sm:$0xff]  ;;  %v12588_v47 = vld [vmem:[#allocation6_spill] sm:$0xff]  ;;  %v12589_v37 = vld [vmem:[#allocation9_spill] sm:$0xff] }
 0x45f   :  { %v8334_v16 = vrot.slane %v12279_v60, %v12441_v19  ;;  %v8389_v4 = vsel %vm8210_vm13, %v8388_v34, %v8384_v13  ;;  %v8472_v0 = vrot.slane %v12332_v38, %v12379_v12  ;;  %v8251_v54 = vrot.slane %v12118_v45, %v12449_v29 }
 0x460   :  { %v8330_v56 = vsel %vm8238_vm2, %v8329_v36, %v8325_v10  ;;  %v8468_v51 = vsel %vm8210_vm13, %v8467_v44, %v8463_v7  ;;  %v12477_v48 = vsub.s32 %v8254_v61, %v10727_v1  ;;  %v8268_v60 = vadd.s32 4294967184, %v9858_v15  ;;  %v12482_v35 = vpop.permute.xlu0 %8117  ;;  %v12590_v44 = vld [vmem:[#allocation8_spill] sm:$0xff] }
 0x461   :  { %v8398_v23 = vrot.slane %v12304_v53, %v12386_v20  ;;  %v8246_v38 = vsel %vm8245_vm3, %v8244_v21, %v8239_v26  ;;  %v12486_v12 = vsub.s32 %v8261_v14, %v10727_v1  ;;  %v8339_v45 = vrot.slane %v12273_v5, %v12449_v29 }
 0x462   :  { %v8394_v55 = vsel %vm8217_vm14, %v8393_v62, %v8389_v4  ;;  %v8477_v2 = vrot.slane %v12326_v39, %v12386_v20  ;;  %v8275_v11 = vadd.s32 4294967176, %v9858_v15  ;;  %v8335_v25 = vsel %vm8245_vm3, %v8334_v16, %v8330_v56  ;;  %v12591_v16 = vld [vmem:[#allocation10_spill] sm:$0xff] }
 0x463   :  { %v8473_v53 = vsel %vm8217_vm14, %v8472_v0, %v8468_v51  ;;  %v8403_v40 = vrot.slane %v12310_v33, %v12409_v43  ;;  %v8253_v52 = vsel %vm8252_vm4, %v8251_v54, %v8246_v38  ;;  %v8258_v5 = vrot.slane %v12154_v31, %v12477_v48  ;;  %v12592_v0 = vld [vmem:[#allocation12_spill] sm:$0xff] }
 0x464   :  { %v8344_v49 = vrot.slane %v12286_v30, %v12477_v48  ;;  %v8399_v39 = vsel %vm8224_vm15, %v8398_v23, %v8394_v55  ;;  %v8482_v15 = vrot.slane %v12337_v46, %v12409_v43  ;;  %v8271_v24 = vsub.s32 %v8268_v60, %v10727_v1 }
 0x465   :  { %v8166_v20 = vpop.permute.xlu1 %8165  ;;  %v8340_v6 = vsel %vm8252_vm4, %v8339_v45, %v8335_v25  ;;  %v8478_v33 = vsel %vm8224_vm15, %v8477_v2, %v8473_v53  ;;  %v8265_v18 = vrot.slane %v12146_v9, %v12486_v12  ;;  %v8278_v31 = vsub.s32 %v8275_v11, %v10727_v1 }
 0x466   :  { %v8408_v30 = vrot.slane %v12308_v63, %v12415_v27  ;;  %v8260_v28 = vsel %vm8259_vm5, %v8258_v5, %v8253_v52  ;;  %v8349_v46 = vrot.slane %v12283_v17, %v12486_v12  ;;  %v8404_v43 = vsel %vm8231_vm1, %v8403_v40, %v8399_v39  ;;  %v12586_v63 = vld [vmem:[#allocation13_spill] sm:$0xff] }
 0x467   :  { %v8413_v8 = vrot.slane %v12318_v22, %v12441_v19  ;;  %v8487_v3 = vrot.slane %v12585_v32, %v12415_v27  ;;  %v8345_v9 = vsel %vm8259_vm5, %v8344_v49, %v8340_v6  ;;  %v8483_v1 = vsel %vm8231_vm1, %v8482_v15, %v8478_v33  ;;  %v12593_v15 = vld [vmem:[#allocation5_spill] sm:$0xff] }
 0x468   :  { %v8492_v42 = vrot.slane %v12586_v63, %v12441_v19  ;;  %v8272_v59 = vrot.slane %v12587_v41, %v8271_v24  ;;  %v8267_v17 = vsel %vm8266_vm7, %v8265_v18, %v8260_v28  ;;  %v8279_v34 = vrot.slane %v12588_v47, %v8278_v31 }
 0x469   :  { %v8354_v22 = vrot.slane %v12589_v37, %v8271_v24  ;;  %v8409_v36 = vsel %vm8238_vm2, %v8408_v30, %v8404_v43  ;;  %v8350_v13 = vsel %vm8266_vm7, %v8349_v46, %v8345_v9  ;;  %v8359_v61 = vrot.slane %v12590_v44, %v8278_v31 }
 0x46a   :  { %v8414_v10 = vsel %vm8245_vm3, %v8413_v8, %v8409_v36  ;;  %v8488_v19 = vsel %vm8238_vm2, %v8487_v3, %v8483_v1  ;;  %v8423_v14 = vrot.slane %v12446_v58, %v12477_v48  ;;  %v8502_v62 = vrot.slane %v12470_v57, %v12477_v48 }
 0x46b   :  { %v8121_v50 = vpop.permute.xlu0 %8120  ;;  %v8493_v7 = vsel %vm8245_vm3, %v8492_v42, %v8488_v19  ;;  %v8274_v21 = vsel %vm8273_vm8, %v8272_v59, %v8267_v17  ;;  %v8418_v4 = vrot.slane %v12591_v16, %v12449_v29  ;;  %v8497_v54 = vrot.slane %v12592_v0, %v12449_v29 }
 0x46c   :  { %v8428_v56 = vrot.slane %v12482_v35, %v12486_v12  ;;  %v8507_v51 = vrot.slane %v8166_v20, %v12486_v12  ;;  %v8355_v60 = vsel %vm8273_vm8, %v8354_v22, %v8350_v13  ;;  %v8433_v58 = vrot.slane %v8121_v50, %v8271_v24 }
 0x46d   :  { %v8419_v57 = vsel %vm8252_vm4, %v8418_v4, %v8414_v10  ;;  %v8498_v48 = vsel %vm8252_vm4, %v8497_v54, %v8493_v7  ;;  %v8281_v45 = vsel %vm8280_vm9, %v8279_v34, %v8274_v21  ;;  %v8360_v35 = vsel %vm8280_vm9, %v8359_v61, %v8355_v60 }
 0x46e   :  { %v8424_v55 = vsel %vm8259_vm5, %v8423_v14, %v8419_v57  ;;  %v8503_v29 = vsel %vm8259_vm5, %v8502_v62, %v8498_v48  ;;  %v8519_v52 = vcombine.low %v8281_v45, %v8360_v35  ;;  %v12594_v33 = vlaneseq }
 0x46f   :  { %v8429_v12 = vsel %vm8266_vm7, %v8428_v56, %v8424_v55  ;;  %v8508_v11 = vsel %vm8266_vm7, %v8507_v51, %v8503_v29 }
 0x470   :  { %v8169_v27 = vpop.permute.xlu1 %8168  ;;  %v8434_v53 = vsel %vm8273_vm8, %v8433_v58, %v8429_v12  ;;  %v8527_v20 = vrot.slane %v8519_v52, %v12593_v15  ;;  %vm8546_vm6 = vcmp.lt.s32.totalorder %v12594_v33, 512 }
 0x471   :  { %v8512_v23 = vrot.slane %v8169_v27, %v8271_v24 }
 0x473   :  { %v8513_v40 = vsel %vm8273_vm8, %v8512_v23, %v8508_v11 }
 0x475   :  { %v8124_v26 = vpop.permute.xlu0 %8123 }
 0x476   :  { %v8438_v38 = vrot.slane %v8124_v26, %v8278_v31 }
 0x478   :  { %v8439_v5 = vsel %vm8280_vm9, %v8438_v38, %v8434_v53 }
 0x47b   :  { %v8172_v2 = vpop.permute.xlu1 %8171 }
 0x47c   :  { %v8517_v25 = vrot.slane %v8172_v2, %v8278_v31 }
 0x47e   :  { %v8518_v49 = vsel %vm8280_vm9, %v8517_v25, %v8513_v40 }
 0x47f   :  { %v8520_v39 = vcombine.low %v8439_v5, %v8518_v49 }
 0x481   :  { %v8534_v24 = vrot.slane %v8520_v39, %v12593_v15 }
 0x483   :  { %v8535_v6 = vcombine.low %v8527_v20, %v8534_v24 }
 0x485   :  { %v8542_v18 = vrot.slane %v8535_v6, %v12593_v15 }
 0x487   :  { %8548 = vst.msk [vmem:[#allocation2] sm:$0xf] %vm8546_vm6, %v8542_v18 }
 0x488   :  { %9560 = shalt.err (!%p9557_p4)
}
 0x489   :  { %8558 = dma.vmem_to_hbm [thread:$0]  %s8556_s7, 64, %s12572_s4, [#allocation3]  }
 0x48a   :  { %9569 = dma.done.wait [#allocation3], 64  }
 0x48b   :  { %9570 = vsyncadd [#allocation3], 4294967232 }
 0x48c   :  { %8562 = vsyncpa [#allocation3], 1 }

</bundles_post_ra>
